<compile_context>
chip_gen: v7x
topology: tpu7x:2x2x1
jax: 0.10.0
libtpu: 0.0.40
codegen_flags: <defaults>
</compile_context>

<pallas_src>
import jax
import jax.numpy as jnp
from jax import lax
from jax.experimental import pallas as pl
from jax.experimental.pallas import tpu as pltpu

COUT = 16          # conv output channels
H = W = 28
PH = PW = 14       # pooled spatial size
S = PH * PW        # 196 pooled positions per sample
NCLS = 10
FEAT = COUT * S    # 3136
TILE_N = 128       # batch tile (lane dim); ~8 MB VMEM/step -> fits v5e/v6e/v7x with headroom


def fused_conv_pool_fc_kernel(cw_ref, cb_ref, wfcT_ref, fcb_ref, p_ref, o_ref):
    """Fused Conv2d(1,16,3,pad=1) + ReLU + MaxPool2d(2) + Linear(3136,10).

    cw_ref  : SMEM (16, 9)        f32   conv weights, w[c, 3*dy+dx]
    cb_ref  : SMEM (16,)          f32   conv bias
    wfcT_ref: VMEM (16, 10, 196)  bf16  fc weights reordered to [c, cls, s] (resident)
    fcb_ref : VMEM (10, 1)        f32   fc bias
    p_ref   : VMEM (4, 9, 196, TILE_N) f32  polyphase im2col patches, lanes = batch
    o_ref   : VMEM (10, TILE_N)   f32   logits^T for this batch tile
    """
    tile_n = p_ref.shape[-1]

    def channel_body(c, fc_acc):
        # Conv for output channel c at the 4 pooling phases on dense (196, tile_n) tiles.
        m = None
        for p in range(4):                 # 2x2 pooling-window phase (small, unrolled)
            acc = p_ref[p, 0] * cw_ref[c, 0]
            for t in range(1, 9):          # 3x3 taps (small, unrolled)
                acc = acc + p_ref[p, t] * cw_ref[c, t]
            m = acc if m is None else jnp.maximum(m, acc)
        # Bias + ReLU after the max (monotone, equivalent to per-phase bias+ReLU).
        pooled_c = jnp.maximum(m + cb_ref[c], 0.0)            # (196, tile_n) f32
        # FC contribution of this channel on the MXU: (10,196)@(196,tile_n), f32 accumulate.
        contrib = jnp.dot(wfcT_ref[c], pooled_c.astype(jnp.bfloat16),
                          preferred_element_type=jnp.float32)
        return fc_acc + contrib

    fc = lax.fori_loop(0, COUT, channel_body,
                       jnp.zeros((NCLS, tile_n), jnp.float32))
    o_ref[...] = fc + fcb_ref[...]


@jax.jit
def mnist_forward(x_nchw, conv_w, conv_b, fc_w, fc_b):
    n = x_nchw.shape[0]
    n_pad = ((n + TILE_N - 1) // TILE_N) * TILE_N            # pad ragged batch, slice at the end

    # ---- layout glue only (no arithmetic): pad, polyphase im2col, batch -> lanes ----
    x = x_nchw[:, 0].astype(jnp.float32)                     # (N,28,28), C_in==1 squeezed
    x = jnp.pad(x, ((0, n_pad - n), (1, 1), (1, 1)))         # (Np,30,30) zero padding
    xT = jnp.transpose(x, (1, 2, 0))                         # (30,30,Np): batch in minor dim
    pieces = []
    for a in (0, 1):                                         # pooling-window row phase
        for b in (0, 1):                                     # pooling-window col phase
            for dy in range(3):
                for dx in range(3):
                    sl = xT[a + dy:a + dy + 2 * PH:2, b + dx:b + dx + 2 * PW:2, :]
                    pieces.append(sl.reshape(S, n_pad))      # (196, Np)
    patches = jnp.stack(pieces, axis=0).reshape(4, 9, S, n_pad)

    cw = conv_w.reshape(COUT, 9).astype(jnp.float32)         # (16,9)
    cb = conv_b.astype(jnp.float32)                          # (16,)
    # fc weights reordered to [c, cls, s]; bf16 operands, f32 MXU accumulation.
    wfcT = jnp.transpose(fc_w.reshape(NCLS, COUT, S), (1, 0, 2)).astype(jnp.bfloat16)
    fcb = fc_b.reshape(NCLS, 1).astype(jnp.float32)

    out_t = pl.pallas_call(
        fused_conv_pool_fc_kernel,
        out_shape=jax.ShapeDtypeStruct((NCLS, n_pad), jnp.float32),
        grid=(n_pad // TILE_N,),
        in_specs=[
            pl.BlockSpec(memory_space=pltpu.MemorySpace.SMEM),            # conv w
            pl.BlockSpec(memory_space=pltpu.MemorySpace.SMEM),            # conv b
            pl.BlockSpec((COUT, NCLS, S), lambda i: (0, 0, 0)),           # fc w, resident
            pl.BlockSpec((NCLS, 1), lambda i: (0, 0)),                    # fc b, resident
            pl.BlockSpec((4, 9, S, TILE_N), lambda i: (0, 0, 0, i)),      # patches, batch-tiled
        ],
        out_specs=pl.BlockSpec((NCLS, TILE_N), lambda i: (0, i)),
        compiler_params=pltpu.CompilerParams(
            dimension_semantics=("parallel",),                # megacore-friendly batch grid
            vmem_limit_bytes=32 * 1024 * 1024),               # explicit bound; fits v7x 64 MiB
    )(cw, cb, wfcT, fcb, patches)

    return out_t[:, :n].T                                     # (N, 10), PyTorch order


def reference_forward(x, conv_w, conv_b, fc_w, fc_b):
    """Pure-JAX reference mirroring the PyTorch forward."""
    y = jax.lax.conv_general_dilated(
        x, conv_w, window_strides=(1, 1), padding=((1, 1), (1, 1)),
        dimension_numbers=('NCHW', 'OIHW', 'NCHW'))
    y = jnp.maximum(y + conv_b[None, :, None, None], 0.0)
    y = jax.lax.reduce_window(y, jnp.array(-jnp.inf, y.dtype), jax.lax.max,
                              (1, 1, 2, 2), (1, 1, 2, 2), 'VALID')
    y = y.reshape(y.shape[0], -1)
    return y @ fc_w.T + fc_b


if __name__ == "__main__":
    key = jax.random.PRNGKey(0)
    kx, kw1, kb1, kw2, kb2 = jax.random.split(key, 5)
    batch = 2
    x = jax.random.normal(kx, (batch, 1, H, W), jnp.float32)
    conv_w = jax.random.normal(kw1, (COUT, 1, 3, 3), jnp.float32) * 0.1
    conv_b = jax.random.normal(kb1, (COUT,), jnp.float32) * 0.1
    fc_w = jax.random.normal(kw2, (NCLS, FEAT), jnp.float32) * 0.02
    fc_b = jax.random.normal(kb2, (NCLS,), jnp.float32) * 0.02

    out = jax.block_until_ready(mnist_forward(x, conv_w, conv_b, fc_w, fc_b))

    ref = reference_forward(x, conv_w, conv_b, fc_w, fc_b)
    assert out.shape == (batch, NCLS)
    # bf16 FC operands (f32 accumulation) => slightly loosened tolerance, per review note.
    assert jnp.allclose(out, ref, atol=2e-2, rtol=2e-2), (out, ref)
    print("KERNEL_OK")
</pallas_src>

<mosaic_0001>
module attributes {stable_mosaic.version = 11 : i64} {
  func.func @fused_conv_pool_fc_kernel(%arg0: i32, %arg1: memref<16x9xf32, #tpu.memory_space<smem>>, %arg2: memref<16xf32, #tpu.memory_space<smem>>, %arg3: memref<16x10x196xbf16, #tpu.memory_space<vmem>>, %arg4: memref<10x1xf32, #tpu.memory_space<vmem>>, %arg5: memref<4x9x196x128xf32, #tpu.memory_space<vmem>>, %arg6: memref<10x128xf32, #tpu.memory_space<vmem>>) attributes {dimension_semantics = [#tpu.dimension_semantics<parallel>], iteration_bounds = array<i64: 1>, scalar_prefetch = 0 : i64, scratch_operands = 0 : i64, tpu.core_type = #tpu.core_type<tc>, window_params = [{transform_indices = @transform_0, window_bounds = array<i64: 16, 9>}, {transform_indices = @transform_1, window_bounds = array<i64: 16>}, {pipeline_mode = #tpu.pipeline_mode<synchronous>, transform_indices = @transform_2, window_bounds = array<i64: 16, 10, 196>}, {pipeline_mode = #tpu.pipeline_mode<synchronous>, transform_indices = @transform_3, window_bounds = array<i64: 10, 1>}, {transform_indices = @transform_4, window_bounds = array<i64: 4, 9, 196, 128>}, {transform_indices = @transform_5, window_bounds = array<i64: 10, 128>}]} {
    %cst = arith.constant 0.000000e+00 : f32
    %0 = vector.broadcast %cst : f32 to vector<10x128xf32>
    %c0_i32 = arith.constant 0 : i32
    %c16_i32 = arith.constant 16 : i32
    %1 = arith.addi %c0_i32, %c16_i32 : i32
    %c1_i32 = arith.constant 1 : i32
    %2 = scf.for %arg7 = %c0_i32 to %1 step %c1_i32 iter_args(%arg8 = %0) -> (vector<10x128xf32>)  : i32 {
      %c0_4 = arith.constant 0 : index
      %c0_5 = arith.constant 0 : index
      %c0_6 = arith.constant 0 : index
      %c0_7 = arith.constant 0 : index
      %7 = vector.load %arg5[%c0_4, %c0_5, %c0_6, %c0_7] : memref<4x9x196x128xf32, #tpu.memory_space<vmem>>, vector<1x1x196x128xf32>
      %8 = vector.shape_cast %7 : vector<1x1x196x128xf32> to vector<196x128xf32>
      %9 = arith.index_cast %arg7 : i32 to index
      %c0_8 = arith.constant 0 : index
      %10 = memref.load %arg1[%9, %c0_8] : memref<16x9xf32, #tpu.memory_space<smem>>
      %11 = vector.broadcast %10 : f32 to vector<196x128xf32>
      %12 = arith.mulf %8, %11 : vector<196x128xf32>
      %c0_9 = arith.constant 0 : index
      %c1 = arith.constant 1 : index
      %c0_10 = arith.constant 0 : index
      %c0_11 = arith.constant 0 : index
      %13 = vector.load %arg5[%c0_9, %c1, %c0_10, %c0_11] : memref<4x9x196x128xf32, #tpu.memory_space<vmem>>, vector<1x1x196x128xf32>
      %14 = vector.shape_cast %13 : vector<1x1x196x128xf32> to vector<196x128xf32>
      %15 = arith.index_cast %arg7 : i32 to index
      %c1_12 = arith.constant 1 : index
      %16 = memref.load %arg1[%15, %c1_12] : memref<16x9xf32, #tpu.memory_space<smem>>
      %17 = vector.broadcast %16 : f32 to vector<196x128xf32>
      %18 = arith.mulf %14, %17 : vector<196x128xf32>
      %19 = arith.addf %12, %18 : vector<196x128xf32>
      %c0_13 = arith.constant 0 : index
      %c2 = arith.constant 2 : index
      %c0_14 = arith.constant 0 : index
      %c0_15 = arith.constant 0 : index
      %20 = vector.load %arg5[%c0_13, %c2, %c0_14, %c0_15] : memref<4x9x196x128xf32, #tpu.memory_space<vmem>>, vector<1x1x196x128xf32>
      %21 = vector.shape_cast %20 : vector<1x1x196x128xf32> to vector<196x128xf32>
      %22 = arith.index_cast %arg7 : i32 to index
      %c2_16 = arith.constant 2 : index
      %23 = memref.load %arg1[%22, %c2_16] : memref<16x9xf32, #tpu.memory_space<smem>>
      %24 = vector.broadcast %23 : f32 to vector<196x128xf32>
      %25 = arith.mulf %21, %24 : vector<196x128xf32>
      %26 = arith.addf %19, %25 : vector<196x128xf32>
      %c0_17 = arith.constant 0 : index
      %c3 = arith.constant 3 : index
      %c0_18 = arith.constant 0 : index
      %c0_19 = arith.constant 0 : index
      %27 = vector.load %arg5[%c0_17, %c3, %c0_18, %c0_19] : memref<4x9x196x128xf32, #tpu.memory_space<vmem>>, vector<1x1x196x128xf32>
      %28 = vector.shape_cast %27 : vector<1x1x196x128xf32> to vector<196x128xf32>
      %29 = arith.index_cast %arg7 : i32 to index
      %c3_20 = arith.constant 3 : index
      %30 = memref.load %arg1[%29, %c3_20] : memref<16x9xf32, #tpu.memory_space<smem>>
      %31 = vector.broadcast %30 : f32 to vector<196x128xf32>
      %32 = arith.mulf %28, %31 : vector<196x128xf32>
      %33 = arith.addf %26, %32 : vector<196x128xf32>
      %c0_21 = arith.constant 0 : index
      %c4 = arith.constant 4 : index
      %c0_22 = arith.constant 0 : index
      %c0_23 = arith.constant 0 : index
      %34 = vector.load %arg5[%c0_21, %c4, %c0_22, %c0_23] : memref<4x9x196x128xf32, #tpu.memory_space<vmem>>, vector<1x1x196x128xf32>
      %35 = vector.shape_cast %34 : vector<1x1x196x128xf32> to vector<196x128xf32>
      %36 = arith.index_cast %arg7 : i32 to index
      %c4_24 = arith.constant 4 : index
      %37 = memref.load %arg1[%36, %c4_24] : memref<16x9xf32, #tpu.memory_space<smem>>
      %38 = vector.broadcast %37 : f32 to vector<196x128xf32>
      %39 = arith.mulf %35, %38 : vector<196x128xf32>
      %40 = arith.addf %33, %39 : vector<196x128xf32>
      %c0_25 = arith.constant 0 : index
      %c5 = arith.constant 5 : index
      %c0_26 = arith.constant 0 : index
      %c0_27 = arith.constant 0 : index
      %41 = vector.load %arg5[%c0_25, %c5, %c0_26, %c0_27] : memref<4x9x196x128xf32, #tpu.memory_space<vmem>>, vector<1x1x196x128xf32>
      %42 = vector.shape_cast %41 : vector<1x1x196x128xf32> to vector<196x128xf32>
      %43 = arith.index_cast %arg7 : i32 to index
      %c5_28 = arith.constant 5 : index
      %44 = memref.load %arg1[%43, %c5_28] : memref<16x9xf32, #tpu.memory_space<smem>>
      %45 = vector.broadcast %44 : f32 to vector<196x128xf32>
      %46 = arith.mulf %42, %45 : vector<196x128xf32>
      %47 = arith.addf %40, %46 : vector<196x128xf32>
      %c0_29 = arith.constant 0 : index
      %c6 = arith.constant 6 : index
      %c0_30 = arith.constant 0 : index
      %c0_31 = arith.constant 0 : index
      %48 = vector.load %arg5[%c0_29, %c6, %c0_30, %c0_31] : memref<4x9x196x128xf32, #tpu.memory_space<vmem>>, vector<1x1x196x128xf32>
      %49 = vector.shape_cast %48 : vector<1x1x196x128xf32> to vector<196x128xf32>
      %50 = arith.index_cast %arg7 : i32 to index
      %c6_32 = arith.constant 6 : index
      %51 = memref.load %arg1[%50, %c6_32] : memref<16x9xf32, #tpu.memory_space<smem>>
      %52 = vector.broadcast %51 : f32 to vector<196x128xf32>
      %53 = arith.mulf %49, %52 : vector<196x128xf32>
      %54 = arith.addf %47, %53 : vector<196x128xf32>
      %c0_33 = arith.constant 0 : index
      %c7 = arith.constant 7 : index
      %c0_34 = arith.constant 0 : index
      %c0_35 = arith.constant 0 : index
      %55 = vector.load %arg5[%c0_33, %c7, %c0_34, %c0_35] : memref<4x9x196x128xf32, #tpu.memory_space<vmem>>, vector<1x1x196x128xf32>
      %56 = vector.shape_cast %55 : vector<1x1x196x128xf32> to vector<196x128xf32>
      %57 = arith.index_cast %arg7 : i32 to index
      %c7_36 = arith.constant 7 : index
      %58 = memref.load %arg1[%57, %c7_36] : memref<16x9xf32, #tpu.memory_space<smem>>
      %59 = vector.broadcast %58 : f32 to vector<196x128xf32>
      %60 = arith.mulf %56, %59 : vector<196x128xf32>
      %61 = arith.addf %54, %60 : vector<196x128xf32>
      %c0_37 = arith.constant 0 : index
      %c8 = arith.constant 8 : index
      %c0_38 = arith.constant 0 : index
      %c0_39 = arith.constant 0 : index
      %62 = vector.load %arg5[%c0_37, %c8, %c0_38, %c0_39] : memref<4x9x196x128xf32, #tpu.memory_space<vmem>>, vector<1x1x196x128xf32>
      %63 = vector.shape_cast %62 : vector<1x1x196x128xf32> to vector<196x128xf32>
      %64 = arith.index_cast %arg7 : i32 to index
      %c8_40 = arith.constant 8 : index
      %65 = memref.load %arg1[%64, %c8_40] : memref<16x9xf32, #tpu.memory_space<smem>>
      %66 = vector.broadcast %65 : f32 to vector<196x128xf32>
      %67 = arith.mulf %63, %66 : vector<196x128xf32>
      %68 = arith.addf %61, %67 : vector<196x128xf32>
      %c1_41 = arith.constant 1 : index
      %c0_42 = arith.constant 0 : index
      %c0_43 = arith.constant 0 : index
      %c0_44 = arith.constant 0 : index
      %69 = vector.load %arg5[%c1_41, %c0_42, %c0_43, %c0_44] : memref<4x9x196x128xf32, #tpu.memory_space<vmem>>, vector<1x1x196x128xf32>
      %70 = vector.shape_cast %69 : vector<1x1x196x128xf32> to vector<196x128xf32>
      %71 = arith.index_cast %arg7 : i32 to index
      %c0_45 = arith.constant 0 : index
      %72 = memref.load %arg1[%71, %c0_45] : memref<16x9xf32, #tpu.memory_space<smem>>
      %73 = vector.broadcast %72 : f32 to vector<196x128xf32>
      %74 = arith.mulf %70, %73 : vector<196x128xf32>
      %c1_46 = arith.constant 1 : index
      %c1_47 = arith.constant 1 : index
      %c0_48 = arith.constant 0 : index
      %c0_49 = arith.constant 0 : index
      %75 = vector.load %arg5[%c1_46, %c1_47, %c0_48, %c0_49] : memref<4x9x196x128xf32, #tpu.memory_space<vmem>>, vector<1x1x196x128xf32>
      %76 = vector.shape_cast %75 : vector<1x1x196x128xf32> to vector<196x128xf32>
      %77 = arith.index_cast %arg7 : i32 to index
      %c1_50 = arith.constant 1 : index
      %78 = memref.load %arg1[%77, %c1_50] : memref<16x9xf32, #tpu.memory_space<smem>>
      %79 = vector.broadcast %78 : f32 to vector<196x128xf32>
      %80 = arith.mulf %76, %79 : vector<196x128xf32>
      %81 = arith.addf %74, %80 : vector<196x128xf32>
      %c1_51 = arith.constant 1 : index
      %c2_52 = arith.constant 2 : index
      %c0_53 = arith.constant 0 : index
      %c0_54 = arith.constant 0 : index
      %82 = vector.load %arg5[%c1_51, %c2_52, %c0_53, %c0_54] : memref<4x9x196x128xf32, #tpu.memory_space<vmem>>, vector<1x1x196x128xf32>
      %83 = vector.shape_cast %82 : vector<1x1x196x128xf32> to vector<196x128xf32>
      %84 = arith.index_cast %arg7 : i32 to index
      %c2_55 = arith.constant 2 : index
      %85 = memref.load %arg1[%84, %c2_55] : memref<16x9xf32, #tpu.memory_space<smem>>
      %86 = vector.broadcast %85 : f32 to vector<196x128xf32>
      %87 = arith.mulf %83, %86 : vector<196x128xf32>
      %88 = arith.addf %81, %87 : vector<196x128xf32>
      %c1_56 = arith.constant 1 : index
      %c3_57 = arith.constant 3 : index
      %c0_58 = arith.constant 0 : index
      %c0_59 = arith.constant 0 : index
      %89 = vector.load %arg5[%c1_56, %c3_57, %c0_58, %c0_59] : memref<4x9x196x128xf32, #tpu.memory_space<vmem>>, vector<1x1x196x128xf32>
      %90 = vector.shape_cast %89 : vector<1x1x196x128xf32> to vector<196x128xf32>
      %91 = arith.index_cast %arg7 : i32 to index
      %c3_60 = arith.constant 3 : index
      %92 = memref.load %arg1[%91, %c3_60] : memref<16x9xf32, #tpu.memory_space<smem>>
      %93 = vector.broadcast %92 : f32 to vector<196x128xf32>
      %94 = arith.mulf %90, %93 : vector<196x128xf32>
      %95 = arith.addf %88, %94 : vector<196x128xf32>
      %c1_61 = arith.constant 1 : index
      %c4_62 = arith.constant 4 : index
      %c0_63 = arith.constant 0 : index
      %c0_64 = arith.constant 0 : index
      %96 = vector.load %arg5[%c1_61, %c4_62, %c0_63, %c0_64] : memref<4x9x196x128xf32, #tpu.memory_space<vmem>>, vector<1x1x196x128xf32>
      %97 = vector.shape_cast %96 : vector<1x1x196x128xf32> to vector<196x128xf32>
      %98 = arith.index_cast %arg7 : i32 to index
      %c4_65 = arith.constant 4 : index
      %99 = memref.load %arg1[%98, %c4_65] : memref<16x9xf32, #tpu.memory_space<smem>>
      %100 = vector.broadcast %99 : f32 to vector<196x128xf32>
      %101 = arith.mulf %97, %100 : vector<196x128xf32>
      %102 = arith.addf %95, %101 : vector<196x128xf32>
      %c1_66 = arith.constant 1 : index
      %c5_67 = arith.constant 5 : index
      %c0_68 = arith.constant 0 : index
      %c0_69 = arith.constant 0 : index
      %103 = vector.load %arg5[%c1_66, %c5_67, %c0_68, %c0_69] : memref<4x9x196x128xf32, #tpu.memory_space<vmem>>, vector<1x1x196x128xf32>
      %104 = vector.shape_cast %103 : vector<1x1x196x128xf32> to vector<196x128xf32>
      %105 = arith.index_cast %arg7 : i32 to index
      %c5_70 = arith.constant 5 : index
      %106 = memref.load %arg1[%105, %c5_70] : memref<16x9xf32, #tpu.memory_space<smem>>
      %107 = vector.broadcast %106 : f32 to vector<196x128xf32>
      %108 = arith.mulf %104, %107 : vector<196x128xf32>
      %109 = arith.addf %102, %108 : vector<196x128xf32>
      %c1_71 = arith.constant 1 : index
      %c6_72 = arith.constant 6 : index
      %c0_73 = arith.constant 0 : index
      %c0_74 = arith.constant 0 : index
      %110 = vector.load %arg5[%c1_71, %c6_72, %c0_73, %c0_74] : memref<4x9x196x128xf32, #tpu.memory_space<vmem>>, vector<1x1x196x128xf32>
      %111 = vector.shape_cast %110 : vector<1x1x196x128xf32> to vector<196x128xf32>
      %112 = arith.index_cast %arg7 : i32 to index
      %c6_75 = arith.constant 6 : index
      %113 = memref.load %arg1[%112, %c6_75] : memref<16x9xf32, #tpu.memory_space<smem>>
      %114 = vector.broadcast %113 : f32 to vector<196x128xf32>
      %115 = arith.mulf %111, %114 : vector<196x128xf32>
      %116 = arith.addf %109, %115 : vector<196x128xf32>
      %c1_76 = arith.constant 1 : index
      %c7_77 = arith.constant 7 : index
      %c0_78 = arith.constant 0 : index
      %c0_79 = arith.constant 0 : index
      %117 = vector.load %arg5[%c1_76, %c7_77, %c0_78, %c0_79] : memref<4x9x196x128xf32, #tpu.memory_space<vmem>>, vector<1x1x196x128xf32>
      %118 = vector.shape_cast %117 : vector<1x1x196x128xf32> to vector<196x128xf32>
      %119 = arith.index_cast %arg7 : i32 to index
      %c7_80 = arith.constant 7 : index
      %120 = memref.load %arg1[%119, %c7_80] : memref<16x9xf32, #tpu.memory_space<smem>>
      %121 = vector.broadcast %120 : f32 to vector<196x128xf32>
      %122 = arith.mulf %118, %121 : vector<196x128xf32>
      %123 = arith.addf %116, %122 : vector<196x128xf32>
      %c1_81 = arith.constant 1 : index
      %c8_82 = arith.constant 8 : index
      %c0_83 = arith.constant 0 : index
      %c0_84 = arith.constant 0 : index
      %124 = vector.load %arg5[%c1_81, %c8_82, %c0_83, %c0_84] : memref<4x9x196x128xf32, #tpu.memory_space<vmem>>, vector<1x1x196x128xf32>
      %125 = vector.shape_cast %124 : vector<1x1x196x128xf32> to vector<196x128xf32>
      %126 = arith.index_cast %arg7 : i32 to index
      %c8_85 = arith.constant 8 : index
      %127 = memref.load %arg1[%126, %c8_85] : memref<16x9xf32, #tpu.memory_space<smem>>
      %128 = vector.broadcast %127 : f32 to vector<196x128xf32>
      %129 = arith.mulf %125, %128 : vector<196x128xf32>
      %130 = arith.addf %123, %129 : vector<196x128xf32>
      %131 = arith.maximumf %68, %130 : vector<196x128xf32>
      %c2_86 = arith.constant 2 : index
      %c0_87 = arith.constant 0 : index
      %c0_88 = arith.constant 0 : index
      %c0_89 = arith.constant 0 : index
      %132 = vector.load %arg5[%c2_86, %c0_87, %c0_88, %c0_89] : memref<4x9x196x128xf32, #tpu.memory_space<vmem>>, vector<1x1x196x128xf32>
      %133 = vector.shape_cast %132 : vector<1x1x196x128xf32> to vector<196x128xf32>
      %134 = arith.index_cast %arg7 : i32 to index
      %c0_90 = arith.constant 0 : index
      %135 = memref.load %arg1[%134, %c0_90] : memref<16x9xf32, #tpu.memory_space<smem>>
      %136 = vector.broadcast %135 : f32 to vector<196x128xf32>
      %137 = arith.mulf %133, %136 : vector<196x128xf32>
      %c2_91 = arith.constant 2 : index
      %c1_92 = arith.constant 1 : index
      %c0_93 = arith.constant 0 : index
      %c0_94 = arith.constant 0 : index
      %138 = vector.load %arg5[%c2_91, %c1_92, %c0_93, %c0_94] : memref<4x9x196x128xf32, #tpu.memory_space<vmem>>, vector<1x1x196x128xf32>
      %139 = vector.shape_cast %138 : vector<1x1x196x128xf32> to vector<196x128xf32>
      %140 = arith.index_cast %arg7 : i32 to index
      %c1_95 = arith.constant 1 : index
      %141 = memref.load %arg1[%140, %c1_95] : memref<16x9xf32, #tpu.memory_space<smem>>
      %142 = vector.broadcast %141 : f32 to vector<196x128xf32>
      %143 = arith.mulf %139, %142 : vector<196x128xf32>
      %144 = arith.addf %137, %143 : vector<196x128xf32>
      %c2_96 = arith.constant 2 : index
      %c2_97 = arith.constant 2 : index
      %c0_98 = arith.constant 0 : index
      %c0_99 = arith.constant 0 : index
      %145 = vector.load %arg5[%c2_96, %c2_97, %c0_98, %c0_99] : memref<4x9x196x128xf32, #tpu.memory_space<vmem>>, vector<1x1x196x128xf32>
      %146 = vector.shape_cast %145 : vector<1x1x196x128xf32> to vector<196x128xf32>
      %147 = arith.index_cast %arg7 : i32 to index
      %c2_100 = arith.constant 2 : index
      %148 = memref.load %arg1[%147, %c2_100] : memref<16x9xf32, #tpu.memory_space<smem>>
      %149 = vector.broadcast %148 : f32 to vector<196x128xf32>
      %150 = arith.mulf %146, %149 : vector<196x128xf32>
      %151 = arith.addf %144, %150 : vector<196x128xf32>
      %c2_101 = arith.constant 2 : index
      %c3_102 = arith.constant 3 : index
      %c0_103 = arith.constant 0 : index
      %c0_104 = arith.constant 0 : index
      %152 = vector.load %arg5[%c2_101, %c3_102, %c0_103, %c0_104] : memref<4x9x196x128xf32, #tpu.memory_space<vmem>>, vector<1x1x196x128xf32>
      %153 = vector.shape_cast %152 : vector<1x1x196x128xf32> to vector<196x128xf32>
      %154 = arith.index_cast %arg7 : i32 to index
      %c3_105 = arith.constant 3 : index
      %155 = memref.load %arg1[%154, %c3_105] : memref<16x9xf32, #tpu.memory_space<smem>>
      %156 = vector.broadcast %155 : f32 to vector<196x128xf32>
      %157 = arith.mulf %153, %156 : vector<196x128xf32>
      %158 = arith.addf %151, %157 : vector<196x128xf32>
      %c2_106 = arith.constant 2 : index
      %c4_107 = arith.constant 4 : index
      %c0_108 = arith.constant 0 : index
      %c0_109 = arith.constant 0 : index
      %159 = vector.load %arg5[%c2_106, %c4_107, %c0_108, %c0_109] : memref<4x9x196x128xf32, #tpu.memory_space<vmem>>, vector<1x1x196x128xf32>
      %160 = vector.shape_cast %159 : vector<1x1x196x128xf32> to vector<196x128xf32>
      %161 = arith.index_cast %arg7 : i32 to index
      %c4_110 = arith.constant 4 : index
      %162 = memref.load %arg1[%161, %c4_110] : memref<16x9xf32, #tpu.memory_space<smem>>
      %163 = vector.broadcast %162 : f32 to vector<196x128xf32>
      %164 = arith.mulf %160, %163 : vector<196x128xf32>
      %165 = arith.addf %158, %164 : vector<196x128xf32>
      %c2_111 = arith.constant 2 : index
      %c5_112 = arith.constant 5 : index
      %c0_113 = arith.constant 0 : index
      %c0_114 = arith.constant 0 : index
      %166 = vector.load %arg5[%c2_111, %c5_112, %c0_113, %c0_114] : memref<4x9x196x128xf32, #tpu.memory_space<vmem>>, vector<1x1x196x128xf32>
      %167 = vector.shape_cast %166 : vector<1x1x196x128xf32> to vector<196x128xf32>
      %168 = arith.index_cast %arg7 : i32 to index
      %c5_115 = arith.constant 5 : index
      %169 = memref.load %arg1[%168, %c5_115] : memref<16x9xf32, #tpu.memory_space<smem>>
      %170 = vector.broadcast %169 : f32 to vector<196x128xf32>
      %171 = arith.mulf %167, %170 : vector<196x128xf32>
      %172 = arith.addf %165, %171 : vector<196x128xf32>
      %c2_116 = arith.constant 2 : index
      %c6_117 = arith.constant 6 : index
      %c0_118 = arith.constant 0 : index
      %c0_119 = arith.constant 0 : index
      %173 = vector.load %arg5[%c2_116, %c6_117, %c0_118, %c0_119] : memref<4x9x196x128xf32, #tpu.memory_space<vmem>>, vector<1x1x196x128xf32>
      %174 = vector.shape_cast %173 : vector<1x1x196x128xf32> to vector<196x128xf32>
      %175 = arith.index_cast %arg7 : i32 to index
      %c6_120 = arith.constant 6 : index
      %176 = memref.load %arg1[%175, %c6_120] : memref<16x9xf32, #tpu.memory_space<smem>>
      %177 = vector.broadcast %176 : f32 to vector<196x128xf32>
      %178 = arith.mulf %174, %177 : vector<196x128xf32>
      %179 = arith.addf %172, %178 : vector<196x128xf32>
      %c2_121 = arith.constant 2 : index
      %c7_122 = arith.constant 7 : index
      %c0_123 = arith.constant 0 : index
      %c0_124 = arith.constant 0 : index
      %180 = vector.load %arg5[%c2_121, %c7_122, %c0_123, %c0_124] : memref<4x9x196x128xf32, #tpu.memory_space<vmem>>, vector<1x1x196x128xf32>
      %181 = vector.shape_cast %180 : vector<1x1x196x128xf32> to vector<196x128xf32>
      %182 = arith.index_cast %arg7 : i32 to index
      %c7_125 = arith.constant 7 : index
      %183 = memref.load %arg1[%182, %c7_125] : memref<16x9xf32, #tpu.memory_space<smem>>
      %184 = vector.broadcast %183 : f32 to vector<196x128xf32>
      %185 = arith.mulf %181, %184 : vector<196x128xf32>
      %186 = arith.addf %179, %185 : vector<196x128xf32>
      %c2_126 = arith.constant 2 : index
      %c8_127 = arith.constant 8 : index
      %c0_128 = arith.constant 0 : index
      %c0_129 = arith.constant 0 : index
      %187 = vector.load %arg5[%c2_126, %c8_127, %c0_128, %c0_129] : memref<4x9x196x128xf32, #tpu.memory_space<vmem>>, vector<1x1x196x128xf32>
      %188 = vector.shape_cast %187 : vector<1x1x196x128xf32> to vector<196x128xf32>
      %189 = arith.index_cast %arg7 : i32 to index
      %c8_130 = arith.constant 8 : index
      %190 = memref.load %arg1[%189, %c8_130] : memref<16x9xf32, #tpu.memory_space<smem>>
      %191 = vector.broadcast %190 : f32 to vector<196x128xf32>
      %192 = arith.mulf %188, %191 : vector<196x128xf32>
      %193 = arith.addf %186, %192 : vector<196x128xf32>
      %194 = arith.maximumf %131, %193 : vector<196x128xf32>
      %c3_131 = arith.constant 3 : index
      %c0_132 = arith.constant 0 : index
      %c0_133 = arith.constant 0 : index
      %c0_134 = arith.constant 0 : index
      %195 = vector.load %arg5[%c3_131, %c0_132, %c0_133, %c0_134] : memref<4x9x196x128xf32, #tpu.memory_space<vmem>>, vector<1x1x196x128xf32>
      %196 = vector.shape_cast %195 : vector<1x1x196x128xf32> to vector<196x128xf32>
      %197 = arith.index_cast %arg7 : i32 to index
      %c0_135 = arith.constant 0 : index
      %198 = memref.load %arg1[%197, %c0_135] : memref<16x9xf32, #tpu.memory_space<smem>>
      %199 = vector.broadcast %198 : f32 to vector<196x128xf32>
      %200 = arith.mulf %196, %199 : vector<196x128xf32>
      %c3_136 = arith.constant 3 : index
      %c1_137 = arith.constant 1 : index
      %c0_138 = arith.constant 0 : index
      %c0_139 = arith.constant 0 : index
      %201 = vector.load %arg5[%c3_136, %c1_137, %c0_138, %c0_139] : memref<4x9x196x128xf32, #tpu.memory_space<vmem>>, vector<1x1x196x128xf32>
      %202 = vector.shape_cast %201 : vector<1x1x196x128xf32> to vector<196x128xf32>
      %203 = arith.index_cast %arg7 : i32 to index
      %c1_140 = arith.constant 1 : index
      %204 = memref.load %arg1[%203, %c1_140] : memref<16x9xf32, #tpu.memory_space<smem>>
      %205 = vector.broadcast %204 : f32 to vector<196x128xf32>
      %206 = arith.mulf %202, %205 : vector<196x128xf32>
      %207 = arith.addf %200, %206 : vector<196x128xf32>
      %c3_141 = arith.constant 3 : index
      %c2_142 = arith.constant 2 : index
      %c0_143 = arith.constant 0 : index
      %c0_144 = arith.constant 0 : index
      %208 = vector.load %arg5[%c3_141, %c2_142, %c0_143, %c0_144] : memref<4x9x196x128xf32, #tpu.memory_space<vmem>>, vector<1x1x196x128xf32>
      %209 = vector.shape_cast %208 : vector<1x1x196x128xf32> to vector<196x128xf32>
      %210 = arith.index_cast %arg7 : i32 to index
      %c2_145 = arith.constant 2 : index
      %211 = memref.load %arg1[%210, %c2_145] : memref<16x9xf32, #tpu.memory_space<smem>>
      %212 = vector.broadcast %211 : f32 to vector<196x128xf32>
      %213 = arith.mulf %209, %212 : vector<196x128xf32>
      %214 = arith.addf %207, %213 : vector<196x128xf32>
      %c3_146 = arith.constant 3 : index
      %c3_147 = arith.constant 3 : index
      %c0_148 = arith.constant 0 : index
      %c0_149 = arith.constant 0 : index
      %215 = vector.load %arg5[%c3_146, %c3_147, %c0_148, %c0_149] : memref<4x9x196x128xf32, #tpu.memory_space<vmem>>, vector<1x1x196x128xf32>
      %216 = vector.shape_cast %215 : vector<1x1x196x128xf32> to vector<196x128xf32>
      %217 = arith.index_cast %arg7 : i32 to index
      %c3_150 = arith.constant 3 : index
      %218 = memref.load %arg1[%217, %c3_150] : memref<16x9xf32, #tpu.memory_space<smem>>
      %219 = vector.broadcast %218 : f32 to vector<196x128xf32>
      %220 = arith.mulf %216, %219 : vector<196x128xf32>
      %221 = arith.addf %214, %220 : vector<196x128xf32>
      %c3_151 = arith.constant 3 : index
      %c4_152 = arith.constant 4 : index
      %c0_153 = arith.constant 0 : index
      %c0_154 = arith.constant 0 : index
      %222 = vector.load %arg5[%c3_151, %c4_152, %c0_153, %c0_154] : memref<4x9x196x128xf32, #tpu.memory_space<vmem>>, vector<1x1x196x128xf32>
      %223 = vector.shape_cast %222 : vector<1x1x196x128xf32> to vector<196x128xf32>
      %224 = arith.index_cast %arg7 : i32 to index
      %c4_155 = arith.constant 4 : index
      %225 = memref.load %arg1[%224, %c4_155] : memref<16x9xf32, #tpu.memory_space<smem>>
      %226 = vector.broadcast %225 : f32 to vector<196x128xf32>
      %227 = arith.mulf %223, %226 : vector<196x128xf32>
      %228 = arith.addf %221, %227 : vector<196x128xf32>
      %c3_156 = arith.constant 3 : index
      %c5_157 = arith.constant 5 : index
      %c0_158 = arith.constant 0 : index
      %c0_159 = arith.constant 0 : index
      %229 = vector.load %arg5[%c3_156, %c5_157, %c0_158, %c0_159] : memref<4x9x196x128xf32, #tpu.memory_space<vmem>>, vector<1x1x196x128xf32>
      %230 = vector.shape_cast %229 : vector<1x1x196x128xf32> to vector<196x128xf32>
      %231 = arith.index_cast %arg7 : i32 to index
      %c5_160 = arith.constant 5 : index
      %232 = memref.load %arg1[%231, %c5_160] : memref<16x9xf32, #tpu.memory_space<smem>>
      %233 = vector.broadcast %232 : f32 to vector<196x128xf32>
      %234 = arith.mulf %230, %233 : vector<196x128xf32>
      %235 = arith.addf %228, %234 : vector<196x128xf32>
      %c3_161 = arith.constant 3 : index
      %c6_162 = arith.constant 6 : index
      %c0_163 = arith.constant 0 : index
      %c0_164 = arith.constant 0 : index
      %236 = vector.load %arg5[%c3_161, %c6_162, %c0_163, %c0_164] : memref<4x9x196x128xf32, #tpu.memory_space<vmem>>, vector<1x1x196x128xf32>
      %237 = vector.shape_cast %236 : vector<1x1x196x128xf32> to vector<196x128xf32>
      %238 = arith.index_cast %arg7 : i32 to index
      %c6_165 = arith.constant 6 : index
      %239 = memref.load %arg1[%238, %c6_165] : memref<16x9xf32, #tpu.memory_space<smem>>
      %240 = vector.broadcast %239 : f32 to vector<196x128xf32>
      %241 = arith.mulf %237, %240 : vector<196x128xf32>
      %242 = arith.addf %235, %241 : vector<196x128xf32>
      %c3_166 = arith.constant 3 : index
      %c7_167 = arith.constant 7 : index
      %c0_168 = arith.constant 0 : index
      %c0_169 = arith.constant 0 : index
      %243 = vector.load %arg5[%c3_166, %c7_167, %c0_168, %c0_169] : memref<4x9x196x128xf32, #tpu.memory_space<vmem>>, vector<1x1x196x128xf32>
      %244 = vector.shape_cast %243 : vector<1x1x196x128xf32> to vector<196x128xf32>
      %245 = arith.index_cast %arg7 : i32 to index
      %c7_170 = arith.constant 7 : index
      %246 = memref.load %arg1[%245, %c7_170] : memref<16x9xf32, #tpu.memory_space<smem>>
      %247 = vector.broadcast %246 : f32 to vector<196x128xf32>
      %248 = arith.mulf %244, %247 : vector<196x128xf32>
      %249 = arith.addf %242, %248 : vector<196x128xf32>
      %c3_171 = arith.constant 3 : index
      %c8_172 = arith.constant 8 : index
      %c0_173 = arith.constant 0 : index
      %c0_174 = arith.constant 0 : index
      %250 = vector.load %arg5[%c3_171, %c8_172, %c0_173, %c0_174] : memref<4x9x196x128xf32, #tpu.memory_space<vmem>>, vector<1x1x196x128xf32>
      %251 = vector.shape_cast %250 : vector<1x1x196x128xf32> to vector<196x128xf32>
      %252 = arith.index_cast %arg7 : i32 to index
      %c8_175 = arith.constant 8 : index
      %253 = memref.load %arg1[%252, %c8_175] : memref<16x9xf32, #tpu.memory_space<smem>>
      %254 = vector.broadcast %253 : f32 to vector<196x128xf32>
      %255 = arith.mulf %251, %254 : vector<196x128xf32>
      %256 = arith.addf %249, %255 : vector<196x128xf32>
      %257 = arith.maximumf %194, %256 : vector<196x128xf32>
      %258 = arith.index_cast %arg7 : i32 to index
      %259 = memref.load %arg2[%258] : memref<16xf32, #tpu.memory_space<smem>>
      %260 = vector.broadcast %259 : f32 to vector<196x128xf32>
      %261 = arith.addf %257, %260 : vector<196x128xf32>
      %cst_176 = arith.constant 0.000000e+00 : f32
      %262 = vector.broadcast %cst_176 : f32 to vector<196x128xf32>
      %263 = arith.maximumf %261, %262 : vector<196x128xf32>
      %264 = arith.index_cast %arg7 : i32 to index
      %c0_177 = arith.constant 0 : index
      %c0_178 = arith.constant 0 : index
      %265 = vector.load %arg3[%264, %c0_177, %c0_178] : memref<16x10x196xbf16, #tpu.memory_space<vmem>>, vector<1x10x196xbf16>
      %266 = vector.shape_cast %265 : vector<1x10x196xbf16> to vector<10x196xbf16>
      %267 = arith.truncf %263 : vector<196x128xf32> to vector<196x128xbf16>
      %cst_179 = arith.constant dense<0.000000e+00> : vector<10x128xf32>
      %268 = tpu.matmul %266, %267, %cst_179 {dimension_numbers = #tpu.dot_dimension_numbers<[1], [0], [0], [1], [0, 0, 1, 1], [], []>} : vector<10x196xbf16>, vector<196x128xbf16>, vector<10x128xf32> -> vector<10x128xf32>
      %269 = arith.addf %arg8, %268 : vector<10x128xf32>
      scf.yield %269 : vector<10x128xf32>
    }
    %c16_i32_0 = arith.constant 16 : i32
    %c0 = arith.constant 0 : index
    %c0_1 = arith.constant 0 : index
    %3 = vector.load %arg4[%c0, %c0_1] : memref<10x1xf32, #tpu.memory_space<vmem>>, vector<10x1xf32>
    %4 = vector.broadcast %3 : vector<10x1xf32> to vector<10x128xf32>
    %5 = arith.addf %2, %4 : vector<10x128xf32>
    %c0_2 = arith.constant 0 : index
    %c0_3 = arith.constant 0 : index
    %6 = vector.load %arg6[%c0_2, %c0_3] : memref<10x128xf32, #tpu.memory_space<vmem>>, vector<10x128xf32>
    tpu.vector_store %arg6[%c0_2, %c0_3], %5 {strides = array<i32>} : memref<10x128xf32, #tpu.memory_space<vmem>>, vector<10x128xf32>,
    return
  }
  func.func @transform_0(%arg0: i32) -> (i32, i32) {
    %c0_i32 = arith.constant 0 : i32
    %c0_i32_0 = arith.constant 0 : i32
    %c0_i32_1 = arith.constant 0 : i32
    return %c0_i32, %c0_i32_0 : i32, i32
  }
  func.func @transform_1(%arg0: i32) -> i32 {
    %c0_i32 = arith.constant 0 : i32
    %c0_i32_0 = arith.constant 0 : i32
    return %c0_i32 : i32
  }
  func.func @transform_2(%arg0: i32) -> (i32, i32, i32) {
    %c0_i32 = arith.constant 0 : i32
    %c0_i32_0 = arith.constant 0 : i32
    %c0_i32_1 = arith.constant 0 : i32
    %c0_i32_2 = arith.constant 0 : i32
    return %c0_i32, %c0_i32_0, %c0_i32_1 : i32, i32, i32
  }
  func.func @transform_3(%arg0: i32) -> (i32, i32) {
    %c0_i32 = arith.constant 0 : i32
    %c0_i32_0 = arith.constant 0 : i32
    %c0_i32_1 = arith.constant 0 : i32
    return %c0_i32, %c0_i32_0 : i32, i32
  }
  func.func @transform_4(%arg0: i32) -> (i32, i32, i32, i32) {
    %c0_i32 = arith.constant 0 : i32
    %c0_i32_0 = arith.constant 0 : i32
    %c0_i32_1 = arith.constant 0 : i32
    %c0_i32_2 = arith.constant 0 : i32
    return %c0_i32, %c0_i32_0, %c0_i32_1, %arg0 : i32, i32, i32, i32
  }
  func.func @transform_5(%arg0: i32) -> (i32, i32) {
    %c0_i32 = arith.constant 0 : i32
    %c0_i32_0 = arith.constant 0 : i32
    return %c0_i32, %arg0 : i32, i32
  }
}

</mosaic_0001>

<bundles_post_ra>
// kernel: mnist_forward.1
= control target key start
LH: loop header
LB: loop body
LE: loop exit
PB: predicated region body
PF: predicated region fallthrough
CT: control target
= control target key end

     0   :  { %10 = vsyncpa [#allocation3], 0  ;;  %s10320_s0 = inlined_call_operand.vmem [shape: f32[16,9], index: 0, kind: input, shape index: {}]   ;;  %s10321_s1 = inlined_call_operand.vmem [shape: f32[16], index: 1, kind: input, shape index: {}]   ;;  %s10322_s2 = inlined_call_operand.vmem [shape: bf16[16,10,196], index: 2, kind: input, shape index: {}]   ;;  %s10323_s3 = inlined_call_operand.vmem [shape: f32[10,1], index: 3, kind: input, shape index: {}]   ;;  %s10324_s4 = inlined_call_operand.vmem [shape: f32[4,9,196,128], index: 4, kind: input, shape index: {}]   ;;  %s10325_s5 = inlined_call_operand.vmem [shape: f32[10,128], index: 5, kind: output, shape index: {}]  }
   0x1   :  { %s17_s20 = sshll.u32 %s10320_s0, 4  ;;  %s18_s20 = int_to_ptr.vmem [resolvable:$true] %s17_s20 }
   0x2   :  { %11 = vsyncpa [#allocation5], 0  ;;  %s30_s23 = sshll.u32 %s10321_s1, 4  ;;  %s3874_s24 = scalar_lea.vmem %s18_s20, 256  ;;  %s31_s23 = int_to_ptr.vmem [resolvable:$true] %s30_s23 }
   0x3   :  { %p3875_p0 = scmp.ne.s32.totalorder %s18_s20, %s3874_s24  ;;  %p3879_p1 = scmp.lt.s32.totalorder %s18_s20, %s18_s20 }
   0x4   :  { %p3880_p2 = scmp.lt.s32.totalorder %s3874_s24, %s3874_s24 }
   0x6   :  { %p3881_p3 = por %p3880_p2, %p3879_p1 }
   0x8   :  { %p3882_p4 = pnand %p3881_p3, %p3875_p0 }
   0xa   :  { %3885 = shalt.err (!%p3882_p4)
}
   0xb   :  { %s3926_s25 = smov [#allocation2]   ;;  %s3927_s26 = smov 128  }
   0xc   :  { %s3928_s27 = smov 8   ;;  %s3886_s28 = scalar_lea.vmem %s31_s23, 16 }
   0xd   :  { %23 = dma.vmem_to_smem %s18_s20, 256, %s3926_s25, [#allocation3], %s3927_s26, %s3927_s26, %s3928_s27  }
   0xe   :  { %p3887_p5 = scmp.ne.s32.totalorder %s31_s23, %s3886_s28  ;;  %p3891_p6 = scmp.lt.s32.totalorder %s31_s23, %s31_s23 }
   0xf   :  { %p3892_p7 = scmp.lt.s32.totalorder %s3886_s28, %s3886_s28 }
  0x11   :  { %p3893_p8 = por %p3892_p7, %p3891_p6 }
  0x13   :  { %p3894_p9 = pnand %p3893_p8, %p3887_p5 }
  0x15   :  { %3897 = shalt.err (!%p3894_p9)
}
  0x16   :  { %s3929_s0 = smov [#allocation4]  }
  0x17   :  { %33 = dma.vmem_to_smem %s31_s23, 16, %s3929_s0, [#allocation5]  }
  0x18   :  { %3910 = dma.done.wait [#allocation3], 256  }
  0x19   :  { %3911 = vsyncadd [#allocation3], 4294967040 }
  0x1a   :  { %3912 = dma.done.wait [#allocation5], 16  }
  0x1b   :  { %3913 = vsyncadd [#allocation5], 4294967280 }
  0x1c   :  { %46 = sfence }
  0x1d   :  { %v3968_v0 = vmov 0.0   ;;  %v3970_v1 = vmov 0.0   ;;  %s3972_s1 = smov 0  }
  0x1e LB: > { %10401 = vst [vmem:[#allocation8_spill] sm:$0xff] %v3916_v0  ;;  %10402 = vst [vmem:[#allocation9_spill] sm:$0xff] %v3920_v1  ;;  %s3984_s29 = sshll.u32 %s3924_s1, 7  ;;  %v56_v2 = vld [vmem:[%s10324_s4] sm:$0xff]  ;;  %v57_v3 = vld [vmem:[%s10324_s4 + $0x8] sm:$0xff]  ;;  %vm2872_vm0 = vcmask 556032   ;;  %s3924_s1 = sphi %s3972_s1, %s53_s1   ;;  %v3920_v1 = vphi %v3970_v1, %v10636_v1   ;;  %v3916_v0 = vphi %v3968_v0, %v10635_v0  }
  0x1f   : > { %s82_s30 = sld [smem:[#allocation2 + %s3984_s29]]  ;;  %s135_s6 = sadd.s32 1, %s3984_s29  ;;  %v58_v4 = vld [vmem:[%s10324_s4 + $0x10] sm:$0xff]  ;;  %v59_v5 = vld [vmem:[%s10324_s4 + $0x18] sm:$0xff]  ;;  %v60_v6 = vld [vmem:[%s10324_s4 + $0x20] sm:$0xff]  ;;  %vm2876_vm1 = vcmask 1041408  }
  0x20   : > { %s4000_s15 = sld [smem:[#allocation2 + %s135_s6]]  ;;  %v61_v7 = vld [vmem:[%s10324_s4 + $0x28] sm:$0xff]  ;;  %v62_v8 = vld [vmem:[%s10324_s4 + $0x30] sm:$0xff]  ;;  %v63_v9 = vld [vmem:[%s10324_s4 + $0x38] sm:$0xff]  ;;  %s214_s11 = sadd.s32 2, %s3984_s29 }
  0x21   : > { %v64_v10 = vld [vmem:[%s10324_s4 + $0x40] sm:$0xff]  ;;  %v65_v11 = vld [vmem:[%s10324_s4 + $0x48] sm:$0xff]  ;;  %v66_v12 = vld [vmem:[%s10324_s4 + $0x50] sm:$0xff]  ;;  %s4222_s0 = sld [smem:[#allocation2 + %s214_s11]]  ;;  %s293_s16 = sadd.s32 3, %s3984_s29 }
  0x22   : > { %v67_v13 = vld [vmem:[%s10324_s4 + $0x58] sm:$0xff]  ;;  %v68_v15 = vld [vmem:[%s10324_s4 + $0x60] sm:$0xff]  ;;  %v69_v16 = vld [vmem:[%s10324_s4 + $0x68] sm:$0xff]  ;;  %s4407_s9 = sld [smem:[#allocation2 + %s293_s16]]  ;;  %s372_s10 = sadd.s32 4, %s3984_s29 }
  0x23   : > { %v70_v17 = vld [vmem:[%s10324_s4 + $0x70] sm:$0xff]  ;;  %v71_v18 = vld [vmem:[%s10324_s4 + $0x78] sm:$0xff]  ;;  %v72_v19 = vld [vmem:[%s10324_s4 + $0x80] sm:$0xff]  ;;  %s4428_s16 = sld [smem:[#allocation2 + %s372_s10]]  ;;  %s451_s24 = sadd.s32 5, %s3984_s29 }
  0x24   : > { %v73_v20 = vld [vmem:[%s10324_s4 + $0x88] sm:$0xff]  ;;  %v74_v21 = vld [vmem:[%s10324_s4 + $0x90] sm:$0xff]  ;;  %v75_v22 = vld [vmem:[%s10324_s4 + $0x98] sm:$0xff]  ;;  %s609_s11 = sadd.s32 7, %s3984_s29  ;;  %s4779_s20 = sld [smem:[#allocation2 + %s451_s24]] }
  0x25   : > { %v4026_v14 = vstv %s82_s30  ;;  %v76_v23 = vld [vmem:[%s10324_s4 + $0xa0] sm:$0xff]  ;;  %v77_v24 = vld [vmem:[%s10324_s4 + $0xa8] sm:$0xff]  ;;  %v78_v25 = vld [vmem:[%s10324_s4 + $0xb0] sm:$0xff]  ;;  %s4791_s22 = sld [smem:[#allocation2 + %s609_s11]]  ;;  %s688_s6 = sadd.s32 8, %s3984_s29 }
  0x26   : > { %10403 = vst [vmem:[#allocation10_spill] sm:$0xff] %v4026_v14  ;;  %v4062_v26 = vmul.f32 %v4026_v14, %v56_v2  ;;  %v4065_v27 = vmul.f32 %v4026_v14, %v57_v3  ;;  %v4068_v28 = vmul.f32 %v4026_v14, %v58_v4  ;;  %v4071_v29 = vmul.f32 %v4026_v14, %v59_v5  ;;  %v79_v30 = vld [vmem:[%s10324_s4 + $0xb8] sm:$0xff]  ;;  %v80_v31 = vld [vmem:[%s10324_s4 + $0xc0] sm:$0xf]  ;;  %v2959_v36 = vld [vmem:[%s10324_s4 + $0xc8] sm:$0xff]  ;;  %s5316_s24 = sld [smem:[#allocation2 + %s688_s6]] }
  0x27   : > { %v4080_v32 = vmul.f32 %v4026_v14, %v60_v6  ;;  %v4083_v33 = vmul.f32 %v4026_v14, %v61_v7  ;;  %v4086_v34 = vmul.f32 %v4026_v14, %v62_v8  ;;  %v4089_v35 = vmul.f32 %v4026_v14, %v63_v9  ;;  %v2960_v41 = vld [vmem:[%s10324_s4 + $0xd0] sm:$0xff]  ;;  %v2961_v42 = vld [vmem:[%s10324_s4 + $0xd8] sm:$0xff]  ;;  %v2962_v43 = vld [vmem:[%s10324_s4 + $0xe0] sm:$0xff]  ;;  %s9990_s11 = sld [smem:[#allocation4 + %s3924_s1]] }
  0x28   : > { %v4095_v37 = vmul.f32 %v4026_v14, %v64_v10  ;;  %v4098_v38 = vmul.f32 %v4026_v14, %v65_v11  ;;  %v4101_v39 = vmul.f32 %v4026_v14, %v66_v12  ;;  %v4104_v40 = vmul.f32 %v4026_v14, %v67_v13  ;;  %v2963_v47 = vld [vmem:[%s10324_s4 + $0xe8] sm:$0xff]  ;;  %v2964_v48 = vld [vmem:[%s10324_s4 + $0xf0] sm:$0xff]  ;;  %v2965_v49 = vld [vmem:[%s10324_s4 + $0xf8] sm:$0xff] }
  0x29   : > { %v4116_v44 = vmul.f32 %v4026_v14, %v68_v15  ;;  %v4119_v45 = vmul.f32 %v4026_v14, %v69_v16  ;;  %v4122_v46 = vmul.f32 %v4026_v14, %v70_v17  ;;  %v4134_v50 = vstv %s4000_s15  ;;  %v2966_v55 = vld [vmem:[%s10324_s4 + $0x100] sm:$0xff]  ;;  %v2967_v56 = vld [vmem:[%s10324_s4 + $0x108] sm:$0xff]  ;;  %v2968_v57 = vld [vmem:[%s10324_s4 + $0x110] sm:$0xff] }
  0x2a   : > { %10404 = vst [vmem:[#allocation11_spill] sm:$0xff] %v4134_v50  ;;  %v4137_v51 = vmul.f32 %v4026_v14, %v71_v18  ;;  %v4140_v52 = vmul.f32 %v4026_v14, %v72_v19  ;;  %v4143_v53 = vmul.f32 %v4026_v14, %v73_v20  ;;  %v4146_v54 = vmul.f32 %v4026_v14, %v74_v21  ;;  %v2969_v62 = vld [vmem:[%s10324_s4 + $0x118] sm:$0xff]  ;;  %v2970_v63 = vld [vmem:[%s10324_s4 + $0x120] sm:$0xff]  ;;  %v2971_v2 = vld [vmem:[%s10324_s4 + $0x128] sm:$0xff] }
  0x2b   : > { %v4158_v58 = vmul.f32 %v4026_v14, %v75_v22  ;;  %v4161_v59 = vmul.f32 %v4026_v14, %v76_v23  ;;  %v4164_v60 = vmul.f32 %v4026_v14, %v77_v24  ;;  %v4167_v61 = vmul.f32 %v4026_v14, %v78_v25  ;;  %v2972_v5 = vld [vmem:[%s10324_s4 + $0x130] sm:$0xff]  ;;  %v2973_v6 = vld [vmem:[%s10324_s4 + $0x138] sm:$0xff]  ;;  %v2974_v7 = vld [vmem:[%s10324_s4 + $0x140] sm:$0xff] }
  0x2c   : > { %v4180_v3 = vmul.f32 %v4026_v14, %v79_v30  ;;  %v4183_v4 = vmul.f32 %v4026_v14, %v80_v31  ;;  %v138_v8 = vmul.f32 %v2959_v36, %v4134_v50  ;;  %v139_v9 = vmul.f32 %v2960_v41, %v4134_v50  ;;  %v2975_v10 = vld [vmem:[%s10324_s4 + $0x148] sm:$0xff]  ;;  %v2976_v11 = vld [vmem:[%s10324_s4 + $0x150] sm:$0xff]  ;;  %v2977_v12 = vld [vmem:[%s10324_s4 + $0x158] sm:$0xff] }
  0x2d   : > { %v140_v13 = vmul.f32 %v2961_v42, %v4134_v50  ;;  %v141_v15 = vmul.f32 %v2962_v43, %v4134_v50  ;;  %v142_v16 = vmul.f32 %v2963_v47, %v4134_v50  ;;  %v143_v17 = vmul.f32 %v2964_v48, %v4134_v50  ;;  %v2978_v18 = vld [vmem:[%s10324_s4 + $0x160] sm:$0xff]  ;;  %v2979_v19 = vld [vmem:[%s10324_s4 + $0x168] sm:$0xff]  ;;  %v2980_v20 = vld [vmem:[%s10324_s4 + $0x170] sm:$0xff] }
  0x2e   : > { %v144_v21 = vmul.f32 %v2965_v49, %v4134_v50  ;;  %v145_v22 = vmul.f32 %v2966_v55, %v4134_v50  ;;  %v146_v23 = vmul.f32 %v2967_v56, %v4134_v50  ;;  %v147_v24 = vmul.f32 %v2968_v57, %v4134_v50  ;;  %v2981_v25 = vld [vmem:[%s10324_s4 + $0x178] sm:$0xff]  ;;  %v2982_v30 = vld [vmem:[%s10324_s4 + $0x180] sm:$0xff]  ;;  %v2983_v31 = vld [vmem:[%s10324_s4 + $0x188] sm:$0xf] }
  0x2f   : > { %v148_v36 = vmul.f32 %v2969_v62, %v4134_v50  ;;  %v149_v41 = vmul.f32 %v2970_v63, %v4134_v50  ;;  %v150_v42 = vmul.f32 %v2971_v2, %v4134_v50  ;;  %v151_v43 = vmul.f32 %v2972_v5, %v4134_v50 }
  0x30   : > { %v152_v47 = vmul.f32 %v2973_v6, %v4134_v50  ;;  %v153_v48 = vmul.f32 %v2974_v7, %v4134_v50  ;;  %v154_v49 = vmul.f32 %v2975_v10, %v4134_v50  ;;  %v155_v55 = vmul.f32 %v2976_v11, %v4134_v50 }
  0x31   : > { %v156_v56 = vmul.f32 %v2977_v12, %v4134_v50  ;;  %v157_v57 = vmul.f32 %v2978_v18, %v4134_v50  ;;  %v158_v62 = vmul.f32 %v2979_v19, %v4134_v50  ;;  %v159_v63 = vmul.f32 %v2980_v20, %v4134_v50 }
  0x32   : > { %v160_v2 = vmul.f32 %v2981_v25, %v4134_v50  ;;  %v161_v5 = vmul.f32 %v2982_v30, %v4134_v50  ;;  %v162_v6 = vmul.f32 %v2983_v31, %v4134_v50  ;;  %v4249_v7 = vadd.f32 %v138_v8, %v4062_v26  ;;  %v2987_v8 = vld [vmem:[%s10324_s4 + $0x1a8] sm:$0xff]  ;;  %v2996_v25 = vld [vmem:[%s10324_s4 + $0x1f0] sm:$0xff] }
  0x33   : > { %v4252_v10 = vadd.f32 %v139_v9, %v4065_v27  ;;  %v4255_v11 = vadd.f32 %v140_v13, %v4068_v28  ;;  %v4258_v12 = vadd.f32 %v141_v15, %v4071_v29  ;;  %v4261_v18 = vadd.f32 %v142_v16, %v4080_v32  ;;  %v2984_v28 = vld [vmem:[%s10324_s4 + $0x190] sm:$0xff]  ;;  %v2985_v29 = vld [vmem:[%s10324_s4 + $0x198] sm:$0xff]  ;;  %v2990_v13 = vld [vmem:[%s10324_s4 + $0x1c0] sm:$0xff] }
  0x34   : > { %v4264_v19 = vadd.f32 %v143_v17, %v4083_v33  ;;  %v4267_v20 = vadd.f32 %v144_v21, %v4086_v34  ;;  %v4270_v26 = vadd.f32 %v145_v22, %v4089_v35  ;;  %v4273_v27 = vadd.f32 %v146_v23, %v4095_v37  ;;  %v2986_v37 = vld [vmem:[%s10324_s4 + $0x1a0] sm:$0xff]  ;;  %v2989_v9 = vld [vmem:[%s10324_s4 + $0x1b8] sm:$0xff]  ;;  %v2991_v15 = vld [vmem:[%s10324_s4 + $0x1c8] sm:$0xff] }
  0x35   : > { %v4282_v32 = vadd.f32 %v147_v24, %v4098_v38  ;;  %v4285_v33 = vadd.f32 %v148_v36, %v4101_v39  ;;  %v4288_v34 = vadd.f32 %v149_v41, %v4104_v40  ;;  %v4291_v35 = vadd.f32 %v150_v42, %v4116_v44  ;;  %v2988_v38 = vld [vmem:[%s10324_s4 + $0x1b0] sm:$0xff]  ;;  %v2993_v22 = vld [vmem:[%s10324_s4 + $0x1d8] sm:$0xff]  ;;  %v2995_v24 = vld [vmem:[%s10324_s4 + $0x1e8] sm:$0xff] }
  0x36   : > { %v4303_v39 = vadd.f32 %v151_v43, %v4119_v45  ;;  %v4306_v40 = vadd.f32 %v152_v47, %v4122_v46  ;;  %v4309_v44 = vadd.f32 %v153_v48, %v4137_v51  ;;  %v4321_v45 = vstv %s4222_s0  ;;  %v2992_v21 = vld [vmem:[%s10324_s4 + $0x1d0] sm:$0xff]  ;;  %v3002_v42 = vld [vmem:[%s10324_s4 + $0x220] sm:$0xff]  ;;  %v3003_v43 = vld [vmem:[%s10324_s4 + $0x228] sm:$0xff] }
  0x37   : > { %10405 = vst [vmem:[#allocation12_spill] sm:$0xff] %v4321_v45  ;;  %v4324_v46 = vadd.f32 %v154_v49, %v4140_v52  ;;  %v4327_v51 = vadd.f32 %v155_v55, %v4143_v53  ;;  %v4330_v16 = vadd.f32 %v156_v56, %v4146_v54  ;;  %v4333_v17 = vadd.f32 %v157_v57, %v4158_v58  ;;  %v2994_v52 = vld [vmem:[%s10324_s4 + $0x1e0] sm:$0xff]  ;;  %v3000_v30 = vld [vmem:[%s10324_s4 + $0x210] sm:$0xff]  ;;  %v3005_v57 = vld [vmem:[%s10324_s4 + $0x238] sm:$0xff] }
  0x38   : > { %v4345_v53 = vadd.f32 %v158_v62, %v4161_v59  ;;  %v4348_v54 = vadd.f32 %v159_v63, %v4164_v60  ;;  %v4351_v58 = vadd.f32 %v160_v2, %v4167_v61  ;;  %v4354_v23 = vadd.f32 %v161_v5, %v4180_v3  ;;  %v2997_v59 = vld [vmem:[%s10324_s4 + $0x1f8] sm:$0xff]  ;;  %v2998_v61 = vld [vmem:[%s10324_s4 + $0x200] sm:$0xff]  ;;  %v2999_v3 = vld [vmem:[%s10324_s4 + $0x208] sm:$0xff] }
  0x39   : > { %v4367_v60 = vadd.f32 %v162_v6, %v4183_v4  ;;  %v217_v31 = vmul.f32 %v2984_v28, %v4321_v45  ;;  %v218_v36 = vmul.f32 %v2985_v29, %v4321_v45  ;;  %v219_v41 = vmul.f32 %v2986_v37, %v4321_v45  ;;  %v3001_v4 = vld [vmem:[%s10324_s4 + $0x218] sm:$0xff]  ;;  %v3004_v56 = vld [vmem:[%s10324_s4 + $0x230] sm:$0xff]  ;;  %v3006_v62 = vld [vmem:[%s10324_s4 + $0x240] sm:$0xff] }
  0x3a   : > { %v220_v47 = vmul.f32 %v2987_v8, %v4321_v45  ;;  %v221_v48 = vmul.f32 %v2988_v38, %v4321_v45  ;;  %v222_v49 = vmul.f32 %v2989_v9, %v4321_v45  ;;  %v223_v55 = vmul.f32 %v2990_v13, %v4321_v45  ;;  %v3007_v28 = vld [vmem:[%s10324_s4 + $0x248] sm:$0xff]  ;;  %v3008_v29 = vld [vmem:[%s10324_s4 + $0x250] sm:$0xf] }
  0x3b   : > { %v224_v63 = vmul.f32 %v2991_v15, %v4321_v45  ;;  %v225_v2 = vmul.f32 %v2992_v21, %v4321_v45  ;;  %v226_v5 = vmul.f32 %v2993_v22, %v4321_v45  ;;  %v227_v6 = vmul.f32 %v2994_v52, %v4321_v45 }
  0x3c   : > { %v228_v37 = vmul.f32 %v2995_v24, %v4321_v45  ;;  %v229_v8 = vmul.f32 %v2996_v25, %v4321_v45  ;;  %v230_v38 = vmul.f32 %v2997_v59, %v4321_v45  ;;  %v231_v9 = vmul.f32 %v2998_v61, %v4321_v45 }
  0x3d   : > { %v232_v13 = vmul.f32 %v2999_v3, %v4321_v45  ;;  %v233_v15 = vmul.f32 %v3000_v30, %v4321_v45  ;;  %v234_v21 = vmul.f32 %v3001_v4, %v4321_v45  ;;  %v235_v22 = vmul.f32 %v3002_v42, %v4321_v45 }
  0x3e   : > { %v236_v52 = vmul.f32 %v3003_v43, %v4321_v45  ;;  %v237_v0 = vmul.f32 %v3004_v56, %v4321_v45  ;;  %v238_v24 = vmul.f32 %v3005_v57, %v4321_v45  ;;  %v239_v25 = vmul.f32 %v3006_v62, %v4321_v45  ;;  %v3018_v62 = vld [vmem:[%s10324_s4 + $0x2a0] sm:$0xff] }
  0x3f   : > { %v240_v59 = vmul.f32 %v3007_v28, %v4321_v45  ;;  %v241_v61 = vmul.f32 %v3008_v29, %v4321_v45  ;;  %v4433_v3 = vadd.f32 %v217_v31, %v4249_v7  ;;  %v4436_v30 = vadd.f32 %v218_v36, %v4252_v10  ;;  %v3012_v31 = vld [vmem:[%s10324_s4 + $0x270] sm:$0xff]  ;;  %v3014_v36 = vld [vmem:[%s10324_s4 + $0x280] sm:$0xff] }
  0x40   : > { %v4439_v4 = vadd.f32 %v219_v41, %v4255_v11  ;;  %v4442_v42 = vadd.f32 %v220_v47, %v4258_v12  ;;  %v4445_v43 = vadd.f32 %v221_v48, %v4261_v18  ;;  %v4448_v56 = vadd.f32 %v222_v49, %v4264_v19  ;;  %v3009_v12 = vld [vmem:[%s10324_s4 + $0x258] sm:$0xff]  ;;  %v3010_v18 = vld [vmem:[%s10324_s4 + $0x260] sm:$0xff]  ;;  %v3015_v41 = vld [vmem:[%s10324_s4 + $0x288] sm:$0xff] }
  0x41   : > { %v4451_v57 = vadd.f32 %v223_v55, %v4267_v20  ;;  %v4454_v7 = vadd.f32 %v224_v63, %v4270_v26  ;;  %v4457_v10 = vadd.f32 %v225_v2, %v4273_v27  ;;  %v4460_v11 = vadd.f32 %v226_v5, %v4282_v32  ;;  %v3011_v32 = vld [vmem:[%s10324_s4 + $0x268] sm:$0xff]  ;;  %v3016_v47 = vld [vmem:[%s10324_s4 + $0x290] sm:$0xff]  ;;  %v3017_v55 = vld [vmem:[%s10324_s4 + $0x298] sm:$0xff] }
  0x42   : > { %v4469_v19 = vadd.f32 %v227_v6, %v4285_v33  ;;  %v4472_v20 = vadd.f32 %v228_v37, %v4288_v34  ;;  %v4475_v26 = vadd.f32 %v229_v8, %v4291_v35  ;;  %v4478_v27 = vadd.f32 %v230_v38, %v4303_v39  ;;  %v3013_v33 = vld [vmem:[%s10324_s4 + $0x278] sm:$0xff]  ;;  %v3020_v63 = vld [vmem:[%s10324_s4 + $0x2b0] sm:$0xff]  ;;  %v3026_v37 = vld [vmem:[%s10324_s4 + $0x2e0] sm:$0xff] }
  0x43   : > { %v4490_v34 = vadd.f32 %v231_v9, %v4306_v40  ;;  %v4493_v35 = vadd.f32 %v232_v13, %v4309_v44  ;;  %v4496_v39 = vadd.f32 %v233_v15, %v4324_v46  ;;  %v4508_v40 = vstv %s4407_s9  ;;  %v3021_v2 = vld [vmem:[%s10324_s4 + $0x2b8] sm:$0xff]  ;;  %v3027_v8 = vld [vmem:[%s10324_s4 + $0x2e8] sm:$0xff]  ;;  %v3028_v38 = vld [vmem:[%s10324_s4 + $0x2f0] sm:$0xff]  ;;  %s530_s9 = sadd.s32 6, %s3984_s29 }
  0x44   : > { %10406 = vst [vmem:[#allocation13_spill] sm:$0xff] %v4508_v40  ;;  %v4511_v44 = vadd.f32 %v234_v21, %v4327_v51  ;;  %v4514_v46 = vadd.f32 %v235_v22, %v4330_v16  ;;  %v4517_v48 = vadd.f32 %v236_v52, %v4333_v17  ;;  %v4520_v49 = vadd.f32 %v237_v0, %v4345_v53  ;;  %v3019_v51 = vld [vmem:[%s10324_s4 + $0x2a8] sm:$0xff]  ;;  %v3029_v22 = vld [vmem:[%s10324_s4 + $0x2f8] sm:$0xff]  ;;  %v3030_v52 = vld [vmem:[%s10324_s4 + $0x300] sm:$0xff]  ;;  %s4789_s21 = sld [smem:[#allocation2 + %s530_s9]] }
  0x45   : > { %v4532_v16 = vadd.f32 %v238_v24, %v4348_v54  ;;  %v4535_v17 = vadd.f32 %v239_v25, %v4351_v58  ;;  %v4538_v0 = vadd.f32 %v240_v59, %v4354_v23  ;;  %v4541_v53 = vadd.f32 %v241_v61, %v4367_v60  ;;  %v3022_v54 = vld [vmem:[%s10324_s4 + $0x2c0] sm:$0xff]  ;;  %v3023_v58 = vld [vmem:[%s10324_s4 + $0x2c8] sm:$0xff]  ;;  %v3024_v23 = vld [vmem:[%s10324_s4 + $0x2d0] sm:$0xff] }
  0x46   : > { %v3025_v60 = vld [vmem:[%s10324_s4 + $0x2d8] sm:$0xff]  ;;  %v296_v5 = vmul.f32 %v3009_v12, %v4508_v40  ;;  %v297_v6 = vmul.f32 %v3010_v18, %v4508_v40  ;;  %v298_v28 = vmul.f32 %v3011_v32, %v4508_v40  ;;  %v4565_v29 = vstv %s4428_s16  ;;  %v3031_v24 = vld [vmem:[%s10324_s4 + $0x308] sm:$0xff]  ;;  %v3032_v18 = vld [vmem:[%s10324_s4 + $0x310] sm:$0xff] }
  0x47   : > { %10407 = vst [vmem:[#allocation14_spill] sm:$0xff] %v4565_v29  ;;  %v299_v9 = vmul.f32 %v3012_v31, %v4508_v40  ;;  %v300_v13 = vmul.f32 %v3013_v33, %v4508_v40  ;;  %v301_v15 = vmul.f32 %v3014_v36, %v4508_v40  ;;  %v302_v21 = vmul.f32 %v3015_v41, %v4508_v40  ;;  %v3033_v32 = vld [vmem:[%s10324_s4 + $0x318] sm:$0xf] }
  0x48   : > { %v303_v25 = vmul.f32 %v3016_v47, %v4508_v40  ;;  %v304_v59 = vmul.f32 %v3017_v55, %v4508_v40  ;;  %v305_v61 = vmul.f32 %v3018_v62, %v4508_v40  ;;  %v306_v12 = vmul.f32 %v3019_v51, %v4508_v40 }
  0x49   : > { %v307_v31 = vmul.f32 %v3020_v63, %v4508_v40  ;;  %v308_v33 = vmul.f32 %v3021_v2, %v4508_v40  ;;  %v309_v36 = vmul.f32 %v3022_v54, %v4508_v40  ;;  %v310_v41 = vmul.f32 %v3023_v58, %v4508_v40 }
  0x4a   : > { %v311_v47 = vmul.f32 %v3024_v23, %v4508_v40  ;;  %v312_v55 = vmul.f32 %v3025_v60, %v4508_v40  ;;  %v313_v62 = vmul.f32 %v3026_v37, %v4508_v40  ;;  %v314_v51 = vmul.f32 %v3027_v8, %v4508_v40 }
  0x4b   : > { %v315_v1 = vmul.f32 %v3028_v38, %v4508_v40  ;;  %v316_v45 = vmul.f32 %v3029_v22, %v4508_v40  ;;  %v317_v63 = vmul.f32 %v3030_v52, %v4508_v40  ;;  %v318_v2 = vmul.f32 %v3031_v24, %v4508_v40  ;;  %v3044_v24 = vld [vmem:[%s10324_s4 + $0x370] sm:$0xff] }
  0x4c   : > { %v319_v54 = vmul.f32 %v3032_v18, %v4508_v40  ;;  %v320_v58 = vmul.f32 %v3033_v32, %v4508_v40  ;;  %v4614_v23 = vadd.f32 %v296_v5, %v4433_v3  ;;  %v4617_v60 = vadd.f32 %v297_v6, %v4436_v30  ;;  %v3034_v3 = vld [vmem:[%s10324_s4 + $0x320] sm:$0xff] }
  0x4d   : > { %v4620_v37 = vadd.f32 %v298_v28, %v4439_v4  ;;  %v4623_v8 = vadd.f32 %v299_v9, %v4442_v42  ;;  %v4626_v38 = vadd.f32 %v300_v13, %v4445_v43  ;;  %v4629_v22 = vadd.f32 %v301_v15, %v4448_v56  ;;  %v3035_v43 = vld [vmem:[%s10324_s4 + $0x328] sm:$0xff]  ;;  %v3036_v56 = vld [vmem:[%s10324_s4 + $0x330] sm:$0xff]  ;;  %v3038_v28 = vld [vmem:[%s10324_s4 + $0x340] sm:$0xff] }
  0x4e   : > { %v4635_v5 = vadd.f32 %v302_v21, %v4451_v57  ;;  %v4638_v30 = vadd.f32 %v303_v25, %v4454_v7  ;;  %v4641_v4 = vadd.f32 %v304_v59, %v4457_v10  ;;  %v4644_v42 = vadd.f32 %v305_v61, %v4460_v11  ;;  %v3037_v57 = vld [vmem:[%s10324_s4 + $0x338] sm:$0xff]  ;;  %v3039_v9 = vld [vmem:[%s10324_s4 + $0x348] sm:$0xff]  ;;  %v3042_v21 = vld [vmem:[%s10324_s4 + $0x360] sm:$0xff] }
  0x4f   : > { %v4656_v7 = vadd.f32 %v306_v12, %v4469_v19  ;;  %v4659_v10 = vadd.f32 %v307_v31, %v4472_v20  ;;  %v4662_v11 = vadd.f32 %v308_v33, %v4475_v26  ;;  %v4665_v6 = vadd.f32 %v309_v36, %v4478_v27  ;;  %v3040_v19 = vld [vmem:[%s10324_s4 + $0x350] sm:$0xff]  ;;  %v3041_v15 = vld [vmem:[%s10324_s4 + $0x358] sm:$0xff]  ;;  %v3054_v36 = vld [vmem:[%s10324_s4 + $0x3c0] sm:$0xff] }
  0x50   : > { %v4677_v20 = vadd.f32 %v310_v41, %v4490_v34  ;;  %v4680_v26 = vadd.f32 %v311_v47, %v4493_v35  ;;  %v4683_v27 = vadd.f32 %v312_v55, %v4496_v39  ;;  %v4686_v13 = vadd.f32 %v313_v62, %v4511_v44  ;;  %v3043_v34 = vld [vmem:[%s10324_s4 + $0x368] sm:$0xff]  ;;  %v3045_v25 = vld [vmem:[%s10324_s4 + $0x378] sm:$0xff]  ;;  %v3052_v61 = vld [vmem:[%s10324_s4 + $0x3b0] sm:$0xff] }
  0x51   : > { %v4698_v35 = vadd.f32 %v314_v51, %v4514_v46  ;;  %v4701_v39 = vadd.f32 %v315_v1, %v4517_v48  ;;  %v4704_v44 = vadd.f32 %v316_v45, %v4520_v49  ;;  %v4707_v52 = vadd.f32 %v317_v63, %v4532_v16  ;;  %v3046_v46 = vld [vmem:[%s10324_s4 + $0x380] sm:$0xff]  ;;  %v3047_v49 = vld [vmem:[%s10324_s4 + $0x388] sm:$0xff]  ;;  %v3048_v16 = vld [vmem:[%s10324_s4 + $0x390] sm:$0xff] }
  0x52   : > { %v4719_v1 = vadd.f32 %v318_v2, %v4535_v17  ;;  %v4722_v45 = vadd.f32 %v319_v54, %v4538_v0  ;;  %v4725_v48 = vadd.f32 %v320_v58, %v4541_v53  ;;  %v3049_v59 = vld [vmem:[%s10324_s4 + $0x398] sm:$0xff]  ;;  %v375_v17 = vmul.f32 %v3034_v3, %v4565_v29  ;;  %v3050_v0 = vld [vmem:[%s10324_s4 + $0x3a0] sm:$0xff]  ;;  %v3051_v53 = vld [vmem:[%s10324_s4 + $0x3a8] sm:$0xff] }
  0x53   : > { %v376_v12 = vmul.f32 %v3035_v43, %v4565_v29  ;;  %v377_v18 = vmul.f32 %v3036_v56, %v4565_v29  ;;  %v378_v32 = vmul.f32 %v3037_v57, %v4565_v29  ;;  %v379_v31 = vmul.f32 %v3038_v28, %v4565_v29  ;;  %v3053_v33 = vld [vmem:[%s10324_s4 + $0x3b8] sm:$0xff]  ;;  %v3055_v41 = vld [vmem:[%s10324_s4 + $0x3c8] sm:$0xff]  ;;  %v3056_v63 = vld [vmem:[%s10324_s4 + $0x3d0] sm:$0xff] }
  0x54   : > { %v380_v47 = vmul.f32 %v3039_v9, %v4565_v29  ;;  %v381_v55 = vmul.f32 %v3040_v19, %v4565_v29  ;;  %v382_v62 = vmul.f32 %v3041_v15, %v4565_v29  ;;  %v383_v51 = vmul.f32 %v3042_v21, %v4565_v29  ;;  %v3057_v2 = vld [vmem:[%s10324_s4 + $0x3d8] sm:$0xff]  ;;  %v3058_v54 = vld [vmem:[%s10324_s4 + $0x3e0] sm:$0xf] }
  0x55   : > { %v384_v58 = vmul.f32 %v3043_v34, %v4565_v29  ;;  %v385_v3 = vmul.f32 %v3044_v24, %v4565_v29  ;;  %v386_v43 = vmul.f32 %v3045_v25, %v4565_v29  ;;  %v387_v56 = vmul.f32 %v3046_v46, %v4565_v29 }
  0x56   : > { %v388_v57 = vmul.f32 %v3047_v49, %v4565_v29  ;;  %v389_v28 = vmul.f32 %v3048_v16, %v4565_v29  ;;  %v390_v9 = vmul.f32 %v3049_v59, %v4565_v29  ;;  %v391_v19 = vmul.f32 %v3050_v0, %v4565_v29 }
  0x57   : > { %v392_v15 = vmul.f32 %v3051_v53, %v4565_v29  ;;  %v393_v21 = vmul.f32 %v3052_v61, %v4565_v29  ;;  %v394_v34 = vmul.f32 %v3053_v33, %v4565_v29  ;;  %v395_v24 = vmul.f32 %v3054_v36, %v4565_v29 }
  0x58   : > { %v396_v25 = vmul.f32 %v3055_v41, %v4565_v29  ;;  %v397_v46 = vmul.f32 %v3056_v63, %v4565_v29  ;;  %v398_v49 = vmul.f32 %v3057_v2, %v4565_v29  ;;  %v399_v16 = vmul.f32 %v3058_v54, %v4565_v29  ;;  %v3070_v63 = vld [vmem:[%s10324_s4 + $0x440] sm:$0xff]  ;;  %v3073_v2 = vld [vmem:[%s10324_s4 + $0x458] sm:$0xff] }
  0x59   : > { %v4798_v59 = vadd.f32 %v375_v17, %v4614_v23  ;;  %v4801_v0 = vadd.f32 %v376_v12, %v4617_v60  ;;  %v4804_v53 = vadd.f32 %v377_v18, %v4620_v37  ;;  %v4807_v61 = vadd.f32 %v378_v32, %v4623_v8  ;;  %v3063_v12 = vld [vmem:[%s10324_s4 + $0x408] sm:$0xff]  ;;  %v3064_v18 = vld [vmem:[%s10324_s4 + $0x410] sm:$0xff]  ;;  %v3066_v32 = vld [vmem:[%s10324_s4 + $0x420] sm:$0xff] }
  0x5a   : > { %v4810_v33 = vadd.f32 %v379_v31, %v4626_v38  ;;  %v4813_v36 = vadd.f32 %v380_v47, %v4629_v22  ;;  %v4816_v41 = vadd.f32 %v381_v55, %v4635_v5  ;;  %v4819_v23 = vadd.f32 %v382_v62, %v4638_v30  ;;  %v3059_v22 = vld [vmem:[%s10324_s4 + $0x3e8] sm:$0xff]  ;;  %v3060_v5 = vld [vmem:[%s10324_s4 + $0x3f0] sm:$0xff]  ;;  %v3061_v30 = vld [vmem:[%s10324_s4 + $0x3f8] sm:$0xff] }
  0x5b   : > { %v4822_v60 = vadd.f32 %v383_v51, %v4641_v4  ;;  %v4825_v37 = vadd.f32 %v384_v58, %v4644_v42  ;;  %v4828_v8 = vadd.f32 %v385_v3, %v4656_v7  ;;  %v4831_v38 = vadd.f32 %v386_v43, %v4659_v10  ;;  %v3062_v4 = vld [vmem:[%s10324_s4 + $0x400] sm:$0xff]  ;;  %v3067_v31 = vld [vmem:[%s10324_s4 + $0x428] sm:$0xff]  ;;  %v3069_v51 = vld [vmem:[%s10324_s4 + $0x438] sm:$0xff] }
  0x5c   : > { %v4846_v42 = vadd.f32 %v387_v56, %v4662_v11  ;;  %v4849_v7 = vadd.f32 %v388_v57, %v4665_v6  ;;  %v4852_v10 = vadd.f32 %v389_v28, %v4677_v20  ;;  %v4855_v17 = vadd.f32 %v390_v9, %v4680_v26  ;;  %v3065_v11 = vld [vmem:[%s10324_s4 + $0x418] sm:$0xff]  ;;  %v3076_v3 = vld [vmem:[%s10324_s4 + $0x470] sm:$0xff] }
  0x5d   : > { %v4867_v6 = vadd.f32 %v391_v19, %v4683_v27  ;;  %v4870_v20 = vadd.f32 %v392_v15, %v4686_v13  ;;  %v4873_v26 = vadd.f32 %v393_v21, %v4698_v35  ;;  %v3068_v27 = vld [vmem:[%s10324_s4 + $0x430] sm:$0xff]  ;;  %v4885_v47 = vstv %s4779_s20  ;;  %v3077_v9 = vld [vmem:[%s10324_s4 + $0x478] sm:$0xff]  ;;  %v3078_v19 = vld [vmem:[%s10324_s4 + $0x480] sm:$0xff] }
  0x5e   : > { %10408 = vst [vmem:[#allocation15_spill] sm:$0xff] %v4885_v47  ;;  %v4888_v13 = vadd.f32 %v394_v34, %v4701_v39  ;;  %v4891_v35 = vadd.f32 %v395_v24, %v4704_v44  ;;  %v4894_v55 = vadd.f32 %v396_v25, %v4707_v52  ;;  %v4897_v62 = vadd.f32 %v397_v46, %v4719_v1  ;;  %v3071_v39 = vld [vmem:[%s10324_s4 + $0x448] sm:$0xff]  ;;  %v3072_v1 = vld [vmem:[%s10324_s4 + $0x450] sm:$0xff] }
  0x5f   : > { %v4909_v44 = vadd.f32 %v398_v49, %v4722_v45  ;;  %v4912_v52 = vadd.f32 %v399_v16, %v4725_v48  ;;  %v4921_v54 = vstv %s4789_s21  ;;  %v4924_v58 = vstv %s4791_s22  ;;  %v3074_v45 = vld [vmem:[%s10324_s4 + $0x460] sm:$0xff]  ;;  %v3075_v48 = vld [vmem:[%s10324_s4 + $0x468] sm:$0xff]  ;;  %s3839_s21 = sshll.u32 %s3924_s1, 4  ;;  %s53_s1 = sadd.s32 1, %s3924_s1  }
  0x60   : > { %10409 = vst [vmem:[#allocation16_spill] sm:$0xff] %v4921_v54  ;;  %10410 = vst [vmem:[#allocation17_spill] sm:$0xff] %v4924_v58  ;;  %v454_v43 = vmul.f32 %v3059_v22, %v4885_v47  ;;  %v455_v56 = vmul.f32 %v3060_v5, %v4885_v47  ;;  %v456_v57 = vmul.f32 %v3061_v30, %v4885_v47  ;;  %v3079_v15 = vld [vmem:[%s10324_s4 + $0x488] sm:$0xff]  ;;  %v3080_v46 = vld [vmem:[%s10324_s4 + $0x490] sm:$0xff]  ;;  %s8404_s18 = scalar_lea.vmem %s10322_s2, %s3839_s21  ;;  %p50_p10 = scmp.ge.s32.totalorder %s53_s1, 16  }
  0x61   : > { %v457_v28 = vmul.f32 %v3062_v4, %v4885_v47  ;;  %v458_v21 = vmul.f32 %v3063_v12, %v4885_v47  ;;  %v459_v34 = vmul.f32 %v3064_v18, %v4885_v47  ;;  %v460_v24 = vmul.f32 %v3065_v11, %v4885_v47  ;;  %v3081_v49 = vld [vmem:[%s10324_s4 + $0x498] sm:$0xff]  ;;  %v3082_v16 = vld [vmem:[%s10324_s4 + $0x4a0] sm:$0xff]  ;;  %v3083_v12 = vld [vmem:[%s10324_s4 + $0x4a8] sm:$0xf] }
  0x62   : > { %v461_v25 = vmul.f32 %v3066_v32, %v4885_v47  ;;  %v462_v22 = vmul.f32 %v3067_v31, %v4885_v47  ;;  %v463_v5 = vmul.f32 %v3068_v27, %v4885_v47  ;;  %v464_v30 = vmul.f32 %v3069_v51, %v4885_v47 }
  0x63   : > { %v465_v4 = vmul.f32 %v3070_v63, %v4885_v47  ;;  %v466_v18 = vmul.f32 %v3071_v39, %v4885_v47  ;;  %v467_v11 = vmul.f32 %v3072_v1, %v4885_v47  ;;  %v468_v32 = vmul.f32 %v3073_v2, %v4885_v47 }
  0x64   : > { %v469_v29 = vmul.f32 %v3074_v45, %v4885_v47  ;;  %v470_v31 = vmul.f32 %v3075_v48, %v4885_v47  ;;  %v471_v27 = vmul.f32 %v3076_v3, %v4885_v47  ;;  %v472_v51 = vmul.f32 %v3077_v9, %v4885_v47 }
  0x65   : > { %v473_v63 = vmul.f32 %v3078_v19, %v4885_v47  ;;  %v474_v40 = vmul.f32 %v3079_v15, %v4885_v47  ;;  %v475_v50 = vmul.f32 %v3080_v46, %v4885_v47  ;;  %v476_v39 = vmul.f32 %v3081_v49, %v4885_v47 }
  0x66   : > { %v477_v1 = vmul.f32 %v3082_v16, %v4885_v47  ;;  %v478_v2 = vmul.f32 %v3083_v12, %v4885_v47  ;;  %v4982_v45 = vadd.f32 %v454_v43, %v4798_v59  ;;  %v4985_v48 = vadd.f32 %v455_v56, %v4801_v0  ;;  %v3084_v59 = vld [vmem:[%s10324_s4 + $0x4b0] sm:$0xff]  ;;  %v3101_v16 = vld [vmem:[%s10324_s4 + $0x538] sm:$0xff] }
  0x67   : > { %v4988_v3 = vadd.f32 %v456_v57, %v4804_v53  ;;  %v4991_v9 = vadd.f32 %v457_v28, %v4807_v61  ;;  %v4994_v19 = vadd.f32 %v458_v21, %v4810_v33  ;;  %v4997_v15 = vadd.f32 %v459_v34, %v4813_v36  ;;  %v3085_v36 = vld [vmem:[%s10324_s4 + $0x4b8] sm:$0xff]  ;;  %v3088_v56 = vld [vmem:[%s10324_s4 + $0x4d0] sm:$0xff]  ;;  %v3091_v21 = vld [vmem:[%s10324_s4 + $0x4e8] sm:$0xff] }
  0x68   : > { %v5000_v46 = vadd.f32 %v460_v24, %v4816_v41  ;;  %v5006_v0 = vadd.f32 %v461_v25, %v4819_v23  ;;  %v5009_v53 = vadd.f32 %v462_v22, %v4822_v60  ;;  %v5012_v61 = vadd.f32 %v463_v5, %v4825_v37  ;;  %v3086_v41 = vld [vmem:[%s10324_s4 + $0x4c0] sm:$0xff]  ;;  %v3087_v23 = vld [vmem:[%s10324_s4 + $0x4c8] sm:$0xff]  ;;  %v3089_v57 = vld [vmem:[%s10324_s4 + $0x4d8] sm:$0xff] }
  0x69   : > { %v5015_v33 = vadd.f32 %v464_v30, %v4828_v8  ;;  %v5027_v60 = vadd.f32 %v465_v4, %v4831_v38  ;;  %v5030_v37 = vadd.f32 %v466_v18, %v4846_v42  ;;  %v5033_v8 = vadd.f32 %v467_v11, %v4849_v7  ;;  %v3090_v38 = vld [vmem:[%s10324_s4 + $0x4e0] sm:$0xff]  ;;  %v3092_v34 = vld [vmem:[%s10324_s4 + $0x4f0] sm:$0xff]  ;;  %v3095_v25 = vld [vmem:[%s10324_s4 + $0x508] sm:$0xff] }
  0x6a   : > { %v5036_v43 = vadd.f32 %v468_v32, %v4852_v10  ;;  %v5048_v42 = vadd.f32 %v469_v29, %v4855_v17  ;;  %v5051_v7 = vadd.f32 %v470_v31, %v4867_v6  ;;  %v5054_v10 = vadd.f32 %v471_v27, %v4870_v20  ;;  %v3093_v29 = vld [vmem:[%s10324_s4 + $0x4f8] sm:$0xff]  ;;  %v3094_v24 = vld [vmem:[%s10324_s4 + $0x500] sm:$0xff]  ;;  %v3103_v18 = vld [vmem:[%s10324_s4 + $0x548] sm:$0xff] }
  0x6b   : > { %v5057_v28 = vadd.f32 %v472_v51, %v4873_v26  ;;  %v5069_v17 = vadd.f32 %v473_v63, %v4888_v13  ;;  %v5072_v6 = vadd.f32 %v474_v40, %v4891_v35  ;;  %v5075_v20 = vadd.f32 %v475_v50, %v4894_v55  ;;  %v3096_v13 = vld [vmem:[%s10324_s4 + $0x510] sm:$0xff]  ;;  %v3097_v35 = vld [vmem:[%s10324_s4 + $0x518] sm:$0xff]  ;;  %v3098_v55 = vld [vmem:[%s10324_s4 + $0x520] sm:$0xff] }
  0x6c   : > { %v5078_v26 = vadd.f32 %v476_v39, %v4897_v62  ;;  %v5090_v40 = vadd.f32 %v477_v1, %v4909_v44  ;;  %v5093_v50 = vadd.f32 %v478_v2, %v4912_v52  ;;  %v3099_v62 = vld [vmem:[%s10324_s4 + $0x528] sm:$0xff]  ;;  %v533_v49 = vmul.f32 %v3084_v59, %v4921_v54  ;;  %v3100_v52 = vld [vmem:[%s10324_s4 + $0x530] sm:$0xff]  ;;  %v3102_v22 = vld [vmem:[%s10324_s4 + $0x540] sm:$0xff] }
  0x6d   : > { %v534_v44 = vmul.f32 %v3085_v36, %v4921_v54  ;;  %v535_v5 = vmul.f32 %v3086_v41, %v4921_v54  ;;  %v536_v30 = vmul.f32 %v3087_v23, %v4921_v54  ;;  %v537_v4 = vmul.f32 %v3088_v56, %v4921_v54  ;;  %v3104_v11 = vld [vmem:[%s10324_s4 + $0x550] sm:$0xff]  ;;  %v3105_v32 = vld [vmem:[%s10324_s4 + $0x558] sm:$0xff]  ;;  %v3106_v39 = vld [vmem:[%s10324_s4 + $0x560] sm:$0xff] }
  0x6e   : > { %v538_v12 = vmul.f32 %v3089_v57, %v4921_v54  ;;  %v539_v31 = vmul.f32 %v3090_v38, %v4921_v54  ;;  %v540_v27 = vmul.f32 %v3091_v21, %v4921_v54  ;;  %v541_v51 = vmul.f32 %v3092_v34, %v4921_v54  ;;  %v3107_v1 = vld [vmem:[%s10324_s4 + $0x568] sm:$0xff]  ;;  %v3108_v2 = vld [vmem:[%s10324_s4 + $0x570] sm:$0xf] }
  0x6f   : > { %v542_v63 = vmul.f32 %v3093_v29, %v4921_v54  ;;  %v543_v59 = vmul.f32 %v3094_v24, %v4921_v54  ;;  %v544_v36 = vmul.f32 %v3095_v25, %v4921_v54  ;;  %v545_v41 = vmul.f32 %v3096_v13, %v4921_v54 }
  0x70   : > { %v546_v23 = vmul.f32 %v3097_v35, %v4921_v54  ;;  %v547_v56 = vmul.f32 %v3098_v55, %v4921_v54  ;;  %v548_v57 = vmul.f32 %v3099_v62, %v4921_v54  ;;  %v549_v38 = vmul.f32 %v3100_v52, %v4921_v54 }
  0x71   : > { %v550_v21 = vmul.f32 %v3101_v16, %v4921_v54  ;;  %v551_v34 = vmul.f32 %v3102_v22, %v4921_v54  ;;  %v552_v29 = vmul.f32 %v3103_v18, %v4921_v54  ;;  %v553_v24 = vmul.f32 %v3104_v11, %v4921_v54 }
  0x72   : > { %v554_v25 = vmul.f32 %v3105_v32, %v4921_v54  ;;  %v555_v13 = vmul.f32 %v3106_v39, %v4921_v54  ;;  %v556_v35 = vmul.f32 %v3107_v1, %v4921_v54  ;;  %v557_v55 = vmul.f32 %v3108_v2, %v4921_v54  ;;  %v3122_v39 = vld [vmem:[%s10324_s4 + $0x5e0] sm:$0xff] }
  0x73   : > { %v5157_v62 = vadd.f32 %v533_v49, %v4982_v45  ;;  %v5160_v52 = vadd.f32 %v534_v44, %v4985_v48  ;;  %v5163_v16 = vadd.f32 %v535_v5, %v4988_v3  ;;  %v5166_v22 = vadd.f32 %v536_v30, %v4991_v9  ;;  %v3109_v3 = vld [vmem:[%s10324_s4 + $0x578] sm:$0xff]  ;;  %v3110_v9 = vld [vmem:[%s10324_s4 + $0x580] sm:$0xff]  ;;  %v3112_v49 = vld [vmem:[%s10324_s4 + $0x590] sm:$0xff] }
  0x74   : > { %v5169_v18 = vadd.f32 %v537_v4, %v4994_v19  ;;  %v5172_v11 = vadd.f32 %v538_v12, %v4997_v15  ;;  %v5175_v32 = vadd.f32 %v539_v31, %v5000_v46  ;;  %v5178_v45 = vadd.f32 %v540_v27, %v5006_v0  ;;  %v3111_v19 = vld [vmem:[%s10324_s4 + $0x588] sm:$0xff]  ;;  %v3113_v44 = vld [vmem:[%s10324_s4 + $0x598] sm:$0xff]  ;;  %v3116_v4 = vld [vmem:[%s10324_s4 + $0x5b0] sm:$0xff] }
  0x75   : > { %v5181_v48 = vadd.f32 %v541_v51, %v5009_v53  ;;  %v5193_v15 = vadd.f32 %v542_v63, %v5012_v61  ;;  %v5196_v46 = vadd.f32 %v543_v59, %v5015_v33  ;;  %v5199_v0 = vadd.f32 %v544_v36, %v5027_v60  ;;  %v3114_v61 = vld [vmem:[%s10324_s4 + $0x5a0] sm:$0xff]  ;;  %v3115_v30 = vld [vmem:[%s10324_s4 + $0x5a8] sm:$0xff]  ;;  %v3121_v63 = vld [vmem:[%s10324_s4 + $0x5d8] sm:$0xff] }
  0x76   : > { %v5202_v53 = vadd.f32 %v545_v41, %v5030_v37  ;;  %v5214_v33 = vadd.f32 %v546_v23, %v5033_v8  ;;  %v5217_v60 = vadd.f32 %v547_v56, %v5036_v43  ;;  %v5220_v37 = vadd.f32 %v548_v57, %v5048_v42  ;;  %v3117_v8 = vld [vmem:[%s10324_s4 + $0x5b8] sm:$0xff]  ;;  %v3118_v31 = vld [vmem:[%s10324_s4 + $0x5c0] sm:$0xff]  ;;  %v3119_v27 = vld [vmem:[%s10324_s4 + $0x5c8] sm:$0xff] }
  0x77   : > { %v5223_v5 = vadd.f32 %v549_v38, %v5051_v7  ;;  %v5235_v43 = vadd.f32 %v550_v21, %v5054_v10  ;;  %v5238_v42 = vadd.f32 %v551_v34, %v5057_v28  ;;  %v5241_v7 = vadd.f32 %v552_v29, %v5069_v17  ;;  %v3120_v10 = vld [vmem:[%s10324_s4 + $0x5d0] sm:$0xff]  ;;  %v3127_v41 = vld [vmem:[%s10324_s4 + $0x608] sm:$0xff]  ;;  %v3129_v56 = vld [vmem:[%s10324_s4 + $0x618] sm:$0xff] }
  0x78   : > { %v5244_v12 = vadd.f32 %v553_v24, %v5072_v6  ;;  %v5256_v28 = vadd.f32 %v554_v25, %v5075_v20  ;;  %v5259_v17 = vadd.f32 %v555_v13, %v5078_v26  ;;  %v5262_v6 = vadd.f32 %v556_v35, %v5090_v40  ;;  %v3123_v20 = vld [vmem:[%s10324_s4 + $0x5e8] sm:$0xff]  ;;  %v3124_v26 = vld [vmem:[%s10324_s4 + $0x5f0] sm:$0xff]  ;;  %v3125_v40 = vld [vmem:[%s10324_s4 + $0x5f8] sm:$0xff] }
  0x79   : > { %v5265_v51 = vadd.f32 %v557_v55, %v5093_v50  ;;  %v3126_v50 = vld [vmem:[%s10324_s4 + $0x600] sm:$0xff]  ;;  %v612_v1 = vmul.f32 %v3109_v3, %v4924_v58  ;;  %v613_v2 = vmul.f32 %v3110_v9, %v4924_v58  ;;  %v614_v59 = vmul.f32 %v3111_v19, %v4924_v58  ;;  %v3128_v23 = vld [vmem:[%s10324_s4 + $0x610] sm:$0xff]  ;;  %v3131_v24 = vld [vmem:[%s10324_s4 + $0x628] sm:$0xff] }
  0x7a   : > { %v615_v36 = vmul.f32 %v3112_v49, %v4924_v58  ;;  %v616_v57 = vmul.f32 %v3113_v44, %v4924_v58  ;;  %v617_v38 = vmul.f32 %v3114_v61, %v4924_v58  ;;  %v618_v21 = vmul.f32 %v3115_v30, %v4924_v58  ;;  %v3130_v29 = vld [vmem:[%s10324_s4 + $0x620] sm:$0xff]  ;;  %v3132_v25 = vld [vmem:[%s10324_s4 + $0x630] sm:$0xff]  ;;  %v3133_v9 = vld [vmem:[%s10324_s4 + $0x638] sm:$0xf] }
  0x7b   : > { %v619_v34 = vmul.f32 %v3116_v4, %v4924_v58  ;;  %v620_v13 = vmul.f32 %v3117_v8, %v4924_v58  ;;  %v621_v35 = vmul.f32 %v3118_v31, %v4924_v58  ;;  %v622_v55 = vmul.f32 %v3119_v27, %v4924_v58 }
  0x7c   : > { %v623_v3 = vmul.f32 %v3120_v10, %v4924_v58  ;;  %v624_v19 = vmul.f32 %v3121_v63, %v4924_v58  ;;  %v625_v49 = vmul.f32 %v3122_v39, %v4924_v58  ;;  %v626_v44 = vmul.f32 %v3123_v20, %v4924_v58 }
  0x7d   : > { %v627_v61 = vmul.f32 %v3124_v26, %v4924_v58  ;;  %v628_v30 = vmul.f32 %v3125_v40, %v4924_v58  ;;  %v629_v4 = vmul.f32 %v3126_v50, %v4924_v58  ;;  %v630_v8 = vmul.f32 %v3127_v41, %v4924_v58 }
  0x7e   : > { %v631_v31 = vmul.f32 %v3128_v23, %v4924_v58  ;;  %v632_v27 = vmul.f32 %v3129_v56, %v4924_v58  ;;  %v633_v10 = vmul.f32 %v3130_v29, %v4924_v58  ;;  %v634_v63 = vmul.f32 %v3131_v24, %v4924_v58  ;;  %v3143_v24 = vld [vmem:[%s10324_s4 + $0x688] sm:$0xff] }
  0x7f   : > { %v635_v39 = vmul.f32 %v3132_v25, %v4924_v58  ;;  %v636_v20 = vmul.f32 %v3133_v9, %v4924_v58  ;;  %v5335_v26 = vadd.f32 %v612_v1, %v5157_v62  ;;  %v5338_v40 = vadd.f32 %v613_v2, %v5160_v52  ;;  %v3138_v2 = vld [vmem:[%s10324_s4 + $0x660] sm:$0xff]  ;;  %v3144_v25 = vld [vmem:[%s10324_s4 + $0x690] sm:$0xff] }
  0x80   : > { %v5341_v50 = vadd.f32 %v614_v59, %v5163_v16  ;;  %v5344_v41 = vadd.f32 %v615_v36, %v5166_v22  ;;  %v5347_v23 = vadd.f32 %v616_v57, %v5169_v18  ;;  %v5350_v56 = vadd.f32 %v617_v38, %v5172_v11  ;;  %v3134_v18 = vld [vmem:[%s10324_s4 + $0x640] sm:$0xff]  ;;  %v3135_v11 = vld [vmem:[%s10324_s4 + $0x648] sm:$0xff]  ;;  %v3140_v36 = vld [vmem:[%s10324_s4 + $0x670] sm:$0xff] }
  0x81   : > { %v5353_v29 = vadd.f32 %v618_v21, %v5175_v32  ;;  %v5356_v62 = vadd.f32 %v619_v34, %v5178_v45  ;;  %v5359_v52 = vadd.f32 %v620_v13, %v5181_v48  ;;  %v5362_v16 = vadd.f32 %v621_v35, %v5193_v15  ;;  %v3136_v32 = vld [vmem:[%s10324_s4 + $0x650] sm:$0xff]  ;;  %v3137_v45 = vld [vmem:[%s10324_s4 + $0x658] sm:$0xff]  ;;  %v3139_v59 = vld [vmem:[%s10324_s4 + $0x668] sm:$0xff] }
  0x82   : > { %v5365_v22 = vadd.f32 %v622_v55, %v5196_v46  ;;  %v5380_v48 = vadd.f32 %v623_v3, %v5199_v0  ;;  %v5383_v15 = vadd.f32 %v624_v19, %v5202_v53  ;;  %v5386_v46 = vadd.f32 %v625_v49, %v5214_v33  ;;  %v3159_v0 = vld [vmem:[%s10324_s4 + $0x708] sm:$0xff]  ;;  %v3141_v57 = vld [vmem:[%s10324_s4 + $0x678] sm:$0xff]  ;;  %v3142_v38 = vld [vmem:[%s10324_s4 + $0x680] sm:$0xff] }
  0x83   : > { %v5389_v1 = vadd.f32 %v626_v44, %v5217_v60  ;;  %v5401_v53 = vadd.f32 %v627_v61, %v5220_v37  ;;  %v5404_v33 = vadd.f32 %v628_v30, %v5223_v5  ;;  %v5407_v60 = vadd.f32 %v629_v4, %v5235_v43  ;;  %v3146_v13 = vld [vmem:[%s10324_s4 + $0x6a0] sm:$0xff]  ;;  %v3147_v35 = vld [vmem:[%s10324_s4 + $0x6a8] sm:$0xff]  ;;  %v3148_v55 = vld [vmem:[%s10324_s4 + $0x6b0] sm:$0xff] }
  0x84   : > { %v5419_v37 = vstv %s5316_s24  ;;  %v5422_v5 = vadd.f32 %v630_v8, %v5238_v42  ;;  %v5425_v43 = vadd.f32 %v631_v31, %v5241_v7  ;;  %v5428_v21 = vadd.f32 %v632_v27, %v5244_v12  ;;  %v3145_v42 = vld [vmem:[%s10324_s4 + $0x698] sm:$0xff]  ;;  %v3151_v3 = vld [vmem:[%s10324_s4 + $0x6c8] sm:$0xff]  ;;  %v3152_v61 = vld [vmem:[%s10324_s4 + $0x6d0] sm:$0xff] }
  0x85   : > { %10411 = vst [vmem:[#allocation18_spill] sm:$0xff] %v5419_v37  ;;  %v5431_v34 = vadd.f32 %v633_v10, %v5256_v28  ;;  %v5443_v7 = vadd.f32 %v634_v63, %v5259_v17  ;;  %v5446_v12 = vadd.f32 %v635_v39, %v5262_v6  ;;  %v5449_v28 = vadd.f32 %v636_v20, %v5265_v51  ;;  %v3149_v6 = vld [vmem:[%s10324_s4 + $0x6b8] sm:$0xff]  ;;  %v3150_v51 = vld [vmem:[%s10324_s4 + $0x6c0] sm:$0xff]  ;;  %v3155_v63 = vld [vmem:[%s10324_s4 + $0x6e8] sm:$0xff] }
  0x86   : > { %v5461_v17 = vmul.f32 %v3159_v0, %v4026_v14  ;;  %v691_v9 = vmul.f32 %v3134_v18, %v5419_v37  ;;  %v692_v19 = vmul.f32 %v3135_v11, %v5419_v37  ;;  %v693_v49 = vmul.f32 %v3136_v32, %v5419_v37  ;;  %v3153_v30 = vld [vmem:[%s10324_s4 + $0x6d8] sm:$0xff]  ;;  %v3154_v4 = vld [vmem:[%s10324_s4 + $0x6e0] sm:$0xff]  ;;  %v3156_v39 = vld [vmem:[%s10324_s4 + $0x6f0] sm:$0xff] }
  0x87   : > { %v694_v44 = vmul.f32 %v3137_v45, %v5419_v37  ;;  %v695_v8 = vmul.f32 %v3138_v2, %v5419_v37  ;;  %v696_v31 = vmul.f32 %v3139_v59, %v5419_v37  ;;  %v697_v27 = vmul.f32 %v3140_v36, %v5419_v37  ;;  %v3157_v20 = vld [vmem:[%s10324_s4 + $0x6f8] sm:$0xff]  ;;  %v3158_v2 = vld [vmem:[%s10324_s4 + $0x700] sm:$0xf] }
  0x88   : > { %v698_v10 = vmul.f32 %v3141_v57, %v5419_v37  ;;  %v699_v18 = vmul.f32 %v3142_v38, %v5419_v37  ;;  %v700_v11 = vmul.f32 %v3143_v24, %v5419_v37  ;;  %v701_v32 = vmul.f32 %v3144_v25, %v5419_v37 }
  0x89   : > { %v702_v45 = vmul.f32 %v3145_v42, %v5419_v37  ;;  %v703_v59 = vmul.f32 %v3146_v13, %v5419_v37  ;;  %v704_v0 = vmul.f32 %v3147_v35, %v5419_v37  ;;  %v705_v36 = vmul.f32 %v3148_v55, %v5419_v37 }
  0x8a   : > { %v706_v57 = vmul.f32 %v3149_v6, %v5419_v37  ;;  %v707_v38 = vmul.f32 %v3150_v51, %v5419_v37  ;;  %v708_v24 = vmul.f32 %v3151_v3, %v5419_v37  ;;  %v709_v25 = vmul.f32 %v3152_v61, %v5419_v37 }
  0x8b   : > { %v710_v42 = vmul.f32 %v3153_v30, %v5419_v37  ;;  %v711_v58 = vmul.f32 %v3154_v4, %v5419_v37  ;;  %v712_v54 = vmul.f32 %v3155_v63, %v5419_v37  ;;  %v713_v13 = vmul.f32 %v3156_v39, %v5419_v37  ;;  %v3171_v39 = vld [vmem:[%s10324_s4 + $0x768] sm:$0xff] }
  0x8c   : > { %v714_v35 = vmul.f32 %v3157_v20, %v5419_v37  ;;  %v715_v55 = vmul.f32 %v3158_v2, %v5419_v37  ;;  %v5519_v6 = vadd.f32 %v691_v9, %v5335_v26  ;;  %v5522_v51 = vadd.f32 %v692_v19, %v5338_v40  ;;  %v3160_v26 = vld [vmem:[%s10324_s4 + $0x710] sm:$0xff]  ;;  %v3161_v40 = vld [vmem:[%s10324_s4 + $0x718] sm:$0xff]  ;;  %v3163_v9 = vld [vmem:[%s10324_s4 + $0x728] sm:$0xff] }
  0x8d   : > { %v5525_v3 = vadd.f32 %v693_v49, %v5341_v50  ;;  %v5528_v61 = vadd.f32 %v694_v44, %v5344_v41  ;;  %v5531_v30 = vadd.f32 %v695_v8, %v5347_v23  ;;  %v5534_v4 = vadd.f32 %v696_v31, %v5350_v56  ;;  %v3166_v44 = vld [vmem:[%s10324_s4 + $0x740] sm:$0xff]  ;;  %v3167_v8 = vld [vmem:[%s10324_s4 + $0x748] sm:$0xff] }
  0x8e   : > { %10412 = vst [vmem:[#allocation19_spill] sm:$0xff] %v5519_v6  ;;  %10413 = vst [vmem:[#allocation20_spill] sm:$0xff] %v5522_v51  ;;  %v5537_v63 = vadd.f32 %v697_v27, %v5353_v29  ;;  %v5546_v50 = vadd.f32 %v698_v10, %v5356_v62  ;;  %v5549_v41 = vadd.f32 %v699_v18, %v5359_v52  ;;  %v3162_v29 = vld [vmem:[%s10324_s4 + $0x720] sm:$0xff]  ;;  %v3164_v62 = vld [vmem:[%s10324_s4 + $0x730] sm:$0xff] }
  0x8f   : > { %10414 = vst [vmem:[#allocation21_spill] sm:$0xff] %v5525_v3  ;;  %10415 = vst [vmem:[#allocation22_spill] sm:$0xff] %v5528_v61  ;;  %v5552_v23 = vadd.f32 %v700_v11, %v5362_v16  ;;  %v5555_v56 = vadd.f32 %v701_v32, %v5365_v22  ;;  %v3165_v52 = vld [vmem:[%s10324_s4 + $0x738] sm:$0xff]  ;;  %v5570_v16 = vadd.f32 %v702_v45, %v5380_v48  ;;  %v3168_v48 = vld [vmem:[%s10324_s4 + $0x750] sm:$0xff] }
  0x90   : > { %10416 = vst [vmem:[#allocation23_spill] sm:$0xff] %v5531_v30  ;;  %10417 = vst [vmem:[#allocation24_spill] sm:$0xff] %v5534_v4  ;;  %v5573_v22 = vadd.f32 %v703_v59, %v5383_v15  ;;  %v5576_v19 = vadd.f32 %v704_v0, %v5386_v46  ;;  %v5579_v49 = vadd.f32 %v705_v36, %v5389_v1  ;;  %v3169_v15 = vld [vmem:[%s10324_s4 + $0x758] sm:$0xff]  ;;  %v3170_v10 = vld [vmem:[%s10324_s4 + $0x760] sm:$0xff] }
  0x91   : > { %10418 = vst [vmem:[#allocation25_spill] sm:$0xff] %v5537_v63  ;;  %10419 = vst [vmem:[#allocation26_spill] sm:$0xff] %v5546_v50  ;;  %v5594_v46 = vadd.f32 %v706_v57, %v5401_v53  ;;  %v5597_v1 = vadd.f32 %v707_v38, %v5404_v33  ;;  %v5600_v31 = vadd.f32 %v708_v24, %v5407_v60  ;;  %v3172_v53 = vld [vmem:[%s10324_s4 + $0x770] sm:$0xff]  ;;  %v3173_v33 = vld [vmem:[%s10324_s4 + $0x778] sm:$0xff] }
  0x92   : > { %10420 = vst [vmem:[#allocation27_spill] sm:$0xff] %v5549_v41  ;;  %10421 = vst [vmem:[#allocation28_spill] sm:$0xff] %v5552_v23  ;;  %v5603_v27 = vadd.f32 %v709_v25, %v5422_v5  ;;  %v5618_v60 = vadd.f32 %v710_v42, %v5425_v43  ;;  %v5621_v5 = vadd.f32 %v711_v58, %v5428_v21  ;;  %v3174_v11 = vld [vmem:[%s10324_s4 + $0x780] sm:$0xff]  ;;  %v3175_v32 = vld [vmem:[%s10324_s4 + $0x788] sm:$0xff] }
  0x93   : > { %10422 = vst [vmem:[#allocation29_spill] sm:$0xff] %v5555_v56  ;;  %10423 = vst [vmem:[#allocation30_spill] sm:$0xff] %v5570_v16  ;;  %v5624_v20 = vadd.f32 %v712_v54, %v5431_v34  ;;  %v5627_v18 = vadd.f32 %v713_v13, %v5443_v7  ;;  %v3176_v43 = vld [vmem:[%s10324_s4 + $0x790] sm:$0xff]  ;;  %v3177_v54 = vld [vmem:[%s10324_s4 + $0x798] sm:$0xff]  ;;  %v5642_v58 = vadd.f32 %v714_v35, %v5446_v12 }
  0x94   : > { %10424 = vst [vmem:[#allocation31_spill] sm:$0xff] %v5573_v22  ;;  %10425 = vst [vmem:[#allocation32_spill] sm:$0xff] %v5576_v19  ;;  %v5645_v21 = vadd.f32 %v715_v55, %v5449_v28  ;;  %v3178_v34 = vld [vmem:[%s10324_s4 + $0x7a0] sm:$0xff]  ;;  %v3179_v7 = vld [vmem:[%s10324_s4 + $0x7a8] sm:$0xff]  ;;  %v5660_v2 = vmul.f32 %v3160_v26, %v4026_v14  ;;  %v5663_v28 = vmul.f32 %v3161_v40, %v4026_v14 }
  0x95   : > { %10426 = vst [vmem:[#allocation33_spill] sm:$0xff] %v5579_v49  ;;  %10427 = vst [vmem:[#allocation34_spill] sm:$0xff] %v5594_v46  ;;  %v3180_v45 = vld [vmem:[%s10324_s4 + $0x7b0] sm:$0xff]  ;;  %v3181_v12 = vld [vmem:[%s10324_s4 + $0x7b8] sm:$0xff]  ;;  %v5672_v36 = vmul.f32 %v3162_v29, %v4026_v14  ;;  %v5675_v57 = vmul.f32 %v3163_v9, %v4026_v14  ;;  %v5678_v38 = vmul.f32 %v3164_v62, %v4026_v14 }
  0x96   : > { %10428 = vst [vmem:[#allocation35_spill] sm:$0xff] %v5597_v1  ;;  %10429 = vst [vmem:[#allocation36_spill] sm:$0xff] %v5600_v31  ;;  %v3182_v59 = vld [vmem:[%s10324_s4 + $0x7c0] sm:$0xff]  ;;  %v3183_v0 = vld [vmem:[%s10324_s4 + $0x7c8] sm:$0xf]  ;;  %v5681_v24 = vmul.f32 %v3165_v52, %v4026_v14  ;;  %v5687_v42 = vmul.f32 %v3166_v44, %v4026_v14  ;;  %v5690_v13 = vmul.f32 %v3167_v8, %v4026_v14 }
  0x97   : > { %10430 = vst [vmem:[#allocation37_spill] sm:$0xff] %v5603_v27  ;;  %10431 = vst [vmem:[#allocation38_spill] sm:$0xff] %v5618_v60  ;;  %v3184_v25 = vld [vmem:[%s10324_s4 + $0x7d0] sm:$0xff]  ;;  %v5693_v35 = vmul.f32 %v3168_v48, %v4026_v14  ;;  %v5696_v55 = vmul.f32 %v3169_v15, %v4026_v14  ;;  %v3185_v26 = vld [vmem:[%s10324_s4 + $0x7d8] sm:$0xff]  ;;  %v5708_v9 = vmul.f32 %v3170_v10, %v4026_v14 }
  0x98   : > { %10432 = vst [vmem:[#allocation39_spill] sm:$0xff] %v5621_v5  ;;  %10433 = vst [vmem:[#allocation40_spill] sm:$0xff] %v5624_v20  ;;  %v3186_v40 = vld [vmem:[%s10324_s4 + $0x7e0] sm:$0xff]  ;;  %v3187_v29 = vld [vmem:[%s10324_s4 + $0x7e8] sm:$0xff]  ;;  %v5711_v62 = vmul.f32 %v3171_v39, %v4026_v14  ;;  %v5714_v52 = vmul.f32 %v3172_v53, %v4026_v14  ;;  %v5717_v44 = vmul.f32 %v3173_v33, %v4026_v14 }
  0x99   : > { %10434 = vst [vmem:[#allocation41_spill] sm:$0xff] %v5627_v18  ;;  %10435 = vst [vmem:[#allocation42_spill] sm:$0xff] %v5642_v58  ;;  %v3188_v8 = vld [vmem:[%s10324_s4 + $0x7f0] sm:$0xff]  ;;  %v3189_v48 = vld [vmem:[%s10324_s4 + $0x7f8] sm:$0xff]  ;;  %v5729_v10 = vmul.f32 %v3174_v11, %v4026_v14  ;;  %v5732_v39 = vmul.f32 %v3175_v32, %v4026_v14  ;;  %v5735_v53 = vmul.f32 %v3176_v43, %v4026_v14 }
  0x9a   : > { %10436 = vst [vmem:[#allocation43_spill] sm:$0xff] %v5645_v21  ;;  %v3190_v15 = vld [vmem:[%s10324_s4 + $0x800] sm:$0xff]  ;;  %v5738_v33 = vmul.f32 %v3177_v54, %v4026_v14  ;;  %v3191_v21 = vld [vmem:[%s10324_s4 + $0x808] sm:$0xff]  ;;  %v3192_v58 = vld [vmem:[%s10324_s4 + $0x810] sm:$0xff]  ;;  %v5750_v32 = vmul.f32 %v3178_v34, %v4026_v14  ;;  %v5753_v43 = vmul.f32 %v3179_v7, %v4026_v14  ;;  %v5756_v54 = vmul.f32 %v3180_v45, %v4026_v14 }
  0x9b   : > { %v3193_v11 = vld [vmem:[%s10324_s4 + $0x818] sm:$0xff]  ;;  %v5759_v18 = vmul.f32 %v3181_v12, %v4026_v14  ;;  %v3194_v20 = vld [vmem:[%s10324_s4 + $0x820] sm:$0xff]  ;;  %v3195_v5 = vld [vmem:[%s10324_s4 + $0x828] sm:$0xff]  ;;  %v5771_v7 = vmul.f32 %v3182_v59, %v4026_v14  ;;  %v5774_v45 = vmul.f32 %v3183_v0, %v4026_v14 }
  0x9c   : > { %v3196_v34 = vld [vmem:[%s10324_s4 + $0x830] sm:$0xff]  ;;  %v3197_v12 = vld [vmem:[%s10324_s4 + $0x838] sm:$0xff]  ;;  %v3198_v60 = vld [vmem:[%s10324_s4 + $0x840] sm:$0xff] }
  0x9d   : > { %v3199_v27 = vld [vmem:[%s10324_s4 + $0x848] sm:$0xff]  ;;  %v10437_v31 = vld [vmem:[#allocation11_spill] sm:$0xff]  ;;  %v3200_v0 = vld [vmem:[%s10324_s4 + $0x850] sm:$0xff] }
  0x9e   : > { %v818_v1 = vmul.f32 %v3184_v25, %v10437_v31  ;;  %v819_v59 = vmul.f32 %v3185_v26, %v10437_v31  ;;  %v3201_v14 = vld [vmem:[%s10324_s4 + $0x858] sm:$0xff]  ;;  %v3202_v46 = vld [vmem:[%s10324_s4 + $0x860] sm:$0xff]  ;;  %v820_v49 = vmul.f32 %v3186_v40, %v10437_v31  ;;  %v821_v19 = vmul.f32 %v3187_v29, %v10437_v31  ;;  %v3203_v22 = vld [vmem:[%s10324_s4 + $0x868] sm:$0xff] }
  0x9f   : > { %v822_v25 = vmul.f32 %v3188_v8, %v10437_v31  ;;  %v823_v26 = vmul.f32 %v3189_v48, %v10437_v31  ;;  %v3204_v16 = vld [vmem:[%s10324_s4 + $0x870] sm:$0xff]  ;;  %v3205_v56 = vld [vmem:[%s10324_s4 + $0x878] sm:$0xff]  ;;  %v824_v40 = vmul.f32 %v3190_v15, %v10437_v31  ;;  %v825_v29 = vmul.f32 %v3191_v21, %v10437_v31  ;;  %v3206_v23 = vld [vmem:[%s10324_s4 + $0x880] sm:$0xff] }
  0xa0   : > { %v826_v8 = vmul.f32 %v3192_v58, %v10437_v31  ;;  %v827_v48 = vmul.f32 %v3193_v11, %v10437_v31  ;;  %v3207_v41 = vld [vmem:[%s10324_s4 + $0x888] sm:$0xff]  ;;  %v3208_v50 = vld [vmem:[%s10324_s4 + $0x890] sm:$0xf]  ;;  %v828_v15 = vmul.f32 %v3194_v20, %v10437_v31  ;;  %v829_v21 = vmul.f32 %v3195_v5, %v10437_v31 }
  0xa1   : > { %v830_v58 = vmul.f32 %v3196_v34, %v10437_v31  ;;  %v831_v11 = vmul.f32 %v3197_v12, %v10437_v31  ;;  %v832_v63 = vmul.f32 %v3198_v60, %v10437_v31  ;;  %v833_v4 = vmul.f32 %v3199_v27, %v10437_v31 }
  0xa2   : > { %v834_v30 = vmul.f32 %v3200_v0, %v10437_v31  ;;  %v835_v61 = vmul.f32 %v3201_v14, %v10437_v31  ;;  %v836_v3 = vmul.f32 %v3202_v46, %v10437_v31  ;;  %v837_v51 = vmul.f32 %v3203_v22, %v10437_v31 }
  0xa3   : > { %v838_v20 = vmul.f32 %v3204_v16, %v10437_v31  ;;  %v839_v5 = vmul.f32 %v3205_v56, %v10437_v31  ;;  %v840_v34 = vmul.f32 %v3206_v23, %v10437_v31  ;;  %v841_v12 = vmul.f32 %v3207_v41, %v10437_v31  ;;  %v3209_v16 = vld [vmem:[%s10324_s4 + $0x898] sm:$0xff] }
  0xa4   : > { %v842_v60 = vmul.f32 %v3208_v50, %v10437_v31  ;;  %v5838_v27 = vadd.f32 %v818_v1, %v5461_v17  ;;  %v5841_v0 = vadd.f32 %v819_v59, %v5660_v2  ;;  %v5844_v14 = vadd.f32 %v820_v49, %v5663_v28  ;;  %v3211_v49 = vld [vmem:[%s10324_s4 + $0x8a8] sm:$0xff] }
  0xa5   : > { %v5847_v22 = vadd.f32 %v821_v19, %v5672_v36  ;;  %v5850_v56 = vadd.f32 %v822_v25, %v5675_v57  ;;  %v5853_v23 = vadd.f32 %v823_v26, %v5678_v38  ;;  %v5856_v50 = vadd.f32 %v824_v40, %v5681_v24  ;;  %v3210_v19 = vld [vmem:[%s10324_s4 + $0x8a0] sm:$0xff]  ;;  %v3212_v36 = vld [vmem:[%s10324_s4 + $0x8b0] sm:$0xff]  ;;  %v3213_v57 = vld [vmem:[%s10324_s4 + $0x8b8] sm:$0xff] }
  0xa6   : > { %v5859_v17 = vadd.f32 %v825_v29, %v5687_v42  ;;  %v5862_v41 = vadd.f32 %v826_v8, %v5690_v13  ;;  %v5874_v46 = vadd.f32 %v827_v48, %v5693_v35  ;;  %v5877_v1 = vadd.f32 %v828_v15, %v5696_v55  ;;  %v3214_v38 = vld [vmem:[%s10324_s4 + $0x8c0] sm:$0xff]  ;;  %v3215_v55 = vld [vmem:[%s10324_s4 + $0x8c8] sm:$0xff]  ;;  %v3228_v8 = vld [vmem:[%s10324_s4 + $0x930] sm:$0xff] }
  0xa7   : > { %v5880_v2 = vadd.f32 %v829_v21, %v5708_v9  ;;  %v5883_v28 = vadd.f32 %v830_v58, %v5711_v62  ;;  %v5895_v24 = vadd.f32 %v831_v11, %v5714_v52  ;;  %v5898_v42 = vadd.f32 %v832_v63, %v5717_v44  ;;  %v3216_v9 = vld [vmem:[%s10324_s4 + $0x8d0] sm:$0xff]  ;;  %v3217_v62 = vld [vmem:[%s10324_s4 + $0x8d8] sm:$0xff]  ;;  %v3218_v44 = vld [vmem:[%s10324_s4 + $0x8e0] sm:$0xff] }
  0xa8   : > { %v5901_v13 = vadd.f32 %v833_v4, %v5729_v10  ;;  %v5904_v35 = vadd.f32 %v834_v30, %v5732_v39  ;;  %v5916_v63 = vadd.f32 %v835_v61, %v5735_v53  ;;  %v5919_v4 = vadd.f32 %v836_v3, %v5738_v33  ;;  %v3219_v10 = vld [vmem:[%s10324_s4 + $0x8e8] sm:$0xff]  ;;  %v3220_v61 = vld [vmem:[%s10324_s4 + $0x8f0] sm:$0xff]  ;;  %v3221_v33 = vld [vmem:[%s10324_s4 + $0x8f8] sm:$0xff] }
  0xa9   : > { %v5922_v30 = vadd.f32 %v837_v51, %v5750_v32  ;;  %v5925_v52 = vadd.f32 %v838_v20, %v5753_v43  ;;  %v5937_v3 = vadd.f32 %v839_v5, %v5756_v54  ;;  %v5940_v51 = vadd.f32 %v840_v34, %v5759_v18  ;;  %v3222_v32 = vld [vmem:[%s10324_s4 + $0x900] sm:$0xff]  ;;  %v3223_v43 = vld [vmem:[%s10324_s4 + $0x908] sm:$0xff]  ;;  %v3224_v18 = vld [vmem:[%s10324_s4 + $0x910] sm:$0xff] }
  0xaa   : > { %v5943_v39 = vadd.f32 %v841_v12, %v5771_v7  ;;  %v5946_v53 = vadd.f32 %v842_v60, %v5774_v45  ;;  %v3225_v54 = vld [vmem:[%s10324_s4 + $0x918] sm:$0xff]  ;;  %v3226_v7 = vld [vmem:[%s10324_s4 + $0x920] sm:$0xff]  ;;  %v3227_v29 = vld [vmem:[%s10324_s4 + $0x928] sm:$0xff] }
  0xab   : > { %v10438_v45 = vld [vmem:[#allocation12_spill] sm:$0xff]  ;;  %v3229_v48 = vld [vmem:[%s10324_s4 + $0x938] sm:$0xff]  ;;  %v3231_v5 = vld [vmem:[%s10324_s4 + $0x948] sm:$0xff] }
  0xac   : > { %v894_v59 = vmul.f32 %v3209_v16, %v10438_v45  ;;  %v895_v25 = vmul.f32 %v3210_v19, %v10438_v45  ;;  %v896_v26 = vmul.f32 %v3211_v49, %v10438_v45  ;;  %v897_v40 = vmul.f32 %v3212_v36, %v10438_v45  ;;  %v3230_v20 = vld [vmem:[%s10324_s4 + $0x940] sm:$0xff]  ;;  %v3232_v34 = vld [vmem:[%s10324_s4 + $0x950] sm:$0xff]  ;;  %v3233_v49 = vld [vmem:[%s10324_s4 + $0x958] sm:$0xf] }
  0xad   : > { %v898_v15 = vmul.f32 %v3213_v57, %v10438_v45  ;;  %v899_v21 = vmul.f32 %v3214_v38, %v10438_v45  ;;  %v900_v58 = vmul.f32 %v3215_v55, %v10438_v45  ;;  %v901_v11 = vmul.f32 %v3216_v9, %v10438_v45 }
  0xae   : > { %v902_v12 = vmul.f32 %v3217_v62, %v10438_v45  ;;  %v903_v60 = vmul.f32 %v3218_v44, %v10438_v45  ;;  %v904_v16 = vmul.f32 %v3219_v10, %v10438_v45  ;;  %v905_v19 = vmul.f32 %v3220_v61, %v10438_v45 }
  0xaf   : > { %v906_v36 = vmul.f32 %v3221_v33, %v10438_v45  ;;  %v907_v57 = vmul.f32 %v3222_v32, %v10438_v45  ;;  %v908_v38 = vmul.f32 %v3223_v43, %v10438_v45  ;;  %v909_v55 = vmul.f32 %v3224_v18, %v10438_v45 }
  0xb0   : > { %v910_v9 = vmul.f32 %v3225_v54, %v10438_v45  ;;  %v911_v62 = vmul.f32 %v3226_v7, %v10438_v45  ;;  %v912_v44 = vmul.f32 %v3227_v29, %v10438_v45  ;;  %v913_v10 = vmul.f32 %v3228_v8, %v10438_v45 }
  0xb1   : > { %v914_v61 = vmul.f32 %v3229_v48, %v10438_v45  ;;  %v915_v31 = vmul.f32 %v3230_v20, %v10438_v45  ;;  %v916_v33 = vmul.f32 %v3231_v5, %v10438_v45  ;;  %v917_v32 = vmul.f32 %v3232_v34, %v10438_v45  ;;  %v3245_v5 = vld [vmem:[%s10324_s4 + $0x9b8] sm:$0xff] }
  0xb2   : > { %v918_v43 = vmul.f32 %v3233_v49, %v10438_v45  ;;  %v6013_v18 = vadd.f32 %v894_v59, %v5838_v27  ;;  %v6016_v54 = vadd.f32 %v895_v25, %v5841_v0  ;;  %v6019_v7 = vadd.f32 %v896_v26, %v5844_v14  ;;  %v3234_v27 = vld [vmem:[%s10324_s4 + $0x960] sm:$0xff]  ;;  %v3239_v26 = vld [vmem:[%s10324_s4 + $0x988] sm:$0xff]  ;;  %v3249_v34 = vld [vmem:[%s10324_s4 + $0x9d8] sm:$0xff] }
  0xb3   : > { %v6022_v29 = vadd.f32 %v897_v40, %v5847_v22  ;;  %v6025_v8 = vadd.f32 %v898_v15, %v5850_v56  ;;  %v6028_v48 = vadd.f32 %v899_v21, %v5853_v23  ;;  %v6031_v20 = vadd.f32 %v900_v58, %v5856_v50  ;;  %v3235_v23 = vld [vmem:[%s10324_s4 + $0x968] sm:$0xff]  ;;  %v3236_v50 = vld [vmem:[%s10324_s4 + $0x970] sm:$0xff]  ;;  %v3238_v25 = vld [vmem:[%s10324_s4 + $0x980] sm:$0xff] }
  0xb4   : > { %v6037_v0 = vadd.f32 %v901_v11, %v5859_v17  ;;  %v6040_v14 = vadd.f32 %v902_v12, %v5862_v41  ;;  %v6043_v22 = vadd.f32 %v903_v60, %v5874_v46  ;;  %v6046_v56 = vadd.f32 %v904_v16, %v5877_v1  ;;  %v3237_v17 = vld [vmem:[%s10324_s4 + $0x978] sm:$0xff]  ;;  %v3242_v21 = vld [vmem:[%s10324_s4 + $0x9a0] sm:$0xff]  ;;  %v3244_v11 = vld [vmem:[%s10324_s4 + $0x9b0] sm:$0xff] }
  0xb5   : > { %v6058_v41 = vadd.f32 %v905_v19, %v5880_v2  ;;  %v6061_v46 = vadd.f32 %v906_v36, %v5883_v28  ;;  %v6064_v1 = vadd.f32 %v907_v57, %v5895_v24  ;;  %v6067_v59 = vadd.f32 %v908_v38, %v5898_v42  ;;  %v3240_v2 = vld [vmem:[%s10324_s4 + $0x990] sm:$0xff]  ;;  %v3241_v15 = vld [vmem:[%s10324_s4 + $0x998] sm:$0xff]  ;;  %v10439_v12 = vld [vmem:[#allocation13_spill] sm:$0xff] }
  0xb6   : > { %v6079_v28 = vadd.f32 %v909_v55, %v5901_v13  ;;  %v6082_v24 = vadd.f32 %v910_v9, %v5904_v35  ;;  %v6085_v42 = vadd.f32 %v911_v62, %v5916_v63  ;;  %v6088_v40 = vadd.f32 %v912_v44, %v5919_v4  ;;  %v3243_v13 = vld [vmem:[%s10324_s4 + $0x9a8] sm:$0xff]  ;;  %v3252_v19 = vld [vmem:[%s10324_s4 + $0x9f0] sm:$0xff]  ;;  %v3253_v55 = vld [vmem:[%s10324_s4 + $0x9f8] sm:$0xff] }
  0xb7   : > { %v6100_v35 = vadd.f32 %v913_v10, %v5922_v30  ;;  %v6103_v63 = vadd.f32 %v914_v61, %v5925_v52  ;;  %v6106_v4 = vadd.f32 %v915_v31, %v5937_v3  ;;  %v6109_v58 = vadd.f32 %v916_v33, %v5940_v51  ;;  %v3246_v30 = vld [vmem:[%s10324_s4 + $0x9c0] sm:$0xff]  ;;  %v3247_v3 = vld [vmem:[%s10324_s4 + $0x9c8] sm:$0xff]  ;;  %v3248_v51 = vld [vmem:[%s10324_s4 + $0x9d0] sm:$0xff] }
  0xb8   : > { %v6121_v52 = vadd.f32 %v917_v32, %v5943_v39  ;;  %v6124_v31 = vadd.f32 %v918_v43, %v5946_v53  ;;  %v970_v60 = vmul.f32 %v3234_v27, %v10439_v12  ;;  %v971_v39 = vmul.f32 %v3235_v23, %v10439_v12  ;;  %v3250_v53 = vld [vmem:[%s10324_s4 + $0x9e0] sm:$0xff]  ;;  %v3251_v16 = vld [vmem:[%s10324_s4 + $0x9e8] sm:$0xff]  ;;  %v3256_v32 = vld [vmem:[%s10324_s4 + $0xa10] sm:$0xff] }
  0xb9   : > { %v972_v49 = vmul.f32 %v3236_v50, %v10439_v12  ;;  %v973_v36 = vmul.f32 %v3237_v17, %v10439_v12  ;;  %v974_v57 = vmul.f32 %v3238_v25, %v10439_v12  ;;  %v975_v38 = vmul.f32 %v3239_v26, %v10439_v12  ;;  %v3254_v9 = vld [vmem:[%s10324_s4 + $0xa00] sm:$0xff]  ;;  %v3255_v62 = vld [vmem:[%s10324_s4 + $0xa08] sm:$0xff]  ;;  %v3257_v43 = vld [vmem:[%s10324_s4 + $0xa18] sm:$0xff] }
  0xba   : > { %v976_v44 = vmul.f32 %v3240_v2, %v10439_v12  ;;  %v977_v10 = vmul.f32 %v3241_v15, %v10439_v12  ;;  %v978_v61 = vmul.f32 %v3242_v21, %v10439_v12  ;;  %v979_v33 = vmul.f32 %v3243_v13, %v10439_v12  ;;  %v3258_v27 = vld [vmem:[%s10324_s4 + $0xa20] sm:$0xf] }
  0xbb   : > { %v980_v23 = vmul.f32 %v3244_v11, %v10439_v12  ;;  %v981_v50 = vmul.f32 %v3245_v5, %v10439_v12  ;;  %v982_v17 = vmul.f32 %v3246_v30, %v10439_v12  ;;  %v983_v25 = vmul.f32 %v3247_v3, %v10439_v12 }
  0xbc   : > { %v984_v26 = vmul.f32 %v3248_v51, %v10439_v12  ;;  %v985_v2 = vmul.f32 %v3249_v34, %v10439_v12  ;;  %v986_v15 = vmul.f32 %v3250_v53, %v10439_v12  ;;  %v987_v21 = vmul.f32 %v3251_v16, %v10439_v12 }
  0xbd   : > { %v988_v13 = vmul.f32 %v3252_v19, %v10439_v12  ;;  %v989_v45 = vmul.f32 %v3253_v55, %v10439_v12  ;;  %v990_v11 = vmul.f32 %v3254_v9, %v10439_v12  ;;  %v991_v5 = vmul.f32 %v3255_v62, %v10439_v12 }
  0xbe   : > { %v992_v30 = vmul.f32 %v3256_v32, %v10439_v12  ;;  %v993_v3 = vmul.f32 %v3257_v43, %v10439_v12  ;;  %v994_v51 = vmul.f32 %v3258_v27, %v10439_v12  ;;  %v6188_v34 = vadd.f32 %v970_v60, %v6013_v18  ;;  %v3262_v60 = vld [vmem:[%s10324_s4 + $0xa40] sm:$0xff]  ;;  %v10440_v32 = vld [vmem:[#allocation14_spill] sm:$0xff] }
  0xbf   : > { %v6191_v53 = vadd.f32 %v971_v39, %v6016_v54  ;;  %v6194_v16 = vadd.f32 %v972_v49, %v6019_v7  ;;  %v6197_v19 = vadd.f32 %v973_v36, %v6022_v29  ;;  %v6200_v55 = vadd.f32 %v974_v57, %v6025_v8  ;;  %v3259_v7 = vld [vmem:[%s10324_s4 + $0xa28] sm:$0xff]  ;;  %v3260_v29 = vld [vmem:[%s10324_s4 + $0xa30] sm:$0xff]  ;;  %v3261_v8 = vld [vmem:[%s10324_s4 + $0xa38] sm:$0xff] }
  0xc0   : > { %v6203_v9 = vadd.f32 %v975_v38, %v6028_v48  ;;  %v6206_v62 = vadd.f32 %v976_v44, %v6031_v20  ;;  %v6209_v18 = vadd.f32 %v977_v10, %v6037_v0  ;;  %v6212_v54 = vadd.f32 %v978_v61, %v6040_v14  ;;  %v3263_v39 = vld [vmem:[%s10324_s4 + $0xa48] sm:$0xff]  ;;  %v3265_v36 = vld [vmem:[%s10324_s4 + $0xa58] sm:$0xff]  ;;  %v3266_v57 = vld [vmem:[%s10324_s4 + $0xa60] sm:$0xff] }
  0xc1   : > { %v6224_v48 = vadd.f32 %v979_v33, %v6043_v22  ;;  %v6227_v20 = vadd.f32 %v980_v23, %v6046_v56  ;;  %v6230_v0 = vadd.f32 %v981_v50, %v6058_v41  ;;  %v6233_v14 = vadd.f32 %v982_v17, %v6061_v46  ;;  %v3264_v22 = vld [vmem:[%s10324_s4 + $0xa50] sm:$0xff]  ;;  %v3269_v10 = vld [vmem:[%s10324_s4 + $0xa78] sm:$0xff]  ;;  %v3271_v61 = vld [vmem:[%s10324_s4 + $0xa88] sm:$0xff] }
  0xc2   : > { %v6245_v56 = vadd.f32 %v983_v25, %v6064_v1  ;;  %v6248_v41 = vadd.f32 %v984_v26, %v6067_v59  ;;  %v6251_v46 = vadd.f32 %v985_v2, %v6079_v28  ;;  %v6254_v49 = vadd.f32 %v986_v15, %v6082_v24  ;;  %v3267_v1 = vld [vmem:[%s10324_s4 + $0xa68] sm:$0xff]  ;;  %v3268_v44 = vld [vmem:[%s10324_s4 + $0xa70] sm:$0xff]  ;;  %v3277_v17 = vld [vmem:[%s10324_s4 + $0xab8] sm:$0xff] }
  0xc3   : > { %v6266_v59 = vadd.f32 %v987_v21, %v6085_v42  ;;  %v6269_v28 = vadd.f32 %v988_v13, %v6088_v40  ;;  %v6272_v24 = vadd.f32 %v989_v45, %v6100_v35  ;;  %v6275_v38 = vadd.f32 %v990_v11, %v6103_v63  ;;  %v3270_v42 = vld [vmem:[%s10324_s4 + $0xa80] sm:$0xff]  ;;  %v3272_v33 = vld [vmem:[%s10324_s4 + $0xa90] sm:$0xff]  ;;  %v3279_v26 = vld [vmem:[%s10324_s4 + $0xac8] sm:$0xff] }
  0xc4   : > { %v6287_v40 = vadd.f32 %v991_v5, %v6106_v4  ;;  %v6290_v45 = vadd.f32 %v992_v30, %v6109_v58  ;;  %v6293_v35 = vadd.f32 %v993_v3, %v6121_v52  ;;  %v6296_v63 = vadd.f32 %v994_v51, %v6124_v31  ;;  %v3273_v4 = vld [vmem:[%s10324_s4 + $0xa98] sm:$0xff]  ;;  %v3274_v58 = vld [vmem:[%s10324_s4 + $0xaa0] sm:$0xff]  ;;  %v3275_v52 = vld [vmem:[%s10324_s4 + $0xaa8] sm:$0xff] }
  0xc5   : > { %v3276_v31 = vld [vmem:[%s10324_s4 + $0xab0] sm:$0xff]  ;;  %v1046_v43 = vmul.f32 %v3259_v7, %v10440_v32  ;;  %v1047_v27 = vmul.f32 %v3260_v29, %v10440_v32  ;;  %v1048_v23 = vmul.f32 %v3261_v8, %v10440_v32  ;;  %v1049_v50 = vmul.f32 %v3262_v60, %v10440_v32  ;;  %v3278_v25 = vld [vmem:[%s10324_s4 + $0xac0] sm:$0xff]  ;;  %v3281_v5 = vld [vmem:[%s10324_s4 + $0xad8] sm:$0xff] }
  0xc6   : > { %v1050_v2 = vmul.f32 %v3263_v39, %v10440_v32  ;;  %v1051_v15 = vmul.f32 %v3264_v22, %v10440_v32  ;;  %v1052_v21 = vmul.f32 %v3265_v36, %v10440_v32  ;;  %v1053_v13 = vmul.f32 %v3266_v57, %v10440_v32  ;;  %v3280_v11 = vld [vmem:[%s10324_s4 + $0xad0] sm:$0xff]  ;;  %v3282_v30 = vld [vmem:[%s10324_s4 + $0xae0] sm:$0xff]  ;;  %v3283_v8 = vld [vmem:[%s10324_s4 + $0xae8] sm:$0xf] }
  0xc7   : > { %v1054_v3 = vmul.f32 %v3267_v1, %v10440_v32  ;;  %v1055_v51 = vmul.f32 %v3268_v44, %v10440_v32  ;;  %v1056_v7 = vmul.f32 %v3269_v10, %v10440_v32  ;;  %v1057_v29 = vmul.f32 %v3270_v42, %v10440_v32 }
  0xc8   : > { %v1058_v60 = vmul.f32 %v3271_v61, %v10440_v32  ;;  %v1059_v39 = vmul.f32 %v3272_v33, %v10440_v32  ;;  %v1060_v22 = vmul.f32 %v3273_v4, %v10440_v32  ;;  %v1061_v36 = vmul.f32 %v3274_v58, %v10440_v32 }
  0xc9   : > { %v1062_v57 = vmul.f32 %v3275_v52, %v10440_v32  ;;  %v1063_v1 = vmul.f32 %v3276_v31, %v10440_v32  ;;  %v1064_v44 = vmul.f32 %v3277_v17, %v10440_v32  ;;  %v1065_v10 = vmul.f32 %v3278_v25, %v10440_v32 }
  0xca   : > { %v1066_v42 = vmul.f32 %v3279_v26, %v10440_v32  ;;  %v1067_v12 = vmul.f32 %v3280_v11, %v10440_v32  ;;  %v1068_v61 = vmul.f32 %v3281_v5, %v10440_v32  ;;  %v1069_v33 = vmul.f32 %v3282_v30, %v10440_v32  ;;  %v3295_v5 = vld [vmem:[%s10324_s4 + $0xb48] sm:$0xff] }
  0xcb   : > { %v1070_v4 = vmul.f32 %v3283_v8, %v10440_v32  ;;  %v6363_v58 = vadd.f32 %v1046_v43, %v6188_v34  ;;  %v6366_v52 = vadd.f32 %v1047_v27, %v6191_v53  ;;  %v6369_v31 = vadd.f32 %v1048_v23, %v6194_v16  ;;  %v3284_v34 = vld [vmem:[%s10324_s4 + $0xaf0] sm:$0xff]  ;;  %v3289_v23 = vld [vmem:[%s10324_s4 + $0xb18] sm:$0xff]  ;;  %v3299_v30 = vld [vmem:[%s10324_s4 + $0xb68] sm:$0xff] }
  0xcc   : > { %v6372_v17 = vadd.f32 %v1049_v50, %v6197_v19  ;;  %v6375_v25 = vadd.f32 %v1050_v2, %v6200_v55  ;;  %v6378_v26 = vadd.f32 %v1051_v15, %v6203_v9  ;;  %v6381_v11 = vadd.f32 %v1052_v21, %v6206_v62  ;;  %v3285_v9 = vld [vmem:[%s10324_s4 + $0xaf8] sm:$0xff]  ;;  %v3286_v62 = vld [vmem:[%s10324_s4 + $0xb00] sm:$0xff]  ;;  %v3288_v27 = vld [vmem:[%s10324_s4 + $0xb10] sm:$0xff] }
  0xcd   : > { %v6387_v53 = vadd.f32 %v1053_v13, %v6209_v18  ;;  %v6390_v16 = vadd.f32 %v1054_v3, %v6212_v54  ;;  %v6393_v19 = vadd.f32 %v1055_v51, %v6224_v48  ;;  %v6396_v55 = vadd.f32 %v1056_v7, %v6227_v20  ;;  %v3287_v18 = vld [vmem:[%s10324_s4 + $0xb08] sm:$0xff]  ;;  %v3292_v15 = vld [vmem:[%s10324_s4 + $0xb30] sm:$0xff]  ;;  %v3294_v13 = vld [vmem:[%s10324_s4 + $0xb40] sm:$0xff] }
  0xce   : > { %v6408_v54 = vadd.f32 %v1057_v29, %v6230_v0  ;;  %v6411_v48 = vadd.f32 %v1058_v60, %v6233_v14  ;;  %v6414_v20 = vadd.f32 %v1059_v39, %v6245_v56  ;;  %v6417_v43 = vadd.f32 %v1060_v22, %v6248_v41  ;;  %v3290_v0 = vld [vmem:[%s10324_s4 + $0xb20] sm:$0xff]  ;;  %v3291_v2 = vld [vmem:[%s10324_s4 + $0xb28] sm:$0xff]  ;;  %v3301_v51 = vld [vmem:[%s10324_s4 + $0xb78] sm:$0xff] }
  0xcf   : > { %v6429_v14 = vadd.f32 %v1061_v36, %v6251_v46  ;;  %v6432_v56 = vadd.f32 %v1062_v57, %v6254_v49  ;;  %v6435_v41 = vadd.f32 %v1063_v1, %v6266_v59  ;;  %v6438_v50 = vadd.f32 %v1064_v44, %v6269_v28  ;;  %v3293_v46 = vld [vmem:[%s10324_s4 + $0xb38] sm:$0xff]  ;;  %v3302_v7 = vld [vmem:[%s10324_s4 + $0xb80] sm:$0xff]  ;;  %v3303_v22 = vld [vmem:[%s10324_s4 + $0xb88] sm:$0xff] }
  0xd0   : > { %v6450_v49 = vadd.f32 %v1065_v10, %v6272_v24  ;;  %v6453_v59 = vadd.f32 %v1066_v42, %v6275_v38  ;;  %v6456_v28 = vadd.f32 %v1067_v12, %v6287_v40  ;;  %v6459_v21 = vadd.f32 %v1068_v61, %v6290_v45  ;;  %v3296_v24 = vld [vmem:[%s10324_s4 + $0xb50] sm:$0xff]  ;;  %v3297_v40 = vld [vmem:[%s10324_s4 + $0xb58] sm:$0xff]  ;;  %v3298_v45 = vld [vmem:[%s10324_s4 + $0xb60] sm:$0xff] }
  0xd1   : > { %v6471_v38 = vadd.f32 %v1069_v33, %v6293_v35  ;;  %v6474_v12 = vadd.f32 %v1070_v4, %v6296_v63  ;;  %v1122_v3 = vmul.f32 %v3284_v34, %v4885_v47  ;;  %v1123_v35 = vmul.f32 %v3285_v9, %v4885_v47  ;;  %v3300_v63 = vld [vmem:[%s10324_s4 + $0xb70] sm:$0xff]  ;;  %v3305_v57 = vld [vmem:[%s10324_s4 + $0xb98] sm:$0xff]  ;;  %v3306_v61 = vld [vmem:[%s10324_s4 + $0xba0] sm:$0xff] }
  0xd2   : > { %v1124_v29 = vmul.f32 %v3286_v62, %v4885_v47  ;;  %v1125_v8 = vmul.f32 %v3287_v18, %v4885_v47  ;;  %v1126_v60 = vmul.f32 %v3288_v27, %v4885_v47  ;;  %v1127_v39 = vmul.f32 %v3289_v23, %v4885_v47  ;;  %v3304_v36 = vld [vmem:[%s10324_s4 + $0xb90] sm:$0xff]  ;;  %v3307_v33 = vld [vmem:[%s10324_s4 + $0xba8] sm:$0xff] }
  0xd3   : > { %v1128_v1 = vmul.f32 %v3290_v0, %v4885_v47  ;;  %v1129_v44 = vmul.f32 %v3291_v2, %v4885_v47  ;;  %v1130_v10 = vmul.f32 %v3292_v15, %v4885_v47  ;;  %v1131_v42 = vmul.f32 %v3293_v46, %v4885_v47  ;;  %v3308_v4 = vld [vmem:[%s10324_s4 + $0xbb0] sm:$0xf] }
  0xd4   : > { %v1132_v34 = vmul.f32 %v3294_v13, %v4885_v47  ;;  %v1133_v9 = vmul.f32 %v3295_v5, %v4885_v47  ;;  %v1134_v62 = vmul.f32 %v3296_v24, %v4885_v47  ;;  %v1135_v18 = vmul.f32 %v3297_v40, %v4885_v47 }
  0xd5   : > { %v1136_v27 = vmul.f32 %v3298_v45, %v4885_v47  ;;  %v1137_v23 = vmul.f32 %v3299_v30, %v4885_v47  ;;  %v1138_v0 = vmul.f32 %v3300_v63, %v4885_v47  ;;  %v1139_v2 = vmul.f32 %v3301_v51, %v4885_v47 }
  0xd6   : > { %v1140_v15 = vmul.f32 %v3302_v7, %v4885_v47  ;;  %v1141_v46 = vmul.f32 %v3303_v22, %v4885_v47  ;;  %v1142_v13 = vmul.f32 %v3304_v36, %v4885_v47  ;;  %v1143_v5 = vmul.f32 %v3305_v57, %v4885_v47 }
  0xd7   : > { %v1144_v24 = vmul.f32 %v3306_v61, %v4885_v47  ;;  %v1145_v40 = vmul.f32 %v3307_v33, %v4885_v47  ;;  %v1146_v45 = vmul.f32 %v3308_v4, %v4885_v47  ;;  %v6538_v30 = vadd.f32 %v1122_v3, %v6363_v58  ;;  %v3312_v3 = vld [vmem:[%s10324_s4 + $0xbd0] sm:$0xff]  ;;  %v3322_v61 = vld [vmem:[%s10324_s4 + $0xc20] sm:$0xff] }
  0xd8   : > { %v6541_v63 = vadd.f32 %v1123_v35, %v6366_v52  ;;  %v6544_v51 = vadd.f32 %v1124_v29, %v6369_v31  ;;  %v6547_v7 = vadd.f32 %v1125_v8, %v6372_v17  ;;  %v6550_v22 = vadd.f32 %v1126_v60, %v6375_v25  ;;  %v3309_v31 = vld [vmem:[%s10324_s4 + $0xbb8] sm:$0xff]  ;;  %v3310_v17 = vld [vmem:[%s10324_s4 + $0xbc0] sm:$0xff]  ;;  %v3311_v25 = vld [vmem:[%s10324_s4 + $0xbc8] sm:$0xff] }
  0xd9   : > { %v6553_v36 = vadd.f32 %v1127_v39, %v6378_v26  ;;  %v6556_v57 = vadd.f32 %v1128_v1, %v6381_v11  ;;  %v6559_v58 = vadd.f32 %v1129_v44, %v6387_v53  ;;  %v6562_v52 = vadd.f32 %v1130_v10, %v6390_v16  ;;  %v3313_v35 = vld [vmem:[%s10324_s4 + $0xbd8] sm:$0xff]  ;;  %v3315_v8 = vld [vmem:[%s10324_s4 + $0xbe8] sm:$0xff]  ;;  %v3316_v60 = vld [vmem:[%s10324_s4 + $0xbf0] sm:$0xff] }
  0xda   : > { %v6574_v26 = vadd.f32 %v1131_v42, %v6393_v19  ;;  %v6577_v11 = vadd.f32 %v1132_v34, %v6396_v55  ;;  %v6580_v53 = vadd.f32 %v1133_v9, %v6408_v54  ;;  %v6583_v16 = vadd.f32 %v1134_v62, %v6411_v48  ;;  %v3314_v19 = vld [vmem:[%s10324_s4 + $0xbe0] sm:$0xff]  ;;  %v3319_v44 = vld [vmem:[%s10324_s4 + $0xc08] sm:$0xff]  ;;  %v3321_v42 = vld [vmem:[%s10324_s4 + $0xc18] sm:$0xff] }
  0xdb   : > { %v6595_v55 = vadd.f32 %v1135_v18, %v6414_v20  ;;  %v6598_v54 = vadd.f32 %v1136_v27, %v6417_v43  ;;  %v6601_v48 = vadd.f32 %v1137_v23, %v6429_v14  ;;  %v6604_v29 = vadd.f32 %v1138_v0, %v6432_v56  ;;  %v3317_v20 = vld [vmem:[%s10324_s4 + $0xbf8] sm:$0xff]  ;;  %v3318_v1 = vld [vmem:[%s10324_s4 + $0xc00] sm:$0xff]  ;;  %v3327_v18 = vld [vmem:[%s10324_s4 + $0xc48] sm:$0xff] }
  0xdc   : > { %v6616_v43 = vadd.f32 %v1139_v2, %v6435_v41  ;;  %v6619_v14 = vadd.f32 %v1140_v15, %v6438_v50  ;;  %v6622_v56 = vadd.f32 %v1141_v46, %v6450_v49  ;;  %v6625_v39 = vadd.f32 %v1142_v13, %v6453_v59  ;;  %v3320_v41 = vld [vmem:[%s10324_s4 + $0xc10] sm:$0xff]  ;;  %v10441_v33 = vld [vmem:[#allocation16_spill] sm:$0xff]  ;;  %v3329_v23 = vld [vmem:[%s10324_s4 + $0xc58] sm:$0xff] }
  0xdd   : > { %v6637_v50 = vadd.f32 %v1143_v5, %v6456_v28  ;;  %v6640_v49 = vadd.f32 %v1144_v24, %v6459_v21  ;;  %v6643_v59 = vadd.f32 %v1145_v40, %v6471_v38  ;;  %v6646_v10 = vadd.f32 %v1146_v45, %v6474_v12  ;;  %v3323_v28 = vld [vmem:[%s10324_s4 + $0xc28] sm:$0xff]  ;;  %v3324_v21 = vld [vmem:[%s10324_s4 + $0xc30] sm:$0xff]  ;;  %v3325_v38 = vld [vmem:[%s10324_s4 + $0xc38] sm:$0xff] }
  0xde   : > { %v3326_v12 = vld [vmem:[%s10324_s4 + $0xc40] sm:$0xff]  ;;  %v1198_v4 = vmul.f32 %v3309_v31, %v10441_v33  ;;  %v1199_v34 = vmul.f32 %v3310_v17, %v10441_v33  ;;  %v1200_v9 = vmul.f32 %v3311_v25, %v10441_v33  ;;  %v1201_v62 = vmul.f32 %v3312_v3, %v10441_v33  ;;  %v3328_v27 = vld [vmem:[%s10324_s4 + $0xc50] sm:$0xff]  ;;  %v3331_v5 = vld [vmem:[%s10324_s4 + $0xc68] sm:$0xff] }
  0xdf   : > { %v1202_v0 = vmul.f32 %v3313_v35, %v10441_v33  ;;  %v1203_v2 = vmul.f32 %v3314_v19, %v10441_v33  ;;  %v1204_v15 = vmul.f32 %v3315_v8, %v10441_v33  ;;  %v1205_v46 = vmul.f32 %v3316_v60, %v10441_v33  ;;  %v3330_v13 = vld [vmem:[%s10324_s4 + $0xc60] sm:$0xff]  ;;  %v3332_v24 = vld [vmem:[%s10324_s4 + $0xc70] sm:$0xff]  ;;  %v3333_v25 = vld [vmem:[%s10324_s4 + $0xc78] sm:$0xf] }
  0xe0   : > { %v1206_v40 = vmul.f32 %v3317_v20, %v10441_v33  ;;  %v1207_v45 = vmul.f32 %v3318_v1, %v10441_v33  ;;  %v1208_v31 = vmul.f32 %v3319_v44, %v10441_v33  ;;  %v1209_v17 = vmul.f32 %v3320_v41, %v10441_v33 }
  0xe1   : > { %v1210_v3 = vmul.f32 %v3321_v42, %v10441_v33  ;;  %v1211_v35 = vmul.f32 %v3322_v61, %v10441_v33  ;;  %v1212_v19 = vmul.f32 %v3323_v28, %v10441_v33  ;;  %v1213_v8 = vmul.f32 %v3324_v21, %v10441_v33 }
  0xe2   : > { %v1214_v60 = vmul.f32 %v3325_v38, %v10441_v33  ;;  %v1215_v20 = vmul.f32 %v3326_v12, %v10441_v33  ;;  %v1216_v1 = vmul.f32 %v3327_v18, %v10441_v33  ;;  %v1217_v44 = vmul.f32 %v3328_v27, %v10441_v33 }
  0xe3   : > { %v1218_v41 = vmul.f32 %v3329_v23, %v10441_v33  ;;  %v1219_v47 = vmul.f32 %v3330_v13, %v10441_v33  ;;  %v1220_v42 = vmul.f32 %v3331_v5, %v10441_v33  ;;  %v1221_v61 = vmul.f32 %v3332_v24, %v10441_v33  ;;  %v3345_v5 = vld [vmem:[%s10324_s4 + $0xcd8] sm:$0xff] }
  0xe4   : > { %v1222_v28 = vmul.f32 %v3333_v25, %v10441_v33  ;;  %v6713_v21 = vadd.f32 %v1198_v4, %v6538_v30  ;;  %v6716_v38 = vadd.f32 %v1199_v34, %v6541_v63  ;;  %v6719_v12 = vadd.f32 %v1200_v9, %v6544_v51  ;;  %v3334_v30 = vld [vmem:[%s10324_s4 + $0xc80] sm:$0xff]  ;;  %v3339_v9 = vld [vmem:[%s10324_s4 + $0xca8] sm:$0xff]  ;;  %v3349_v24 = vld [vmem:[%s10324_s4 + $0xcf8] sm:$0xff] }
  0xe5   : > { %v6722_v18 = vadd.f32 %v1201_v62, %v6547_v7  ;;  %v6725_v27 = vadd.f32 %v1202_v0, %v6550_v22  ;;  %v6728_v23 = vadd.f32 %v1203_v2, %v6553_v36  ;;  %v6731_v13 = vadd.f32 %v1204_v15, %v6556_v57  ;;  %v3335_v36 = vld [vmem:[%s10324_s4 + $0xc88] sm:$0xff]  ;;  %v3336_v57 = vld [vmem:[%s10324_s4 + $0xc90] sm:$0xff]  ;;  %v3338_v34 = vld [vmem:[%s10324_s4 + $0xca0] sm:$0xff] }
  0xe6   : > { %v6737_v63 = vadd.f32 %v1205_v46, %v6559_v58  ;;  %v6740_v51 = vadd.f32 %v1206_v40, %v6562_v52  ;;  %v6743_v7 = vadd.f32 %v1207_v45, %v6574_v26  ;;  %v6746_v22 = vadd.f32 %v1208_v31, %v6577_v11  ;;  %v3337_v58 = vld [vmem:[%s10324_s4 + $0xc98] sm:$0xff]  ;;  %v3342_v2 = vld [vmem:[%s10324_s4 + $0xcc0] sm:$0xff]  ;;  %v3344_v46 = vld [vmem:[%s10324_s4 + $0xcd0] sm:$0xff] }
  0xe7   : > { %v6758_v52 = vadd.f32 %v1209_v17, %v6580_v53  ;;  %v6761_v26 = vadd.f32 %v1210_v3, %v6583_v16  ;;  %v6764_v11 = vadd.f32 %v1211_v35, %v6595_v55  ;;  %v6767_v4 = vadd.f32 %v1212_v19, %v6598_v54  ;;  %v3340_v53 = vld [vmem:[%s10324_s4 + $0xcb0] sm:$0xff]  ;;  %v3341_v0 = vld [vmem:[%s10324_s4 + $0xcb8] sm:$0xff]  ;;  %v10442_v40 = vld [vmem:[#allocation17_spill] sm:$0xff] }
  0xe8   : > { %v6779_v16 = vadd.f32 %v1213_v8, %v6601_v48  ;;  %v6782_v55 = vadd.f32 %v1214_v60, %v6604_v29  ;;  %v6785_v54 = vadd.f32 %v1215_v20, %v6616_v43  ;;  %v6788_v62 = vadd.f32 %v1216_v1, %v6619_v14  ;;  %v3343_v48 = vld [vmem:[%s10324_s4 + $0xcc8] sm:$0xff]  ;;  %v3352_v17 = vld [vmem:[%s10324_s4 + $0xd10] sm:$0xff]  ;;  %v3353_v8 = vld [vmem:[%s10324_s4 + $0xd18] sm:$0xff] }
  0xe9   : > { %v6800_v29 = vadd.f32 %v1217_v44, %v6622_v56  ;;  %v6803_v43 = vadd.f32 %v1218_v41, %v6625_v39  ;;  %v6806_v14 = vadd.f32 %v1219_v47, %v6637_v50  ;;  %v6809_v15 = vadd.f32 %v1220_v42, %v6640_v49  ;;  %v3346_v56 = vld [vmem:[%s10324_s4 + $0xce0] sm:$0xff]  ;;  %v3347_v50 = vld [vmem:[%s10324_s4 + $0xce8] sm:$0xff]  ;;  %v3348_v49 = vld [vmem:[%s10324_s4 + $0xcf0] sm:$0xff] }
  0xea   : > { %v6821_v39 = vadd.f32 %v1221_v61, %v6643_v59  ;;  %v6824_v47 = vadd.f32 %v1222_v28, %v6646_v10  ;;  %v1274_v45 = vmul.f32 %v3334_v30, %v10442_v40  ;;  %v1275_v59 = vmul.f32 %v3335_v36, %v10442_v40  ;;  %v3350_v10 = vld [vmem:[%s10324_s4 + $0xd00] sm:$0xff]  ;;  %v3351_v31 = vld [vmem:[%s10324_s4 + $0xd08] sm:$0xff]  ;;  %v3356_v61 = vld [vmem:[%s10324_s4 + $0xd30] sm:$0xff] }
  0xeb   : > { %v1276_v25 = vmul.f32 %v3336_v57, %v10442_v40  ;;  %v1277_v3 = vmul.f32 %v3337_v58, %v10442_v40  ;;  %v1278_v35 = vmul.f32 %v3338_v34, %v10442_v40  ;;  %v1279_v19 = vmul.f32 %v3339_v9, %v10442_v40  ;;  %v3354_v60 = vld [vmem:[%s10324_s4 + $0xd20] sm:$0xff]  ;;  %v3355_v20 = vld [vmem:[%s10324_s4 + $0xd28] sm:$0xff]  ;;  %v3357_v28 = vld [vmem:[%s10324_s4 + $0xd38] sm:$0xff] }
  0xec   : > { %v1280_v1 = vmul.f32 %v3340_v53, %v10442_v40  ;;  %v1281_v44 = vmul.f32 %v3341_v0, %v10442_v40  ;;  %v1282_v41 = vmul.f32 %v3342_v2, %v10442_v40  ;;  %v1283_v42 = vmul.f32 %v3343_v48, %v10442_v40  ;;  %v3358_v30 = vld [vmem:[%s10324_s4 + $0xd40] sm:$0xf] }
  0xed   : > { %v1284_v36 = vmul.f32 %v3344_v46, %v10442_v40  ;;  %v1285_v57 = vmul.f32 %v3345_v5, %v10442_v40  ;;  %v1286_v58 = vmul.f32 %v3346_v56, %v10442_v40  ;;  %v1287_v34 = vmul.f32 %v3347_v50, %v10442_v40 }
  0xee   : > { %v1288_v9 = vmul.f32 %v3348_v49, %v10442_v40  ;;  %v1289_v53 = vmul.f32 %v3349_v24, %v10442_v40  ;;  %v1290_v0 = vmul.f32 %v3350_v10, %v10442_v40  ;;  %v1291_v2 = vmul.f32 %v3351_v31, %v10442_v40 }
  0xef   : > { %v1292_v48 = vmul.f32 %v3352_v17, %v10442_v40  ;;  %v1293_v33 = vmul.f32 %v3353_v8, %v10442_v40  ;;  %v1294_v46 = vmul.f32 %v3354_v60, %v10442_v40  ;;  %v1295_v5 = vmul.f32 %v3355_v20, %v10442_v40 }
  0xf0   : > { %v1296_v56 = vmul.f32 %v3356_v61, %v10442_v40  ;;  %v1297_v50 = vmul.f32 %v3357_v28, %v10442_v40  ;;  %v1298_v49 = vmul.f32 %v3358_v30, %v10442_v40  ;;  %v6888_v24 = vadd.f32 %v1274_v45, %v6713_v21  ;;  %v3362_v45 = vld [vmem:[%s10324_s4 + $0xd60] sm:$0xff] }
  0xf1   : > { %v6891_v10 = vadd.f32 %v1275_v59, %v6716_v38  ;;  %v6894_v31 = vadd.f32 %v1276_v25, %v6719_v12  ;;  %v6897_v17 = vadd.f32 %v1277_v3, %v6722_v18  ;;  %v6900_v8 = vadd.f32 %v1278_v35, %v6725_v27  ;;  %v3359_v12 = vld [vmem:[%s10324_s4 + $0xd48] sm:$0xff]  ;;  %v3360_v18 = vld [vmem:[%s10324_s4 + $0xd50] sm:$0xff]  ;;  %v3361_v27 = vld [vmem:[%s10324_s4 + $0xd58] sm:$0xff] }
  0xf2   : > { %v6903_v60 = vadd.f32 %v1279_v19, %v6728_v23  ;;  %v6906_v20 = vadd.f32 %v1280_v1, %v6731_v13  ;;  %v6909_v21 = vadd.f32 %v1281_v44, %v6737_v63  ;;  %v6912_v38 = vadd.f32 %v1282_v41, %v6740_v51  ;;  %v3363_v59 = vld [vmem:[%s10324_s4 + $0xd68] sm:$0xff]  ;;  %v3365_v3 = vld [vmem:[%s10324_s4 + $0xd78] sm:$0xff]  ;;  %v3366_v35 = vld [vmem:[%s10324_s4 + $0xd80] sm:$0xff] }
  0xf3   : > { %v6924_v23 = vadd.f32 %v1283_v42, %v6743_v7  ;;  %v6927_v13 = vadd.f32 %v1284_v36, %v6746_v22  ;;  %v6930_v63 = vadd.f32 %v1285_v57, %v6758_v52  ;;  %v6933_v51 = vadd.f32 %v1286_v58, %v6761_v26  ;;  %v3364_v7 = vld [vmem:[%s10324_s4 + $0xd70] sm:$0xff]  ;;  %v3369_v44 = vld [vmem:[%s10324_s4 + $0xd98] sm:$0xff]  ;;  %v3371_v41 = vld [vmem:[%s10324_s4 + $0xda8] sm:$0xff] }
  0xf4   : > { %v6945_v22 = vadd.f32 %v1287_v34, %v6764_v11  ;;  %v6948_v52 = vadd.f32 %v1288_v9, %v6767_v4  ;;  %v6951_v26 = vadd.f32 %v1289_v53, %v6779_v16  ;;  %v6954_v25 = vadd.f32 %v1290_v0, %v6782_v55  ;;  %v3367_v11 = vld [vmem:[%s10324_s4 + $0xd88] sm:$0xff]  ;;  %v3368_v1 = vld [vmem:[%s10324_s4 + $0xd90] sm:$0xff]  ;;  %v3377_v57 = vld [vmem:[%s10324_s4 + $0xdd8] sm:$0xff] }
  0xf5   : > { %v6966_v4 = vadd.f32 %v1291_v2, %v6785_v54  ;;  %v6969_v16 = vadd.f32 %v1292_v48, %v6788_v62  ;;  %v6972_v55 = vadd.f32 %v1293_v33, %v6800_v29  ;;  %v6975_v19 = vadd.f32 %v1294_v46, %v6803_v43  ;;  %v3370_v54 = vld [vmem:[%s10324_s4 + $0xda0] sm:$0xff]  ;;  %v3372_v42 = vld [vmem:[%s10324_s4 + $0xdb0] sm:$0xff]  ;;  %v3379_v34 = vld [vmem:[%s10324_s4 + $0xde8] sm:$0xff] }
  0xf6   : > { %v6987_v62 = vadd.f32 %v1295_v5, %v6806_v14  ;;  %v6990_v33 = vadd.f32 %v1296_v56, %v6809_v15  ;;  %v6993_v29 = vadd.f32 %v1297_v50, %v6821_v39  ;;  %v6996_v43 = vadd.f32 %v1298_v49, %v6824_v47  ;;  %v3373_v14 = vld [vmem:[%s10324_s4 + $0xdb8] sm:$0xff]  ;;  %v3374_v15 = vld [vmem:[%s10324_s4 + $0xdc0] sm:$0xff]  ;;  %v3375_v39 = vld [vmem:[%s10324_s4 + $0xdc8] sm:$0xff] }
  0xf7   : > { %v3376_v47 = vld [vmem:[%s10324_s4 + $0xdd0] sm:$0xff]  ;;  %v1350_v61 = vmul.f32 %v3359_v12, %v5419_v37  ;;  %v1351_v28 = vmul.f32 %v3360_v18, %v5419_v37  ;;  %v1352_v30 = vmul.f32 %v3361_v27, %v5419_v37  ;;  %v1353_v36 = vmul.f32 %v3362_v45, %v5419_v37  ;;  %v3378_v58 = vld [vmem:[%s10324_s4 + $0xde0] sm:$0xff]  ;;  %v3381_v46 = vld [vmem:[%s10324_s4 + $0xdf8] sm:$0xff] }
  0xf8   : > { %v1354_v9 = vmul.f32 %v3363_v59, %v5419_v37  ;;  %v1355_v53 = vmul.f32 %v3364_v7, %v5419_v37  ;;  %v1356_v0 = vmul.f32 %v3365_v3, %v5419_v37  ;;  %v1357_v2 = vmul.f32 %v3366_v35, %v5419_v37  ;;  %v3380_v48 = vld [vmem:[%s10324_s4 + $0xdf0] sm:$0xff]  ;;  %v3382_v5 = vld [vmem:[%s10324_s4 + $0xe00] sm:$0xff]  ;;  %v3383_v18 = vld [vmem:[%s10324_s4 + $0xe08] sm:$0xf] }
  0xf9   : > { %v1358_v56 = vmul.f32 %v3367_v11, %v5419_v37  ;;  %v1359_v50 = vmul.f32 %v3368_v1, %v5419_v37  ;;  %v1360_v49 = vmul.f32 %v3369_v44, %v5419_v37  ;;  %v1361_v12 = vmul.f32 %v3370_v54, %v5419_v37 }
  0xfa   : > { %v1362_v27 = vmul.f32 %v3371_v41, %v5419_v37  ;;  %v1363_v45 = vmul.f32 %v3372_v42, %v5419_v37  ;;  %v1364_v59 = vmul.f32 %v3373_v14, %v5419_v37  ;;  %v1365_v7 = vmul.f32 %v3374_v15, %v5419_v37 }
  0xfb   : > { %v1366_v3 = vmul.f32 %v3375_v39, %v5419_v37  ;;  %v1367_v35 = vmul.f32 %v3376_v47, %v5419_v37  ;;  %v1368_v11 = vmul.f32 %v3377_v57, %v5419_v37  ;;  %v1369_v1 = vmul.f32 %v3378_v58, %v5419_v37 }
  0xfc   : > { %v1370_v44 = vmul.f32 %v3379_v34, %v5419_v37  ;;  %v1371_v54 = vmul.f32 %v3380_v48, %v5419_v37  ;;  %v1372_v41 = vmul.f32 %v3381_v46, %v5419_v37  ;;  %v1373_v42 = vmul.f32 %v3382_v5, %v5419_v37  ;;  %v3398_v5 = vld [vmem:[%s10324_s4 + $0xe80] sm:$0xff] }
  0xfd   : > { %v1374_v14 = vmul.f32 %v3383_v18, %v5419_v37  ;;  %v7063_v15 = vadd.f32 %v1350_v61, %v6888_v24  ;;  %v7066_v39 = vadd.f32 %v1351_v28, %v6891_v10  ;;  %v7069_v47 = vadd.f32 %v1352_v30, %v6894_v31  ;;  %v3386_v18 = vld [vmem:[%s10324_s4 + $0xe20] sm:$0xff]  ;;  %v3395_v28 = vld [vmem:[%s10324_s4 + $0xe68] sm:$0xff]  ;;  %v3400_v61 = vld [vmem:[%s10324_s4 + $0xe90] sm:$0xff] }
  0xfe   : > { %v7072_v57 = vadd.f32 %v1353_v36, %v6897_v17  ;;  %v7075_v58 = vadd.f32 %v1354_v9, %v6900_v8  ;;  %v7078_v34 = vadd.f32 %v1355_v53, %v6903_v60  ;;  %v7081_v48 = vadd.f32 %v1356_v0, %v6906_v20  ;;  %v3385_v53 = vld [vmem:[%s10324_s4 + $0xe18] sm:$0xff]  ;;  %v3394_v30 = vld [vmem:[%s10324_s4 + $0xe60] sm:$0xff] }
  0xff   : > { %10443 = vst [vmem:[#allocation17_spill] sm:$0xff] %v7063_v15  ;;  %10444 = vst [vmem:[#allocation44_spill] sm:$0xff] %v7066_v39  ;;  %v7084_v24 = vadd.f32 %v1357_v2, %v6909_v21  ;;  %v7087_v10 = vadd.f32 %v1358_v56, %v6912_v38  ;;  %v7090_v31 = vadd.f32 %v1359_v50, %v6924_v23  ;;  %v3397_v50 = vld [vmem:[%s10324_s4 + $0xe78] sm:$0xff]  ;;  %v3402_v9 = vld [vmem:[%s10324_s4 + $0xea0] sm:$0xff] }
 0x100   : > { %10445 = vst [vmem:[#allocation45_spill] sm:$0xff] %v7069_v47  ;;  %10446 = vst [vmem:[#allocation46_spill] sm:$0xff] %v7072_v57  ;;  %v7093_v17 = vadd.f32 %v1360_v49, %v6927_v13  ;;  %v7096_v8 = vadd.f32 %v1361_v12, %v6930_v63  ;;  %v7099_v60 = vadd.f32 %v1362_v27, %v6933_v51  ;;  %v3387_v27 = vld [vmem:[%s10324_s4 + $0xe28] sm:$0xff]  ;;  %v3396_v12 = vld [vmem:[%s10324_s4 + $0xe70] sm:$0xff] }
 0x101   : > { %10447 = vst [vmem:[#allocation47_spill] sm:$0xff] %v7075_v58  ;;  %10448 = vst [vmem:[#allocation48_spill] sm:$0xff] %v7078_v34  ;;  %v7102_v20 = vadd.f32 %v1363_v45, %v6945_v22  ;;  %v7105_v21 = vadd.f32 %v1364_v59, %v6948_v52  ;;  %v7108_v38 = vadd.f32 %v1365_v7, %v6951_v26  ;;  %v3388_v45 = vld [vmem:[%s10324_s4 + $0xe30] sm:$0xff]  ;;  %v3389_v59 = vld [vmem:[%s10324_s4 + $0xe38] sm:$0xff] }
 0x102   : > { %10449 = vst [vmem:[#allocation49_spill] sm:$0xff] %v7081_v48  ;;  %10450 = vst [vmem:[#allocation50_spill] sm:$0xff] %v7084_v24  ;;  %v7111_v23 = vadd.f32 %v1366_v3, %v6954_v25  ;;  %v7114_v13 = vadd.f32 %v1367_v35, %v6966_v4  ;;  %v7117_v63 = vadd.f32 %v1368_v11, %v6969_v16  ;;  %v3392_v3 = vld [vmem:[%s10324_s4 + $0xe50] sm:$0xff]  ;;  %v3393_v11 = vld [vmem:[%s10324_s4 + $0xe58] sm:$0xff] }
 0x103   : > { %10451 = vst [vmem:[#allocation51_spill] sm:$0xff] %v7087_v10  ;;  %10452 = vst [vmem:[#allocation52_spill] sm:$0xff] %v7090_v31  ;;  %v7120_v51 = vadd.f32 %v1369_v1, %v6972_v55  ;;  %v7123_v22 = vadd.f32 %v1370_v44, %v6975_v19  ;;  %v7126_v52 = vadd.f32 %v1371_v54, %v6987_v62  ;;  %v3401_v16 = vld [vmem:[%s10324_s4 + $0xe98] sm:$0xff]  ;;  %v3419_v7 = vld [vmem:[%s10324_s4 + $0xf28] sm:$0xff] }
 0x104   : > { %10453 = vst [vmem:[#allocation53_spill] sm:$0xff] %v7093_v17  ;;  %10454 = vst [vmem:[#allocation54_spill] sm:$0xff] %v7096_v8  ;;  %v7129_v26 = vadd.f32 %v1372_v41, %v6990_v33  ;;  %v7132_v25 = vadd.f32 %v1373_v42, %v6993_v29  ;;  %v7135_v4 = vadd.f32 %v1374_v14, %v6996_v43  ;;  %v3384_v43 = vld [vmem:[%s10324_s4 + $0xe10] sm:$0xff]  ;;  %v3390_v42 = vld [vmem:[%s10324_s4 + $0xe40] sm:$0xff] }
 0x105   : > { %10455 = vst [vmem:[#allocation55_spill] sm:$0xff] %v7099_v60  ;;  %10456 = vst [vmem:[#allocation56_spill] sm:$0xff] %v7102_v20  ;;  %v3391_v14 = vld [vmem:[%s10324_s4 + $0xe48] sm:$0xff]  ;;  %v3405_v36 = vld [vmem:[%s10324_s4 + $0xeb8] sm:$0xff] }
 0x106   : > { %10457 = vst [vmem:[#allocation57_spill] sm:$0xff] %v7105_v21  ;;  %10458 = vst [vmem:[#allocation58_spill] sm:$0xff] %v7108_v38  ;;  %v3399_v38 = vld [vmem:[%s10324_s4 + $0xe88] sm:$0xff]  ;;  %v3409_v41 = vld [vmem:[%s10324_s4 + $0xed8] sm:$0xff] }
 0x107   : > { %10459 = vst [vmem:[#allocation59_spill] sm:$0xff] %v7111_v23  ;;  %10460 = vst [vmem:[#allocation60_spill] sm:$0xff] %v7114_v13  ;;  %v3407_v23 = vld [vmem:[%s10324_s4 + $0xec8] sm:$0xff]  ;;  %v3408_v13 = vld [vmem:[%s10324_s4 + $0xed0] sm:$0xf] }
 0x108   : > { %10461 = vst [vmem:[#allocation61_spill] sm:$0xff] %v7117_v63  ;;  %10462 = vst [vmem:[#allocation62_spill] sm:$0xff] %v7120_v51  ;;  %v3404_v51 = vld [vmem:[%s10324_s4 + $0xeb0] sm:$0xff]  ;;  %v3413_v54 = vld [vmem:[%s10324_s4 + $0xef8] sm:$0xff] }
 0x109   : > { %10463 = vst [vmem:[#allocation63_spill] sm:$0xff] %v7123_v22  ;;  %10464 = vst [vmem:[#allocation64_spill] sm:$0xff] %v7126_v52  ;;  %v10491_v22 = vld [vmem:[#allocation10_spill] sm:$0xff]  ;;  %v3414_v60 = vld [vmem:[%s10324_s4 + $0xf00] sm:$0xff] }
 0x10a   : > { %10465 = vst [vmem:[#allocation65_spill] sm:$0xff] %v7129_v26  ;;  %10466 = vst [vmem:[#allocation66_spill] sm:$0xff] %v7132_v25  ;;  %v7252_v26 = vmul.f32 %v3384_v43, %v10491_v22  ;;  %v7255_v52 = vmul.f32 %v3385_v53, %v10491_v22  ;;  %v3406_v25 = vld [vmem:[%s10324_s4 + $0xec0] sm:$0xff]  ;;  %v7267_v63 = vmul.f32 %v3386_v18, %v10491_v22  ;;  %v3416_v8 = vld [vmem:[%s10324_s4 + $0xf10] sm:$0xff] }
 0x10b   : > { %10467 = vst [vmem:[#allocation67_spill] sm:$0xff] %v7135_v4  ;;  %v3403_v4 = vld [vmem:[%s10324_s4 + $0xea8] sm:$0xff]  ;;  %v7270_v43 = vmul.f32 %v3387_v27, %v10491_v22  ;;  %v7273_v53 = vmul.f32 %v3388_v45, %v10491_v22  ;;  %v7276_v2 = vmul.f32 %v3389_v59, %v10491_v22  ;;  %v7282_v21 = vmul.f32 %v3390_v42, %v10491_v22  ;;  %v3410_v45 = vld [vmem:[%s10324_s4 + $0xee0] sm:$0xff]  ;;  %v3412_v42 = vld [vmem:[%s10324_s4 + $0xef0] sm:$0xff] }
 0x10c   : > { %v7285_v44 = vmul.f32 %v3391_v14, %v10491_v22  ;;  %v7288_v18 = vmul.f32 %v3392_v3, %v10491_v22  ;;  %v7291_v27 = vmul.f32 %v3393_v11, %v10491_v22  ;;  %v3411_v59 = vld [vmem:[%s10324_s4 + $0xee8] sm:$0xff]  ;;  %v7303_v14 = vmul.f32 %v3394_v30, %v10491_v22  ;;  %v3417_v35 = vld [vmem:[%s10324_s4 + $0xf18] sm:$0xff]  ;;  %v3420_v31 = vld [vmem:[%s10324_s4 + $0xf30] sm:$0xff] }
 0x10d   : > { %v7306_v3 = vmul.f32 %v3395_v28, %v10491_v22  ;;  %v7309_v11 = vmul.f32 %v3396_v12, %v10491_v22  ;;  %v7312_v20 = vmul.f32 %v3397_v50, %v10491_v22  ;;  %v3415_v30 = vld [vmem:[%s10324_s4 + $0xf08] sm:$0xff]  ;;  %v7324_v28 = vmul.f32 %v3398_v5, %v10491_v22  ;;  %v3418_v5 = vld [vmem:[%s10324_s4 + $0xf20] sm:$0xff]  ;;  %v3424_v56 = vld [vmem:[%s10324_s4 + $0xf50] sm:$0xff] }
 0x10e   : > { %v7327_v12 = vmul.f32 %v3399_v38, %v10491_v22  ;;  %v7330_v50 = vmul.f32 %v3400_v61, %v10491_v22  ;;  %v7333_v1 = vmul.f32 %v3401_v16, %v10491_v22  ;;  %v7345_v38 = vmul.f32 %v3402_v9, %v10491_v22  ;;  %v3421_v9 = vld [vmem:[%s10324_s4 + $0xf38] sm:$0xff]  ;;  %v3422_v49 = vld [vmem:[%s10324_s4 + $0xf40] sm:$0xff]  ;;  %v3423_v10 = vld [vmem:[%s10324_s4 + $0xf48] sm:$0xff] }
 0x10f   : > { %v7348_v61 = vmul.f32 %v3403_v4, %v10491_v22  ;;  %v7351_v16 = vmul.f32 %v3404_v51, %v10491_v22  ;;  %v7354_v17 = vmul.f32 %v3405_v36, %v10491_v22  ;;  %v7366_v4 = vmul.f32 %v3406_v25, %v10491_v22  ;;  %v10492_v25 = vld [vmem:[#allocation11_spill] sm:$0xff]  ;;  %v3428_v34 = vld [vmem:[%s10324_s4 + $0xf70] sm:$0xff]  ;;  %v3430_v58 = vld [vmem:[%s10324_s4 + $0xf80] sm:$0xff] }
 0x110   : > { %v7369_v51 = vmul.f32 %v3407_v23, %v10491_v22  ;;  %v7372_v36 = vmul.f32 %v3408_v13, %v10491_v22  ;;  %v1502_v24 = vmul.f32 %v3409_v41, %v10492_v25  ;;  %v3425_v23 = vld [vmem:[%s10324_s4 + $0xf58] sm:$0xff]  ;;  %v3426_v13 = vld [vmem:[%s10324_s4 + $0xf60] sm:$0xff]  ;;  %v3427_v22 = vld [vmem:[%s10324_s4 + $0xf68] sm:$0xff]  ;;  %v1503_v46 = vmul.f32 %v3410_v45, %v10492_v25 }
 0x111   : > { %v1504_v48 = vmul.f32 %v3411_v59, %v10492_v25  ;;  %v1505_v0 = vmul.f32 %v3412_v42, %v10492_v25  ;;  %v1506_v41 = vmul.f32 %v3413_v54, %v10492_v25  ;;  %v3429_v29 = vld [vmem:[%s10324_s4 + $0xf78] sm:$0xff]  ;;  %v1507_v45 = vmul.f32 %v3414_v60, %v10492_v25  ;;  %v3431_v33 = vld [vmem:[%s10324_s4 + $0xf88] sm:$0xff]  ;;  %v3432_v57 = vld [vmem:[%s10324_s4 + $0xf90] sm:$0xff] }
 0x112   : > { %v1508_v59 = vmul.f32 %v3415_v30, %v10492_v25  ;;  %v1509_v42 = vmul.f32 %v3416_v8, %v10492_v25  ;;  %v1510_v54 = vmul.f32 %v3417_v35, %v10492_v25  ;;  %v3433_v62 = vld [vmem:[%s10324_s4 + $0xf98] sm:$0xf]  ;;  %v1511_v60 = vmul.f32 %v3418_v5, %v10492_v25 }
 0x113   : > { %v1512_v30 = vmul.f32 %v3419_v7, %v10492_v25  ;;  %v1513_v8 = vmul.f32 %v3420_v31, %v10492_v25  ;;  %v1514_v35 = vmul.f32 %v3421_v9, %v10492_v25  ;;  %v1515_v47 = vmul.f32 %v3422_v49, %v10492_v25 }
 0x114   : > { %v1516_v19 = vmul.f32 %v3423_v10, %v10492_v25  ;;  %v1517_v39 = vmul.f32 %v3424_v56, %v10492_v25  ;;  %v1518_v55 = vmul.f32 %v3425_v23, %v10492_v25  ;;  %v1519_v15 = vmul.f32 %v3426_v13, %v10492_v25 }
 0x115   : > { %v1520_v6 = vmul.f32 %v3427_v22, %v10492_v25  ;;  %v1521_v5 = vmul.f32 %v3428_v34, %v10492_v25  ;;  %v1522_v7 = vmul.f32 %v3429_v29, %v10492_v25  ;;  %v1523_v31 = vmul.f32 %v3430_v58, %v10492_v25  ;;  %v3436_v29 = vld [vmem:[%s10324_s4 + $0xfb0] sm:$0xff] }
 0x116   : > { %v1524_v9 = vmul.f32 %v3431_v33, %v10492_v25  ;;  %v1525_v49 = vmul.f32 %v3432_v57, %v10492_v25  ;;  %v1526_v10 = vmul.f32 %v3433_v62, %v10492_v25  ;;  %v7436_v56 = vadd.f32 %v1502_v24, %v7252_v26 }
 0x117   : > { %v7439_v23 = vadd.f32 %v1503_v46, %v7255_v52  ;;  %v7442_v22 = vadd.f32 %v1504_v48, %v7267_v63  ;;  %v7445_v34 = vadd.f32 %v1505_v0, %v7270_v43  ;;  %v7448_v58 = vadd.f32 %v1506_v41, %v7273_v53  ;;  %v3434_v48 = vld [vmem:[%s10324_s4 + $0xfa0] sm:$0xff]  ;;  %v3435_v63 = vld [vmem:[%s10324_s4 + $0xfa8] sm:$0xff]  ;;  %v3437_v0 = vld [vmem:[%s10324_s4 + $0xfb8] sm:$0xff] }
 0x118   : > { %v7451_v33 = vadd.f32 %v1507_v45, %v7276_v2  ;;  %v7454_v57 = vadd.f32 %v1508_v59, %v7282_v21  ;;  %v7457_v24 = vadd.f32 %v1509_v42, %v7285_v44  ;;  %v7466_v52 = vadd.f32 %v1510_v54, %v7288_v18  ;;  %v3438_v2 = vld [vmem:[%s10324_s4 + $0xfc0] sm:$0xff]  ;;  %v3439_v18 = vld [vmem:[%s10324_s4 + $0xfc8] sm:$0xff]  ;;  %v3452_v59 = vld [vmem:[%s10324_s4 + $0x1030] sm:$0xff] }
 0x119   : > { %v7469_v26 = vadd.f32 %v1511_v60, %v7291_v27  ;;  %v7472_v21 = vadd.f32 %v1512_v30, %v7303_v14  ;;  %v7475_v62 = vadd.f32 %v1513_v8, %v7306_v3  ;;  %v7487_v46 = vadd.f32 %v1514_v35, %v7309_v11  ;;  %v3440_v27 = vld [vmem:[%s10324_s4 + $0xfd0] sm:$0xff]  ;;  %v3441_v14 = vld [vmem:[%s10324_s4 + $0xfd8] sm:$0xff]  ;;  %v3442_v3 = vld [vmem:[%s10324_s4 + $0xfe0] sm:$0xff] }
 0x11a   : > { %v7490_v44 = vadd.f32 %v1515_v47, %v7312_v20  ;;  %v7493_v43 = vadd.f32 %v1516_v19, %v7324_v28  ;;  %v7496_v53 = vadd.f32 %v1517_v39, %v7327_v12  ;;  %v7508_v47 = vadd.f32 %v1518_v55, %v7330_v50  ;;  %v3443_v11 = vld [vmem:[%s10324_s4 + $0xfe8] sm:$0xff]  ;;  %v3444_v55 = vld [vmem:[%s10324_s4 + $0xff0] sm:$0xff]  ;;  %v3445_v12 = vld [vmem:[%s10324_s4 + $0xff8] sm:$0xff] }
 0x11b   : > { %v7511_v20 = vadd.f32 %v1519_v15, %v7333_v1  ;;  %v7514_v39 = vadd.f32 %v1520_v6, %v7345_v38  ;;  %v7517_v19 = vadd.f32 %v1521_v5, %v7348_v61  ;;  %v7529_v15 = vadd.f32 %v1522_v7, %v7351_v16  ;;  %v3446_v50 = vld [vmem:[%s10324_s4 + $0x1000] sm:$0xff]  ;;  %v3447_v38 = vld [vmem:[%s10324_s4 + $0x1008] sm:$0xff]  ;;  %v3448_v61 = vld [vmem:[%s10324_s4 + $0x1010] sm:$0xff] }
 0x11c   : > { %v7532_v6 = vadd.f32 %v1523_v31, %v7354_v17  ;;  %v7535_v1 = vadd.f32 %v1524_v9, %v7366_v4  ;;  %v7538_v28 = vadd.f32 %v1525_v49, %v7369_v51  ;;  %v7550_v17 = vadd.f32 %v1526_v10, %v7372_v36  ;;  %v3449_v16 = vld [vmem:[%s10324_s4 + $0x1018] sm:$0xff]  ;;  %v3450_v4 = vld [vmem:[%s10324_s4 + $0x1020] sm:$0xff]  ;;  %v3451_v36 = vld [vmem:[%s10324_s4 + $0x1028] sm:$0xff] }
 0x11d   : > { %v10493_v51 = vld [vmem:[#allocation12_spill] sm:$0xff]  ;;  %v3453_v42 = vld [vmem:[%s10324_s4 + $0x1038] sm:$0xff]  ;;  %v3455_v5 = vld [vmem:[%s10324_s4 + $0x1048] sm:$0xff] }
 0x11e   : > { %v1578_v13 = vmul.f32 %v3434_v48, %v10493_v51  ;;  %v1579_v41 = vmul.f32 %v3435_v63, %v10493_v51  ;;  %v1580_v45 = vmul.f32 %v3436_v29, %v10493_v51  ;;  %v1581_v54 = vmul.f32 %v3437_v0, %v10493_v51  ;;  %v3454_v35 = vld [vmem:[%s10324_s4 + $0x1040] sm:$0xff]  ;;  %v3456_v7 = vld [vmem:[%s10324_s4 + $0x1050] sm:$0xff]  ;;  %v3457_v48 = vld [vmem:[%s10324_s4 + $0x1058] sm:$0xff] }
 0x11f   : > { %v1582_v60 = vmul.f32 %v3438_v2, %v10493_v51  ;;  %v1583_v30 = vmul.f32 %v3439_v18, %v10493_v51  ;;  %v1584_v8 = vmul.f32 %v3440_v27, %v10493_v51  ;;  %v1585_v31 = vmul.f32 %v3441_v14, %v10493_v51  ;;  %v3458_v63 = vld [vmem:[%s10324_s4 + $0x1060] sm:$0xf] }
 0x120   : > { %v1586_v9 = vmul.f32 %v3442_v3, %v10493_v51  ;;  %v1587_v49 = vmul.f32 %v3443_v11, %v10493_v51  ;;  %v1588_v10 = vmul.f32 %v3444_v55, %v10493_v51  ;;  %v1589_v29 = vmul.f32 %v3445_v12, %v10493_v51 }
 0x121   : > { %v1590_v0 = vmul.f32 %v3446_v50, %v10493_v51  ;;  %v1591_v2 = vmul.f32 %v3447_v38, %v10493_v51  ;;  %v1592_v18 = vmul.f32 %v3448_v61, %v10493_v51  ;;  %v1593_v27 = vmul.f32 %v3449_v16, %v10493_v51 }
 0x122   : > { %v1594_v14 = vmul.f32 %v3450_v4, %v10493_v51  ;;  %v1595_v3 = vmul.f32 %v3451_v36, %v10493_v51  ;;  %v1596_v11 = vmul.f32 %v3452_v59, %v10493_v51  ;;  %v1597_v55 = vmul.f32 %v3453_v42, %v10493_v51 }
 0x123   : > { %v1598_v25 = vmul.f32 %v3454_v35, %v10493_v51  ;;  %v1599_v12 = vmul.f32 %v3455_v5, %v10493_v51  ;;  %v1600_v50 = vmul.f32 %v3456_v7, %v10493_v51  ;;  %v1601_v38 = vmul.f32 %v3457_v48, %v10493_v51  ;;  %v3469_v7 = vld [vmem:[%s10324_s4 + $0x10b8] sm:$0xff] }
 0x124   : > { %v1602_v61 = vmul.f32 %v3458_v63, %v10493_v51  ;;  %v7611_v16 = vadd.f32 %v1578_v13, %v7436_v56  ;;  %v7614_v4 = vadd.f32 %v1579_v41, %v7439_v23  ;;  %v7617_v36 = vadd.f32 %v1580_v45, %v7442_v22  ;;  %v3459_v56 = vld [vmem:[%s10324_s4 + $0x1068] sm:$0xff]  ;;  %v3477_v48 = vld [vmem:[%s10324_s4 + $0x10f8] sm:$0xff] }
 0x125   : > { %v7620_v59 = vadd.f32 %v1581_v54, %v7445_v34  ;;  %v7623_v42 = vadd.f32 %v1582_v60, %v7448_v58  ;;  %v7626_v35 = vadd.f32 %v1583_v30, %v7451_v33  ;;  %v7632_v13 = vadd.f32 %v1584_v8, %v7454_v57  ;;  %v3460_v58 = vld [vmem:[%s10324_s4 + $0x1070] sm:$0xff]  ;;  %v3461_v33 = vld [vmem:[%s10324_s4 + $0x1078] sm:$0xff]  ;;  %v3462_v57 = vld [vmem:[%s10324_s4 + $0x1080] sm:$0xff] }
 0x126   : > { %v7635_v23 = vadd.f32 %v1585_v31, %v7457_v24  ;;  %v7638_v22 = vadd.f32 %v1586_v9, %v7466_v52  ;;  %v7641_v34 = vadd.f32 %v1587_v49, %v7469_v26  ;;  %v7653_v24 = vadd.f32 %v1588_v10, %v7472_v21  ;;  %v3463_v45 = vld [vmem:[%s10324_s4 + $0x1088] sm:$0xff]  ;;  %v3464_v54 = vld [vmem:[%s10324_s4 + $0x1090] sm:$0xff]  ;;  %v3465_v21 = vld [vmem:[%s10324_s4 + $0x1098] sm:$0xff] }
 0x127   : > { %v7656_v52 = vadd.f32 %v1589_v29, %v7475_v62  ;;  %v7659_v26 = vadd.f32 %v1590_v0, %v7487_v46  ;;  %v7662_v41 = vadd.f32 %v1591_v2, %v7490_v44  ;;  %v7674_v62 = vadd.f32 %v1592_v18, %v7493_v43  ;;  %v3466_v30 = vld [vmem:[%s10324_s4 + $0x10a0] sm:$0xff]  ;;  %v3467_v8 = vld [vmem:[%s10324_s4 + $0x10a8] sm:$0xff]  ;;  %v3468_v43 = vld [vmem:[%s10324_s4 + $0x10b0] sm:$0xff] }
 0x128   : > { %v7677_v46 = vadd.f32 %v1593_v27, %v7496_v53  ;;  %v7680_v44 = vadd.f32 %v1594_v14, %v7508_v47  ;;  %v7683_v60 = vadd.f32 %v1595_v3, %v7511_v20  ;;  %v7695_v53 = vadd.f32 %v1596_v11, %v7514_v39  ;;  %v3470_v31 = vld [vmem:[%s10324_s4 + $0x10c0] sm:$0xff]  ;;  %v3471_v39 = vld [vmem:[%s10324_s4 + $0x10c8] sm:$0xff]  ;;  %v3473_v9 = vld [vmem:[%s10324_s4 + $0x10d8] sm:$0xff] }
 0x129   : > { %v7698_v47 = vadd.f32 %v1597_v55, %v7517_v19  ;;  %v7701_v20 = vadd.f32 %v1598_v25, %v7529_v15  ;;  %v7704_v5 = vadd.f32 %v1599_v12, %v7532_v6  ;;  %v7716_v19 = vadd.f32 %v1600_v50, %v7535_v1  ;;  %v3472_v6 = vld [vmem:[%s10324_s4 + $0x10d0] sm:$0xff]  ;;  %v3474_v49 = vld [vmem:[%s10324_s4 + $0x10e0] sm:$0xff]  ;;  %v10494_v1 = vld [vmem:[#allocation13_spill] sm:$0xff] }
 0x12a   : > { %v7719_v25 = vadd.f32 %v1601_v38, %v7538_v28  ;;  %v7722_v15 = vadd.f32 %v1602_v61, %v7550_v17  ;;  %v1654_v10 = vmul.f32 %v3459_v56, %v10494_v1  ;;  %v3475_v28 = vld [vmem:[%s10324_s4 + $0x10e8] sm:$0xff]  ;;  %v3476_v17 = vld [vmem:[%s10324_s4 + $0x10f0] sm:$0xff]  ;;  %v1655_v63 = vmul.f32 %v3460_v58, %v10494_v1  ;;  %v3478_v18 = vld [vmem:[%s10324_s4 + $0x1100] sm:$0xff] }
 0x12b   : > { %v1656_v29 = vmul.f32 %v3461_v33, %v10494_v1  ;;  %v1657_v0 = vmul.f32 %v3462_v57, %v10494_v1  ;;  %v1658_v2 = vmul.f32 %v3463_v45, %v10494_v1  ;;  %v3479_v27 = vld [vmem:[%s10324_s4 + $0x1108] sm:$0xff]  ;;  %v3480_v14 = vld [vmem:[%s10324_s4 + $0x1110] sm:$0xff]  ;;  %v1659_v3 = vmul.f32 %v3464_v54, %v10494_v1  ;;  %v3481_v50 = vld [vmem:[%s10324_s4 + $0x1118] sm:$0xff] }
 0x12c   : > { %v1660_v11 = vmul.f32 %v3465_v21, %v10494_v1  ;;  %v1661_v55 = vmul.f32 %v3466_v30, %v10494_v1  ;;  %v1662_v12 = vmul.f32 %v3467_v8, %v10494_v1  ;;  %v3482_v38 = vld [vmem:[%s10324_s4 + $0x1120] sm:$0xff]  ;;  %v3483_v61 = vld [vmem:[%s10324_s4 + $0x1128] sm:$0xf]  ;;  %v1663_v56 = vmul.f32 %v3468_v43, %v10494_v1 }
 0x12d   : > { %v1664_v58 = vmul.f32 %v3469_v7, %v10494_v1  ;;  %v1665_v33 = vmul.f32 %v3470_v31, %v10494_v1  ;;  %v1666_v57 = vmul.f32 %v3471_v39, %v10494_v1  ;;  %v1667_v45 = vmul.f32 %v3472_v6, %v10494_v1 }
 0x12e   : > { %v1668_v54 = vmul.f32 %v3473_v9, %v10494_v1  ;;  %v1669_v21 = vmul.f32 %v3474_v49, %v10494_v1  ;;  %v1670_v30 = vmul.f32 %v3475_v28, %v10494_v1  ;;  %v1671_v8 = vmul.f32 %v3476_v17, %v10494_v1 }
 0x12f   : > { %v1672_v51 = vmul.f32 %v3477_v48, %v10494_v1  ;;  %v1673_v43 = vmul.f32 %v3478_v18, %v10494_v1  ;;  %v1674_v7 = vmul.f32 %v3479_v27, %v10494_v1  ;;  %v1675_v31 = vmul.f32 %v3480_v14, %v10494_v1 }
 0x130   : > { %v1676_v39 = vmul.f32 %v3481_v50, %v10494_v1  ;;  %v1677_v6 = vmul.f32 %v3482_v38, %v10494_v1  ;;  %v1678_v9 = vmul.f32 %v3483_v61, %v10494_v1  ;;  %v7786_v49 = vadd.f32 %v1654_v10, %v7611_v16  ;;  %v3487_v10 = vld [vmem:[%s10324_s4 + $0x1148] sm:$0xff]  ;;  %v3500_v50 = vld [vmem:[%s10324_s4 + $0x11b0] sm:$0xff] }
 0x131   : > { %v7789_v28 = vadd.f32 %v1655_v63, %v7614_v4  ;;  %v7792_v17 = vadd.f32 %v1656_v29, %v7617_v36  ;;  %v7795_v48 = vadd.f32 %v1657_v0, %v7620_v59  ;;  %v7798_v18 = vadd.f32 %v1658_v2, %v7623_v42  ;;  %v3484_v4 = vld [vmem:[%s10324_s4 + $0x1130] sm:$0xff]  ;;  %v3485_v36 = vld [vmem:[%s10324_s4 + $0x1138] sm:$0xff]  ;;  %v3490_v0 = vld [vmem:[%s10324_s4 + $0x1160] sm:$0xff] }
 0x132   : > { %v7801_v27 = vadd.f32 %v1659_v3, %v7626_v35  ;;  %v7804_v14 = vadd.f32 %v1660_v11, %v7632_v13  ;;  %v7807_v16 = vadd.f32 %v1661_v55, %v7635_v23  ;;  %v7816_v59 = vadd.f32 %v1662_v12, %v7638_v22  ;;  %v3486_v23 = vld [vmem:[%s10324_s4 + $0x1140] sm:$0xff]  ;;  %v3488_v22 = vld [vmem:[%s10324_s4 + $0x1150] sm:$0xff]  ;;  %v3489_v29 = vld [vmem:[%s10324_s4 + $0x1158] sm:$0xff] }
 0x133   : > { %v7819_v42 = vadd.f32 %v1663_v56, %v7641_v34  ;;  %v7822_v35 = vadd.f32 %v1664_v58, %v7653_v24  ;;  %v7825_v13 = vadd.f32 %v1665_v33, %v7656_v52  ;;  %v7837_v34 = vadd.f32 %v1666_v57, %v7659_v26  ;;  %v3491_v26 = vld [vmem:[%s10324_s4 + $0x1168] sm:$0xff]  ;;  %v3492_v3 = vld [vmem:[%s10324_s4 + $0x1170] sm:$0xff]  ;;  %v3493_v11 = vld [vmem:[%s10324_s4 + $0x1178] sm:$0xff] }
 0x134   : > { %v7840_v24 = vadd.f32 %v1667_v45, %v7662_v41  ;;  %v7843_v52 = vadd.f32 %v1668_v54, %v7674_v62  ;;  %v7846_v63 = vadd.f32 %v1669_v21, %v7677_v46  ;;  %v7858_v41 = vadd.f32 %v1670_v30, %v7680_v44  ;;  %v3494_v44 = vld [vmem:[%s10324_s4 + $0x1180] sm:$0xff]  ;;  %v3495_v55 = vld [vmem:[%s10324_s4 + $0x1188] sm:$0xff]  ;;  %v3496_v12 = vld [vmem:[%s10324_s4 + $0x1190] sm:$0xff] }
 0x135   : > { %v7861_v62 = vadd.f32 %v1671_v8, %v7683_v60  ;;  %v7864_v46 = vadd.f32 %v1672_v51, %v7695_v53  ;;  %v7867_v2 = vadd.f32 %v1673_v43, %v7698_v47  ;;  %v7879_v60 = vadd.f32 %v1674_v7, %v7701_v20  ;;  %v3497_v20 = vld [vmem:[%s10324_s4 + $0x1198] sm:$0xff]  ;;  %v3502_v58 = vld [vmem:[%s10324_s4 + $0x11c0] sm:$0xff]  ;;  %v3503_v33 = vld [vmem:[%s10324_s4 + $0x11c8] sm:$0xff] }
 0x136   : > { %v7882_v51 = vadd.f32 %v1675_v31, %v7704_v5  ;;  %v7885_v53 = vadd.f32 %v1676_v39, %v7716_v19  ;;  %v7888_v47 = vadd.f32 %v1677_v6, %v7719_v25  ;;  %v7900_v5 = vadd.f32 %v1678_v9, %v7722_v15  ;;  %v3498_v19 = vld [vmem:[%s10324_s4 + $0x11a0] sm:$0xff]  ;;  %v3499_v25 = vld [vmem:[%s10324_s4 + $0x11a8] sm:$0xff]  ;;  %v3501_v15 = vld [vmem:[%s10324_s4 + $0x11b8] sm:$0xff] }
 0x137   : > { %v1730_v38 = vmul.f32 %v3484_v4, %v10440_v32  ;;  %v1731_v61 = vmul.f32 %v3485_v36, %v10440_v32  ;;  %v1732_v56 = vmul.f32 %v3486_v23, %v10440_v32  ;;  %v1733_v57 = vmul.f32 %v3487_v10, %v10440_v32  ;;  %v3504_v30 = vld [vmem:[%s10324_s4 + $0x11d0] sm:$0xff]  ;;  %v3505_v8 = vld [vmem:[%s10324_s4 + $0x11d8] sm:$0xff]  ;;  %v3506_v43 = vld [vmem:[%s10324_s4 + $0x11e0] sm:$0xff] }
 0x138   : > { %v1734_v45 = vmul.f32 %v3488_v22, %v10440_v32  ;;  %v1735_v54 = vmul.f32 %v3489_v29, %v10440_v32  ;;  %v1736_v21 = vmul.f32 %v3490_v0, %v10440_v32  ;;  %v1737_v7 = vmul.f32 %v3491_v26, %v10440_v32  ;;  %v3507_v9 = vld [vmem:[%s10324_s4 + $0x11e8] sm:$0xff]  ;;  %v3508_v4 = vld [vmem:[%s10324_s4 + $0x11f0] sm:$0xf] }
 0x139   : > { %v1738_v31 = vmul.f32 %v3492_v3, %v10440_v32  ;;  %v1739_v39 = vmul.f32 %v3493_v11, %v10440_v32  ;;  %v1740_v6 = vmul.f32 %v3494_v44, %v10440_v32  ;;  %v1741_v36 = vmul.f32 %v3495_v55, %v10440_v32 }
 0x13a   : > { %v1742_v23 = vmul.f32 %v3496_v12, %v10440_v32  ;;  %v1743_v10 = vmul.f32 %v3497_v20, %v10440_v32  ;;  %v1744_v22 = vmul.f32 %v3498_v19, %v10440_v32  ;;  %v1745_v29 = vmul.f32 %v3499_v25, %v10440_v32 }
 0x13b   : > { %v1746_v0 = vmul.f32 %v3500_v50, %v10440_v32  ;;  %v1747_v26 = vmul.f32 %v3501_v15, %v10440_v32  ;;  %v1748_v3 = vmul.f32 %v3502_v58, %v10440_v32  ;;  %v1749_v11 = vmul.f32 %v3503_v33, %v10440_v32 }
 0x13c   : > { %v1750_v44 = vmul.f32 %v3504_v30, %v10440_v32  ;;  %v1751_v55 = vmul.f32 %v3505_v8, %v10440_v32  ;;  %v1752_v12 = vmul.f32 %v3506_v43, %v10440_v32  ;;  %v1753_v20 = vmul.f32 %v3507_v9, %v10440_v32  ;;  %v3519_v43 = vld [vmem:[%s10324_s4 + $0x1248] sm:$0xff] }
 0x13d   : > { %v1754_v19 = vmul.f32 %v3508_v4, %v10440_v32  ;;  %v7961_v25 = vadd.f32 %v1730_v38, %v7786_v49  ;;  %v7964_v50 = vadd.f32 %v1731_v61, %v7789_v28  ;;  %v7967_v15 = vadd.f32 %v1732_v56, %v7792_v17  ;;  %v3509_v49 = vld [vmem:[%s10324_s4 + $0x11f8] sm:$0xff]  ;;  %v3527_v4 = vld [vmem:[%s10324_s4 + $0x1288] sm:$0xff] }
 0x13e   : > { %v7970_v58 = vadd.f32 %v1733_v57, %v7795_v48  ;;  %v7973_v33 = vadd.f32 %v1734_v45, %v7798_v18  ;;  %v7976_v30 = vadd.f32 %v1735_v54, %v7801_v27  ;;  %v7982_v38 = vadd.f32 %v1736_v21, %v7804_v14  ;;  %v3510_v18 = vld [vmem:[%s10324_s4 + $0x1200] sm:$0xff]  ;;  %v3511_v27 = vld [vmem:[%s10324_s4 + $0x1208] sm:$0xff]  ;;  %v3512_v14 = vld [vmem:[%s10324_s4 + $0x1210] sm:$0xff] }
 0x13f   : > { %v7985_v28 = vadd.f32 %v1737_v7, %v7807_v16  ;;  %v7988_v17 = vadd.f32 %v1738_v31, %v7816_v59  ;;  %v7991_v48 = vadd.f32 %v1739_v39, %v7819_v42  ;;  %v8003_v16 = vadd.f32 %v1740_v6, %v7822_v35  ;;  %v3513_v56 = vld [vmem:[%s10324_s4 + $0x1218] sm:$0xff]  ;;  %v3514_v57 = vld [vmem:[%s10324_s4 + $0x1220] sm:$0xff]  ;;  %v3515_v35 = vld [vmem:[%s10324_s4 + $0x1228] sm:$0xff] }
 0x140   : > { %v8006_v59 = vadd.f32 %v1741_v36, %v7825_v13  ;;  %v8009_v42 = vadd.f32 %v1742_v23, %v7837_v34  ;;  %v8012_v61 = vadd.f32 %v1743_v10, %v7840_v24  ;;  %v8024_v13 = vadd.f32 %v1744_v22, %v7843_v52  ;;  %v3516_v54 = vld [vmem:[%s10324_s4 + $0x1230] sm:$0xff]  ;;  %v3517_v21 = vld [vmem:[%s10324_s4 + $0x1238] sm:$0xff]  ;;  %v3518_v52 = vld [vmem:[%s10324_s4 + $0x1240] sm:$0xff] }
 0x141   : > { %v8027_v34 = vadd.f32 %v1745_v29, %v7846_v63  ;;  %v8030_v24 = vadd.f32 %v1746_v0, %v7858_v41  ;;  %v8033_v45 = vadd.f32 %v1747_v26, %v7861_v62  ;;  %v8045_v63 = vadd.f32 %v1748_v3, %v7864_v46  ;;  %v3520_v7 = vld [vmem:[%s10324_s4 + $0x1250] sm:$0xff]  ;;  %v3521_v46 = vld [vmem:[%s10324_s4 + $0x1258] sm:$0xff]  ;;  %v3522_v31 = vld [vmem:[%s10324_s4 + $0x1260] sm:$0xff] }
 0x142   : > { %v8048_v41 = vadd.f32 %v1749_v11, %v7867_v2  ;;  %v8051_v62 = vadd.f32 %v1750_v44, %v7879_v60  ;;  %v8054_v8 = vadd.f32 %v1751_v55, %v7882_v51  ;;  %v8066_v2 = vadd.f32 %v1752_v12, %v7885_v53  ;;  %v3523_v39 = vld [vmem:[%s10324_s4 + $0x1268] sm:$0xff]  ;;  %v3524_v6 = vld [vmem:[%s10324_s4 + $0x1270] sm:$0xff]  ;;  %v10495_v53 = vld [vmem:[#allocation15_spill] sm:$0xff] }
 0x143   : > { %v8069_v60 = vadd.f32 %v1753_v20, %v7888_v47  ;;  %v8072_v51 = vadd.f32 %v1754_v19, %v7900_v5  ;;  %v1806_v9 = vmul.f32 %v3509_v49, %v10495_v53  ;;  %v3525_v47 = vld [vmem:[%s10324_s4 + $0x1278] sm:$0xff]  ;;  %v3526_v5 = vld [vmem:[%s10324_s4 + $0x1280] sm:$0xff]  ;;  %v1807_v36 = vmul.f32 %v3510_v18, %v10495_v53  ;;  %v3528_v29 = vld [vmem:[%s10324_s4 + $0x1290] sm:$0xff] }
 0x144   : > { %v1808_v23 = vmul.f32 %v3511_v27, %v10495_v53  ;;  %v1809_v10 = vmul.f32 %v3512_v14, %v10495_v53  ;;  %v1810_v22 = vmul.f32 %v3513_v56, %v10495_v53  ;;  %v3529_v0 = vld [vmem:[%s10324_s4 + $0x1298] sm:$0xff]  ;;  %v3530_v26 = vld [vmem:[%s10324_s4 + $0x12a0] sm:$0xff]  ;;  %v1811_v3 = vmul.f32 %v3514_v57, %v10495_v53  ;;  %v3531_v12 = vld [vmem:[%s10324_s4 + $0x12a8] sm:$0xff] }
 0x145   : > { %v1812_v11 = vmul.f32 %v3515_v35, %v10495_v53  ;;  %v1813_v44 = vmul.f32 %v3516_v54, %v10495_v53  ;;  %v1814_v55 = vmul.f32 %v3517_v21, %v10495_v53  ;;  %v3532_v20 = vld [vmem:[%s10324_s4 + $0x12b0] sm:$0xff]  ;;  %v3533_v19 = vld [vmem:[%s10324_s4 + $0x12b8] sm:$0xf]  ;;  %v1815_v49 = vmul.f32 %v3518_v52, %v10495_v53 }
 0x146   : > { %v1816_v18 = vmul.f32 %v3519_v43, %v10495_v53  ;;  %v1817_v27 = vmul.f32 %v3520_v7, %v10495_v53  ;;  %v1818_v14 = vmul.f32 %v3521_v46, %v10495_v53  ;;  %v1819_v56 = vmul.f32 %v3522_v31, %v10495_v53 }
 0x147   : > { %v1820_v57 = vmul.f32 %v3523_v39, %v10495_v53  ;;  %v1821_v35 = vmul.f32 %v3524_v6, %v10495_v53  ;;  %v1822_v54 = vmul.f32 %v3525_v47, %v10495_v53  ;;  %v1823_v21 = vmul.f32 %v3526_v5, %v10495_v53 }
 0x148   : > { %v1824_v32 = vmul.f32 %v3527_v4, %v10495_v53  ;;  %v1825_v52 = vmul.f32 %v3528_v29, %v10495_v53  ;;  %v1826_v43 = vmul.f32 %v3529_v0, %v10495_v53  ;;  %v1827_v7 = vmul.f32 %v3530_v26, %v10495_v53 }
 0x149   : > { %v1828_v46 = vmul.f32 %v3531_v12, %v10495_v53  ;;  %v1829_v31 = vmul.f32 %v3532_v20, %v10495_v53  ;;  %v1830_v39 = vmul.f32 %v3533_v19, %v10495_v53  ;;  %v8136_v6 = vadd.f32 %v1806_v9, %v7961_v25  ;;  %v3537_v9 = vld [vmem:[%s10324_s4 + $0x12d8] sm:$0xff]  ;;  %v3550_v12 = vld [vmem:[%s10324_s4 + $0x1340] sm:$0xff] }
 0x14a   : > { %v8139_v47 = vadd.f32 %v1807_v36, %v7964_v50  ;;  %v8142_v5 = vadd.f32 %v1808_v23, %v7967_v15  ;;  %v8145_v4 = vadd.f32 %v1809_v10, %v7970_v58  ;;  %v8148_v29 = vadd.f32 %v1810_v22, %v7973_v33  ;;  %v3534_v50 = vld [vmem:[%s10324_s4 + $0x12c0] sm:$0xff]  ;;  %v3535_v15 = vld [vmem:[%s10324_s4 + $0x12c8] sm:$0xff]  ;;  %v3540_v10 = vld [vmem:[%s10324_s4 + $0x12f0] sm:$0xff] }
 0x14b   : > { %v8151_v0 = vadd.f32 %v1811_v3, %v7976_v30  ;;  %v8154_v26 = vadd.f32 %v1812_v11, %v7982_v38  ;;  %v8157_v25 = vadd.f32 %v1813_v44, %v7985_v28  ;;  %v8166_v58 = vadd.f32 %v1814_v55, %v7988_v17  ;;  %v3536_v28 = vld [vmem:[%s10324_s4 + $0x12d0] sm:$0xff]  ;;  %v3538_v17 = vld [vmem:[%s10324_s4 + $0x12e0] sm:$0xff]  ;;  %v3539_v23 = vld [vmem:[%s10324_s4 + $0x12e8] sm:$0xff] }
 0x14c   : > { %v8169_v33 = vadd.f32 %v1815_v49, %v7991_v48  ;;  %v8172_v30 = vadd.f32 %v1816_v18, %v8003_v16  ;;  %v8175_v38 = vadd.f32 %v1817_v27, %v8006_v59  ;;  %v8187_v48 = vadd.f32 %v1818_v14, %v8009_v42  ;;  %v3541_v42 = vld [vmem:[%s10324_s4 + $0x12f8] sm:$0xff]  ;;  %v3542_v3 = vld [vmem:[%s10324_s4 + $0x1300] sm:$0xff]  ;;  %v3543_v11 = vld [vmem:[%s10324_s4 + $0x1308] sm:$0xff] }
 0x14d   : > { %v8190_v16 = vadd.f32 %v1819_v56, %v8012_v61  ;;  %v8193_v59 = vadd.f32 %v1820_v57, %v8024_v13  ;;  %v8196_v36 = vadd.f32 %v1821_v35, %v8027_v34  ;;  %v8208_v61 = vadd.f32 %v1822_v54, %v8030_v24  ;;  %v3544_v24 = vld [vmem:[%s10324_s4 + $0x1310] sm:$0xff]  ;;  %v3545_v44 = vld [vmem:[%s10324_s4 + $0x1318] sm:$0xff]  ;;  %v3546_v55 = vld [vmem:[%s10324_s4 + $0x1320] sm:$0xff] }
 0x14e   : > { %v8211_v13 = vadd.f32 %v1823_v21, %v8033_v45  ;;  %v8214_v34 = vadd.f32 %v1824_v32, %v8045_v63  ;;  %v8217_v22 = vadd.f32 %v1825_v52, %v8048_v41  ;;  %v8229_v45 = vadd.f32 %v1826_v43, %v8051_v62  ;;  %v3547_v62 = vld [vmem:[%s10324_s4 + $0x1328] sm:$0xff]  ;;  %v10496_v20 = vld [vmem:[#allocation16_spill] sm:$0xff]  ;;  %v3552_v27 = vld [vmem:[%s10324_s4 + $0x1350] sm:$0xff] }
 0x14f   : > { %v8232_v32 = vadd.f32 %v1827_v7, %v8054_v8  ;;  %v8235_v63 = vadd.f32 %v1828_v46, %v8066_v2  ;;  %v8238_v41 = vadd.f32 %v1829_v31, %v8069_v60  ;;  %v8250_v8 = vadd.f32 %v1830_v39, %v8072_v51  ;;  %v3548_v2 = vld [vmem:[%s10324_s4 + $0x1330] sm:$0xff]  ;;  %v3549_v60 = vld [vmem:[%s10324_s4 + $0x1338] sm:$0xff]  ;;  %v3551_v51 = vld [vmem:[%s10324_s4 + $0x1348] sm:$0xff] }
 0x150   : > { %v1882_v19 = vmul.f32 %v3534_v50, %v10496_v20  ;;  %v1883_v49 = vmul.f32 %v3535_v15, %v10496_v20  ;;  %v1884_v18 = vmul.f32 %v3536_v28, %v10496_v20  ;;  %v3553_v14 = vld [vmem:[%s10324_s4 + $0x1358] sm:$0xff]  ;;  %v1885_v56 = vmul.f32 %v3537_v9, %v10496_v20  ;;  %v3554_v21 = vld [vmem:[%s10324_s4 + $0x1360] sm:$0xff]  ;;  %v3555_v52 = vld [vmem:[%s10324_s4 + $0x1368] sm:$0xff] }
 0x151   : > { %v1886_v57 = vmul.f32 %v3538_v17, %v10496_v20  ;;  %v1887_v35 = vmul.f32 %v3539_v23, %v10496_v20  ;;  %v1888_v54 = vmul.f32 %v3540_v10, %v10496_v20  ;;  %v3556_v43 = vld [vmem:[%s10324_s4 + $0x1370] sm:$0xff]  ;;  %v1889_v7 = vmul.f32 %v3541_v42, %v10496_v20  ;;  %v3557_v50 = vld [vmem:[%s10324_s4 + $0x1378] sm:$0xff]  ;;  %v3558_v15 = vld [vmem:[%s10324_s4 + $0x1380] sm:$0xf] }
 0x152   : > { %v1890_v46 = vmul.f32 %v3542_v3, %v10496_v20  ;;  %v1891_v31 = vmul.f32 %v3543_v11, %v10496_v20  ;;  %v1892_v39 = vmul.f32 %v3544_v24, %v10496_v20  ;;  %v1893_v28 = vmul.f32 %v3545_v44, %v10496_v20 }
 0x153   : > { %v1894_v9 = vmul.f32 %v3546_v55, %v10496_v20  ;;  %v1895_v17 = vmul.f32 %v3547_v62, %v10496_v20  ;;  %v1896_v23 = vmul.f32 %v3548_v2, %v10496_v20  ;;  %v1897_v10 = vmul.f32 %v3549_v60, %v10496_v20 }
 0x154   : > { %v1898_v42 = vmul.f32 %v3550_v12, %v10496_v20  ;;  %v1899_v3 = vmul.f32 %v3551_v51, %v10496_v20  ;;  %v1900_v11 = vmul.f32 %v3552_v27, %v10496_v20  ;;  %v1901_v24 = vmul.f32 %v3553_v14, %v10496_v20 }
 0x155   : > { %v1902_v53 = vmul.f32 %v3554_v21, %v10496_v20  ;;  %v1903_v44 = vmul.f32 %v3555_v52, %v10496_v20  ;;  %v1904_v55 = vmul.f32 %v3556_v43, %v10496_v20  ;;  %v1905_v62 = vmul.f32 %v3557_v50, %v10496_v20  ;;  %v3568_v52 = vld [vmem:[%s10324_s4 + $0x13d0] sm:$0xff]  ;;  %v3569_v43 = vld [vmem:[%s10324_s4 + $0x13d8] sm:$0xff] }
 0x156   : > { %v1906_v2 = vmul.f32 %v3558_v15, %v10496_v20  ;;  %v8311_v60 = vadd.f32 %v1882_v19, %v8136_v6  ;;  %v8314_v12 = vadd.f32 %v1883_v49, %v8139_v47  ;;  %v8317_v51 = vadd.f32 %v1884_v18, %v8142_v5  ;;  %v3559_v6 = vld [vmem:[%s10324_s4 + $0x1388] sm:$0xff] }
 0x157   : > { %v8320_v27 = vadd.f32 %v1885_v56, %v8145_v4  ;;  %v8323_v14 = vadd.f32 %v1886_v57, %v8148_v29  ;;  %v8326_v21 = vadd.f32 %v1887_v35, %v8151_v0  ;;  %v8332_v19 = vadd.f32 %v1888_v54, %v8154_v26  ;;  %v3560_v29 = vld [vmem:[%s10324_s4 + $0x1390] sm:$0xff]  ;;  %v3561_v0 = vld [vmem:[%s10324_s4 + $0x1398] sm:$0xff]  ;;  %v3562_v26 = vld [vmem:[%s10324_s4 + $0x13a0] sm:$0xff] }
 0x158   : > { %v8335_v47 = vadd.f32 %v1889_v7, %v8157_v25  ;;  %v8338_v5 = vadd.f32 %v1890_v46, %v8166_v58  ;;  %v8341_v4 = vadd.f32 %v1891_v31, %v8169_v33  ;;  %v3563_v25 = vld [vmem:[%s10324_s4 + $0x13a8] sm:$0xff]  ;;  %v8356_v58 = vadd.f32 %v1892_v39, %v8172_v30  ;;  %v3564_v56 = vld [vmem:[%s10324_s4 + $0x13b0] sm:$0xff]  ;;  %v3565_v57 = vld [vmem:[%s10324_s4 + $0x13b8] sm:$0xff] }
 0x159   : > { %v8359_v33 = vadd.f32 %v1893_v28, %v8175_v38  ;;  %v8362_v49 = vadd.f32 %v1894_v9, %v8187_v48  ;;  %v8365_v18 = vadd.f32 %v1895_v17, %v8190_v16  ;;  %v3566_v30 = vld [vmem:[%s10324_s4 + $0x13c0] sm:$0xff]  ;;  %v3567_v38 = vld [vmem:[%s10324_s4 + $0x13c8] sm:$0xff]  ;;  %v8381_v48 = vadd.f32 %v1896_v23, %v8193_v59 }
 0x15a   : > { %v8384_v16 = vadd.f32 %v1897_v10, %v8196_v36  ;;  %v8387_v35 = vadd.f32 %v1898_v42, %v8208_v61  ;;  %v8390_v54 = vadd.f32 %v1899_v3, %v8211_v13  ;;  %v3570_v59 = vld [vmem:[%s10324_s4 + $0x13e0] sm:$0xff]  ;;  %v8407_v36 = vadd.f32 %v1900_v11, %v8214_v34  ;;  %v3571_v46 = vld [vmem:[%s10324_s4 + $0x13e8] sm:$0xff]  ;;  %v3580_v10 = vld [vmem:[%s10324_s4 + $0x1430] sm:$0xff] }
 0x15b   : > { %v8410_v61 = vadd.f32 %v1901_v24, %v8217_v22  ;;  %v8413_v13 = vadd.f32 %v1902_v53, %v8229_v45  ;;  %v8416_v7 = vadd.f32 %v1903_v44, %v8232_v32  ;;  %v8422_v31 = vadd.f32 %v1904_v55, %v8235_v63  ;;  %v3572_v53 = vld [vmem:[%s10324_s4 + $0x13f0] sm:$0xff]  ;;  %v3573_v22 = vld [vmem:[%s10324_s4 + $0x13f8] sm:$0xff]  ;;  %v3574_v45 = vld [vmem:[%s10324_s4 + $0x1400] sm:$0xff] }
 0x15c   : > { %v8425_v39 = vadd.f32 %v1905_v62, %v8238_v41  ;;  %v8428_v34 = vadd.f32 %v1906_v2, %v8250_v8  ;;  %v1958_v32 = vmul.f32 %v3559_v6, %v10442_v40  ;;  %v3575_v63 = vld [vmem:[%s10324_s4 + $0x1408] sm:$0xff]  ;;  %v3576_v41 = vld [vmem:[%s10324_s4 + $0x1410] sm:$0xff]  ;;  %v3577_v8 = vld [vmem:[%s10324_s4 + $0x1418] sm:$0xff]  ;;  %v1959_v50 = vmul.f32 %v3560_v29, %v10442_v40 }
 0x15d   : > { %v1960_v15 = vmul.f32 %v3561_v0, %v10442_v40  ;;  %v1961_v28 = vmul.f32 %v3562_v26, %v10442_v40  ;;  %v1962_v9 = vmul.f32 %v3563_v25, %v10442_v40  ;;  %v3578_v17 = vld [vmem:[%s10324_s4 + $0x1420] sm:$0xff]  ;;  %v3579_v23 = vld [vmem:[%s10324_s4 + $0x1428] sm:$0xff]  ;;  %v1963_v42 = vmul.f32 %v3564_v56, %v10442_v40  ;;  %v3581_v44 = vld [vmem:[%s10324_s4 + $0x1438] sm:$0xff] }
 0x15e   : > { %v1964_v3 = vmul.f32 %v3565_v57, %v10442_v40  ;;  %v1965_v11 = vmul.f32 %v3566_v30, %v10442_v40  ;;  %v1966_v24 = vmul.f32 %v3567_v38, %v10442_v40  ;;  %v3582_v55 = vld [vmem:[%s10324_s4 + $0x1440] sm:$0xff]  ;;  %v3583_v62 = vld [vmem:[%s10324_s4 + $0x1448] sm:$0xf]  ;;  %v1967_v2 = vmul.f32 %v3568_v52, %v10442_v40 }
 0x15f   : > { %v1968_v6 = vmul.f32 %v3569_v43, %v10442_v40  ;;  %v1969_v29 = vmul.f32 %v3570_v59, %v10442_v40  ;;  %v1970_v0 = vmul.f32 %v3571_v46, %v10442_v40  ;;  %v1971_v26 = vmul.f32 %v3572_v53, %v10442_v40 }
 0x160   : > { %v1972_v25 = vmul.f32 %v3573_v22, %v10442_v40  ;;  %v1973_v56 = vmul.f32 %v3574_v45, %v10442_v40  ;;  %v1974_v57 = vmul.f32 %v3575_v63, %v10442_v40  ;;  %v1975_v30 = vmul.f32 %v3576_v41, %v10442_v40 }
 0x161   : > { %v1976_v38 = vmul.f32 %v3577_v8, %v10442_v40  ;;  %v1977_v52 = vmul.f32 %v3578_v17, %v10442_v40  ;;  %v1978_v43 = vmul.f32 %v3579_v23, %v10442_v40  ;;  %v1979_v59 = vmul.f32 %v3580_v10, %v10442_v40 }
 0x162   : > { %v1980_v46 = vmul.f32 %v3581_v44, %v10442_v40  ;;  %v1981_v53 = vmul.f32 %v3582_v55, %v10442_v40  ;;  %v1982_v22 = vmul.f32 %v3583_v62, %v10442_v40  ;;  %v8492_v45 = vadd.f32 %v1958_v32, %v8311_v60  ;;  %v3587_v32 = vld [vmem:[%s10324_s4 + $0x1468] sm:$0xff]  ;;  %v3596_v44 = vld [vmem:[%s10324_s4 + $0x14b0] sm:$0xff] }
 0x163   : > { %v8495_v63 = vadd.f32 %v1959_v50, %v8314_v12  ;;  %v8498_v41 = vadd.f32 %v1960_v15, %v8317_v51  ;;  %v8501_v8 = vadd.f32 %v1961_v28, %v8320_v27  ;;  %v8504_v17 = vadd.f32 %v1962_v9, %v8323_v14  ;;  %v3584_v12 = vld [vmem:[%s10324_s4 + $0x1450] sm:$0xff]  ;;  %v3585_v51 = vld [vmem:[%s10324_s4 + $0x1458] sm:$0xff]  ;;  %v3590_v28 = vld [vmem:[%s10324_s4 + $0x1480] sm:$0xff] }
 0x164   : > { %v8507_v23 = vadd.f32 %v1963_v42, %v8326_v21  ;;  %v8510_v10 = vadd.f32 %v1964_v3, %v8332_v19  ;;  %v8513_v60 = vadd.f32 %v1965_v11, %v8335_v47  ;;  %v8522_v27 = vadd.f32 %v1966_v24, %v8338_v5  ;;  %v3586_v47 = vld [vmem:[%s10324_s4 + $0x1460] sm:$0xff]  ;;  %v3588_v5 = vld [vmem:[%s10324_s4 + $0x1470] sm:$0xff]  ;;  %v3589_v15 = vld [vmem:[%s10324_s4 + $0x1478] sm:$0xff] }
 0x165   : > { %v8525_v14 = vadd.f32 %v1967_v2, %v8341_v4  ;;  %v8528_v21 = vadd.f32 %v1968_v6, %v8356_v58  ;;  %v8531_v19 = vadd.f32 %v1969_v29, %v8359_v33  ;;  %v8543_v4 = vadd.f32 %v1970_v0, %v8362_v49  ;;  %v3591_v49 = vld [vmem:[%s10324_s4 + $0x1488] sm:$0xff]  ;;  %v3592_v42 = vld [vmem:[%s10324_s4 + $0x1490] sm:$0xff]  ;;  %v3593_v3 = vld [vmem:[%s10324_s4 + $0x1498] sm:$0xff] }
 0x166   : > { %v8546_v58 = vadd.f32 %v1971_v26, %v8365_v18  ;;  %v8549_v33 = vadd.f32 %v1972_v25, %v8381_v48  ;;  %v8552_v50 = vadd.f32 %v1973_v56, %v8384_v16  ;;  %v8564_v18 = vadd.f32 %v1974_v57, %v8387_v35  ;;  %v3594_v35 = vld [vmem:[%s10324_s4 + $0x14a0] sm:$0xff]  ;;  %v3595_v24 = vld [vmem:[%s10324_s4 + $0x14a8] sm:$0xff]  ;;  %v3600_v55 = vld [vmem:[%s10324_s4 + $0x14d0] sm:$0xff] }
 0x167   : > { %v8567_v48 = vadd.f32 %v1975_v30, %v8390_v54  ;;  %v8570_v16 = vadd.f32 %v1976_v38, %v8407_v36  ;;  %v8573_v9 = vadd.f32 %v1977_v52, %v8410_v61  ;;  %v8585_v54 = vadd.f32 %v1978_v43, %v8413_v13  ;;  %v3597_v13 = vld [vmem:[%s10324_s4 + $0x14b8] sm:$0xff]  ;;  %v3602_v29 = vld [vmem:[%s10324_s4 + $0x14e0] sm:$0xff]  ;;  %v3603_v0 = vld [vmem:[%s10324_s4 + $0x14e8] sm:$0xff] }
 0x168   : > { %v8588_v36 = vadd.f32 %v1979_v59, %v8416_v7  ;;  %v8591_v61 = vadd.f32 %v1980_v46, %v8422_v31  ;;  %v8594_v11 = vadd.f32 %v1981_v53, %v8425_v39  ;;  %v8606_v7 = vadd.f32 %v1982_v22, %v8428_v34  ;;  %v3598_v31 = vld [vmem:[%s10324_s4 + $0x14c0] sm:$0xff]  ;;  %v3599_v39 = vld [vmem:[%s10324_s4 + $0x14c8] sm:$0xff]  ;;  %v3601_v34 = vld [vmem:[%s10324_s4 + $0x14d8] sm:$0xff] }
 0x169   : > { %v2034_v62 = vmul.f32 %v3584_v12, %v5419_v37  ;;  %v2035_v2 = vmul.f32 %v3585_v51, %v5419_v37  ;;  %v2036_v6 = vmul.f32 %v3586_v47, %v5419_v37  ;;  %v2037_v26 = vmul.f32 %v3587_v32, %v5419_v37  ;;  %v3604_v30 = vld [vmem:[%s10324_s4 + $0x14f0] sm:$0xff]  ;;  %v3605_v38 = vld [vmem:[%s10324_s4 + $0x14f8] sm:$0xff]  ;;  %v3606_v52 = vld [vmem:[%s10324_s4 + $0x1500] sm:$0xff] }
 0x16a   : > { %10497 = vst [vmem:[#allocation13_spill] sm:$0xff] %v8606_v7  ;;  %v2038_v25 = vmul.f32 %v3588_v5, %v5419_v37  ;;  %v2039_v56 = vmul.f32 %v3589_v15, %v5419_v37  ;;  %v2040_v57 = vmul.f32 %v3590_v28, %v5419_v37  ;;  %v2041_v43 = vmul.f32 %v3591_v49, %v5419_v37  ;;  %v3607_v22 = vld [vmem:[%s10324_s4 + $0x1508] sm:$0xff]  ;;  %v3608_v12 = vld [vmem:[%s10324_s4 + $0x1510] sm:$0xf] }
 0x16b   : > { %v2042_v59 = vmul.f32 %v3592_v42, %v5419_v37  ;;  %v2043_v46 = vmul.f32 %v3593_v3, %v5419_v37  ;;  %v2044_v53 = vmul.f32 %v3594_v35, %v5419_v37  ;;  %v2045_v51 = vmul.f32 %v3595_v24, %v5419_v37 }
 0x16c   : > { %v2046_v47 = vmul.f32 %v3596_v44, %v5419_v37  ;;  %v2047_v32 = vmul.f32 %v3597_v13, %v5419_v37  ;;  %v2048_v5 = vmul.f32 %v3598_v31, %v5419_v37  ;;  %v2049_v15 = vmul.f32 %v3599_v39, %v5419_v37 }
 0x16d   : > { %v2050_v28 = vmul.f32 %v3600_v55, %v5419_v37  ;;  %v2051_v49 = vmul.f32 %v3601_v34, %v5419_v37  ;;  %v2052_v42 = vmul.f32 %v3602_v29, %v5419_v37  ;;  %v2053_v3 = vmul.f32 %v3603_v0, %v5419_v37 }
 0x16e   : > { %v2054_v35 = vmul.f32 %v3604_v30, %v5419_v37  ;;  %v2055_v24 = vmul.f32 %v3605_v38, %v5419_v37  ;;  %v2056_v44 = vmul.f32 %v3606_v52, %v5419_v37  ;;  %v2057_v13 = vmul.f32 %v3607_v22, %v5419_v37 }
 0x16f   : > { %v8666_v31 = vmul.f32 %v3608_v12, %v5419_v37  ;;  %v2059_v39 = vadd.f32 %v2034_v62, %v8492_v45  ;;  %v2060_v55 = vadd.f32 %v2035_v2, %v8495_v63  ;;  %v2061_v34 = vadd.f32 %v2036_v6, %v8498_v41 }
 0x170   : > { %v2062_v29 = vadd.f32 %v2037_v26, %v8501_v8  ;;  %v2063_v0 = vadd.f32 %v2038_v25, %v8504_v17  ;;  %v2064_v30 = vadd.f32 %v2039_v56, %v8507_v23  ;;  %v2065_v38 = vadd.f32 %v2040_v57, %v8510_v10  ;;  %v10515_v25 = vld [vmem:[#allocation46_spill] sm:$0xff] }
 0x171   : > { %10498 = vst [vmem:[#allocation16_spill] sm:$0xff] %v8666_v31  ;;  %v2066_v52 = vadd.f32 %v2041_v43, %v8513_v60  ;;  %v2067_v22 = vadd.f32 %v2042_v59, %v8522_v27  ;;  %v2068_v12 = vadd.f32 %v2043_v46, %v8525_v14  ;;  %v2069_v45 = vadd.f32 %v2044_v53, %v8528_v21  ;;  %v10518_v43 = vld [vmem:[#allocation23_spill] sm:$0xff] }
 0x172   : > { %v2070_v63 = vadd.f32 %v2045_v51, %v8531_v19  ;;  %v2071_v41 = vadd.f32 %v2046_v47, %v8543_v4  ;;  %v2072_v8 = vadd.f32 %v2047_v32, %v8546_v58  ;;  %v2073_v17 = vadd.f32 %v2048_v5, %v8549_v33  ;;  %v10502_v33 = vld [vmem:[#allocation19_spill] sm:$0xff]  ;;  %v10522_v51 = vld [vmem:[#allocation24_spill] sm:$0xff] }
 0x173   : > { %v2074_v23 = vadd.f32 %v2049_v15, %v8552_v50  ;;  %v2075_v10 = vadd.f32 %v2050_v28, %v8564_v18  ;;  %v2076_v60 = vadd.f32 %v2051_v49, %v8567_v48  ;;  %v2077_v27 = vadd.f32 %v2052_v42, %v8570_v16  ;;  %v10503_v50 = vld [vmem:[#allocation17_spill] sm:$0xff]  ;;  %v10506_v48 = vld [vmem:[#allocation20_spill] sm:$0xff]  ;;  %v10519_v59 = vld [vmem:[#allocation47_spill] sm:$0xff] }
 0x174   : > { %v2078_v14 = vadd.f32 %v2053_v3, %v8573_v9  ;;  %v2079_v21 = vadd.f32 %v2054_v35, %v8585_v54  ;;  %v8690_v19 = vadd.f32 %v2055_v24, %v8588_v36  ;;  %v8693_v4 = vadd.f32 %v2056_v44, %v8591_v61  ;;  %v10507_v16 = vld [vmem:[#allocation44_spill] sm:$0xff]  ;;  %v3609_v54 = vld [vmem:[%s10324_s4 + $0x1518] sm:$0xff]  ;;  %v10510_v36 = vld [vmem:[#allocation21_spill] sm:$0xff] }
 0x175   : > { %v8696_v58 = vadd.f32 %v2057_v13, %v8594_v11  ;;  %v10504_v18 = vmax.f32 %v10502_v33, %v10503_v50  ;;  %v10508_v2 = vmax.f32 %v10506_v48, %v10507_v16  ;;  %v10511_v61 = vld [vmem:[#allocation45_spill] sm:$0xff]  ;;  %v10514_v11 = vld [vmem:[#allocation22_spill] sm:$0xff]  ;;  %v10520_v46 = vmax.f32 %v10518_v43, %v10519_v59  ;;  %v10523_v47 = vld [vmem:[#allocation48_spill] sm:$0xff] }
 0x176   : > { %10499 = vst [vmem:[#allocation68_spill] sm:$0xff] %v8690_v19  ;;  %10500 = vst [vmem:[#allocation69_spill] sm:$0xff] %v8693_v4  ;;  %v10512_v6 = vmax.f32 %v10510_v36, %v10511_v61  ;;  %v10516_v56 = vmax.f32 %v10514_v11, %v10515_v25  ;;  %v10524_v32 = vmax.f32 %v10522_v51, %v10523_v47  ;;  %v3610_v15 = vld [vmem:[%s10324_s4 + $0x1520] sm:$0xff]  ;;  %v3611_v28 = vld [vmem:[%s10324_s4 + $0x1528] sm:$0xff] }
 0x177   : > { %10501 = vst [vmem:[#allocation70_spill] sm:$0xff] %v8696_v58  ;;  %v8701_v62 = vmax.f32 %v10504_v18, %v2059_v39  ;;  %v8706_v9 = vmax.f32 %v10508_v2, %v2060_v55  ;;  %v8724_v53 = vmax.f32 %v10520_v46, %v2063_v0  ;;  %v3612_v49 = vld [vmem:[%s10324_s4 + $0x1530] sm:$0xff]  ;;  %v3613_v42 = vld [vmem:[%s10324_s4 + $0x1538] sm:$0xff]  ;;  %v10526_v3 = vld [vmem:[#allocation25_spill] sm:$0xff] }
 0x178   : > { %v8714_v26 = vmax.f32 %v10512_v6, %v2061_v34  ;;  %v8719_v57 = vmax.f32 %v10516_v56, %v2062_v29  ;;  %v8729_v5 = vmax.f32 %v10524_v32, %v2064_v30  ;;  %v10527_v35 = vld [vmem:[#allocation49_spill] sm:$0xff]  ;;  %v10530_v13 = vld [vmem:[#allocation26_spill] sm:$0xff]  ;;  %v10534_v29 = vld [vmem:[#allocation27_spill] sm:$0xff] }
 0x179   : > { %10505 = vst [vmem:[#allocation19_spill] sm:$0xff] %v8701_v62  ;;  %10509 = vst [vmem:[#allocation17_spill] sm:$0xff] %v8706_v9  ;;  %v10528_v24 = vmax.f32 %v10526_v3, %v10527_v35  ;;  %v10531_v39 = vld [vmem:[#allocation50_spill] sm:$0xff]  ;;  %v10535_v0 = vld [vmem:[#allocation51_spill] sm:$0xff] }
 0x17a   : > { %10513 = vst [vmem:[#allocation20_spill] sm:$0xff] %v8714_v26  ;;  %10517 = vst [vmem:[#allocation44_spill] sm:$0xff] %v8719_v57  ;;  %v10532_v55 = vmax.f32 %v10530_v13, %v10531_v39  ;;  %v10536_v30 = vmax.f32 %v10534_v29, %v10535_v0  ;;  %v10538_v50 = vld [vmem:[#allocation28_spill] sm:$0xff]  ;;  %v3615_v2 = vld [vmem:[%s10324_s4 + $0x1548] sm:$0xff] }
 0x17b   : > { %10521 = vst [vmem:[#allocation21_spill] sm:$0xff] %v8724_v53  ;;  %10525 = vst [vmem:[#allocation45_spill] sm:$0xff] %v8729_v5  ;;  %v8746_v44 = vmax.f32 %v10528_v24, %v2065_v38  ;;  %v10539_v18 = vld [vmem:[#allocation52_spill] sm:$0xff]  ;;  %v10542_v36 = vld [vmem:[#allocation29_spill] sm:$0xff] }
 0x17c   : > { %v8751_v34 = vmax.f32 %v10532_v55, %v2066_v52  ;;  %v8756_v33 = vmax.f32 %v10536_v30, %v2067_v22  ;;  %v10540_v48 = vmax.f32 %v10538_v50, %v10539_v18  ;;  %v3614_v38 = vld [vmem:[%s10324_s4 + $0x1540] sm:$0xff]  ;;  %v3616_v52 = vld [vmem:[%s10324_s4 + $0x1550] sm:$0xff]  ;;  %v3617_v22 = vld [vmem:[%s10324_s4 + $0x1558] sm:$0xff] }
 0x17d   : > { %10529 = vst [vmem:[#allocation22_spill] sm:$0xff] %v8746_v44  ;;  %v10543_v61 = vld [vmem:[#allocation53_spill] sm:$0xff]  ;;  %v10546_v11 = vld [vmem:[#allocation30_spill] sm:$0xff]  ;;  %v10550_v59 = vld [vmem:[#allocation31_spill] sm:$0xff] }
 0x17e   : > { %10533 = vst [vmem:[#allocation46_spill] sm:$0xff] %v8751_v34  ;;  %10537 = vst [vmem:[#allocation23_spill] sm:$0xff] %v8756_v33  ;;  %v8761_v16 = vmax.f32 %v10540_v48, %v2068_v12  ;;  %v10544_v12 = vmax.f32 %v10542_v36, %v10543_v61  ;;  %v10547_v25 = vld [vmem:[#allocation54_spill] sm:$0xff]  ;;  %v10551_v46 = vld [vmem:[#allocation55_spill] sm:$0xff] }
 0x17f   : > { %v10548_v56 = vmax.f32 %v10546_v11, %v10547_v25  ;;  %v10552_v51 = vmax.f32 %v10550_v59, %v10551_v46  ;;  %v10554_v32 = vld [vmem:[#allocation32_spill] sm:$0xff]  ;;  %v3619_v13 = vld [vmem:[%s10324_s4 + $0x1568] sm:$0xff]  ;;  %v10562_v0 = vld [vmem:[#allocation34_spill] sm:$0xff] }
 0x180   : > { %10541 = vst [vmem:[#allocation47_spill] sm:$0xff] %v8761_v16  ;;  %v8778_v6 = vmax.f32 %v10544_v12, %v2069_v45  ;;  %v10555_v3 = vld [vmem:[#allocation56_spill] sm:$0xff]  ;;  %v10558_v39 = vld [vmem:[#allocation33_spill] sm:$0xff]  ;;  %v10563_v30 = vld [vmem:[#allocation58_spill] sm:$0xff] }
 0x181   : > { %v8783_v43 = vmax.f32 %v10548_v56, %v2070_v63  ;;  %v8788_v47 = vmax.f32 %v10552_v51, %v2071_v41  ;;  %v10556_v35 = vmax.f32 %v10554_v32, %v10555_v3  ;;  %v3618_v45 = vld [vmem:[%s10324_s4 + $0x1560] sm:$0xff]  ;;  %v3620_v63 = vld [vmem:[%s10324_s4 + $0x1570] sm:$0xff]  ;;  %v3621_v41 = vld [vmem:[%s10324_s4 + $0x1578] sm:$0xff]  ;;  %v10564_v50 = vmax.f32 %v10562_v0, %v10563_v30 }
 0x182   : > { %10545 = vst [vmem:[#allocation24_spill] sm:$0xff] %v8778_v6  ;;  %v10559_v55 = vld [vmem:[#allocation57_spill] sm:$0xff]  ;;  %v10566_v48 = vld [vmem:[#allocation35_spill] sm:$0xff]  ;;  %v10570_v11 = vld [vmem:[#allocation36_spill] sm:$0xff] }
 0x183   : > { %10549 = vst [vmem:[#allocation48_spill] sm:$0xff] %v8783_v43  ;;  %10553 = vst [vmem:[#allocation25_spill] sm:$0xff] %v8788_v47  ;;  %v8793_v24 = vmax.f32 %v10556_v35, %v2072_v8  ;;  %v10560_v8 = vmax.f32 %v10558_v39, %v10559_v55  ;;  %v8815_v18 = vmax.f32 %v10564_v50, %v2074_v23  ;;  %v10567_v36 = vld [vmem:[#allocation59_spill] sm:$0xff]  ;;  %v10571_v25 = vld [vmem:[#allocation60_spill] sm:$0xff] }
 0x184   : > { %v10568_v61 = vmax.f32 %v10566_v48, %v10567_v36  ;;  %v10572_v56 = vmax.f32 %v10570_v11, %v10571_v25  ;;  %v3623_v46 = vld [vmem:[%s10324_s4 + $0x1588] sm:$0xff]  ;;  %v3624_v23 = vld [vmem:[%s10324_s4 + $0x1590] sm:$0xff]  ;;  %v10582_v0 = vld [vmem:[#allocation39_spill] sm:$0xff] }
 0x185   : > { %10557 = vst [vmem:[#allocation49_spill] sm:$0xff] %v8793_v24  ;;  %v8810_v29 = vmax.f32 %v10560_v8, %v2073_v17  ;;  %10565 = vst [vmem:[#allocation50_spill] sm:$0xff] %v8815_v18  ;;  %v3622_v17 = vld [vmem:[%s10324_s4 + $0x1580] sm:$0xff]  ;;  %v10574_v51 = vld [vmem:[#allocation37_spill] sm:$0xff] }
 0x186   : > { %v8820_v12 = vmax.f32 %v10568_v61, %v2075_v10  ;;  %v8825_v59 = vmax.f32 %v10572_v56, %v2076_v60  ;;  %v3625_v10 = vld [vmem:[%s10324_s4 + $0x1598] sm:$0xff]  ;;  %v10575_v32 = vld [vmem:[#allocation61_spill] sm:$0xff]  ;;  %v10578_v35 = vld [vmem:[#allocation38_spill] sm:$0xff] }
 0x187   : > { %10561 = vst [vmem:[#allocation26_spill] sm:$0xff] %v8810_v29  ;;  %v10576_v60 = vmax.f32 %v10574_v51, %v10575_v32  ;;  %v10579_v39 = vld [vmem:[#allocation62_spill] sm:$0xff]  ;;  %v10583_v30 = vld [vmem:[#allocation63_spill] sm:$0xff]  ;;  %v3626_v36 = vld [vmem:[%s10324_s4 + $0x15a0] sm:$0xff] }
 0x188   : > { %10569 = vst [vmem:[#allocation27_spill] sm:$0xff] %v8820_v12  ;;  %10573 = vst [vmem:[#allocation51_spill] sm:$0xff] %v8825_v59  ;;  %v10580_v55 = vmax.f32 %v10578_v35, %v10579_v39  ;;  %v10584_v50 = vmax.f32 %v10582_v0, %v10583_v30  ;;  %v3627_v61 = vld [vmem:[%s10324_s4 + $0x15a8] sm:$0xff]  ;;  %v10586_v11 = vld [vmem:[#allocation10_spill] sm:$0xff] }
 0x189   : > { %v8842_v3 = vmax.f32 %v10576_v60, %v2077_v27  ;;  %v3628_v27 = vld [vmem:[%s10324_s4 + $0x15b0] sm:$0xff]  ;;  %v8867_v25 = vmul.f32 %v3609_v54, %v10586_v11  ;;  %v3631_v56 = vld [vmem:[%s10324_s4 + $0x15c8] sm:$0xff]  ;;  %v3633_v32 = vld [vmem:[%s10324_s4 + $0x15d8] sm:$0xf]  ;;  %v8882_v60 = vmul.f32 %v3610_v15, %v10586_v11  ;;  %v8885_v54 = vmul.f32 %v3611_v28, %v10586_v11 }
 0x18a   : > { %v8847_v8 = vmax.f32 %v10580_v55, %v2078_v14  ;;  %v8852_v48 = vmax.f32 %v10584_v50, %v2079_v21  ;;  %v3629_v14 = vld [vmem:[%s10324_s4 + $0x15b8] sm:$0xff]  ;;  %v3630_v21 = vld [vmem:[%s10324_s4 + $0x15c0] sm:$0xff]  ;;  %v3632_v51 = vld [vmem:[%s10324_s4 + $0x15d0] sm:$0xff]  ;;  %v8888_v35 = vmul.f32 %v3612_v49, %v10586_v11  ;;  %v8891_v39 = vmul.f32 %v3613_v42, %v10586_v11 }
 0x18b   : > { %10577 = vst [vmem:[#allocation28_spill] sm:$0xff] %v8842_v3  ;;  %v8894_v55 = vmul.f32 %v3614_v38, %v10586_v11  ;;  %v8897_v0 = vmul.f32 %v3615_v2, %v10586_v11  ;;  %v8900_v30 = vmul.f32 %v3616_v52, %v10586_v11  ;;  %v8903_v15 = vmul.f32 %v3617_v22, %v10586_v11  ;;  %v3634_v28 = vld [vmem:[%s10324_s4 + $0x15e0] sm:$0xff]  ;;  %v3635_v49 = vld [vmem:[%s10324_s4 + $0x15e8] sm:$0xff]  ;;  %v3636_v42 = vld [vmem:[%s10324_s4 + $0x15f0] sm:$0xff] }
 0x18c   : > { %10581 = vst [vmem:[#allocation52_spill] sm:$0xff] %v8847_v8  ;;  %10585 = vst [vmem:[#allocation29_spill] sm:$0xff] %v8852_v48  ;;  %v8915_v38 = vmul.f32 %v3618_v45, %v10586_v11  ;;  %v8918_v2 = vmul.f32 %v3619_v13, %v10586_v11  ;;  %v8921_v52 = vmul.f32 %v3620_v63, %v10586_v11  ;;  %v3637_v50 = vld [vmem:[%s10324_s4 + $0x15f8] sm:$0xff]  ;;  %v3638_v48 = vld [vmem:[%s10324_s4 + $0x1600] sm:$0xff] }
 0x18d   : > { %v8924_v22 = vmul.f32 %v3621_v41, %v10586_v11  ;;  %v3639_v45 = vld [vmem:[%s10324_s4 + $0x1608] sm:$0xff]  ;;  %v8936_v13 = vmul.f32 %v3622_v17, %v10586_v11  ;;  %v8939_v63 = vmul.f32 %v3623_v46, %v10586_v11  ;;  %v8942_v41 = vmul.f32 %v3624_v23, %v10586_v11  ;;  %v3640_v4 = vld [vmem:[%s10324_s4 + $0x1610] sm:$0xff]  ;;  %v3641_v31 = vld [vmem:[%s10324_s4 + $0x1618] sm:$0xff] }
 0x18e   : > { %v8945_v58 = vmul.f32 %v3625_v10, %v10586_v11  ;;  %v3642_v17 = vld [vmem:[%s10324_s4 + $0x1620] sm:$0xff]  ;;  %v8957_v46 = vmul.f32 %v3626_v36, %v10586_v11  ;;  %v8960_v23 = vmul.f32 %v3627_v61, %v10586_v11  ;;  %v8963_v10 = vmul.f32 %v3628_v27, %v10586_v11  ;;  %v3643_v8 = vld [vmem:[%s10324_s4 + $0x1628] sm:$0xff]  ;;  %v3644_v3 = vld [vmem:[%s10324_s4 + $0x1630] sm:$0xff] }
 0x18f   : > { %v8966_v7 = vmul.f32 %v3629_v14, %v10586_v11  ;;  %v3645_v36 = vld [vmem:[%s10324_s4 + $0x1638] sm:$0xff]  ;;  %v8978_v61 = vmul.f32 %v3630_v21, %v10586_v11  ;;  %v8981_v27 = vmul.f32 %v3631_v56, %v10586_v11  ;;  %v8984_v14 = vmul.f32 %v3632_v51, %v10586_v11  ;;  %v3646_v59 = vld [vmem:[%s10324_s4 + $0x1640] sm:$0xff]  ;;  %v3647_v12 = vld [vmem:[%s10324_s4 + $0x1648] sm:$0xff] }
 0x190   : > { %v8987_v19 = vmul.f32 %v3633_v32, %v10586_v11  ;;  %v3648_v21 = vld [vmem:[%s10324_s4 + $0x1650] sm:$0xff]  ;;  %v3649_v56 = vld [vmem:[%s10324_s4 + $0x1658] sm:$0xff]  ;;  %v3650_v11 = vld [vmem:[%s10324_s4 + $0x1660] sm:$0xff] }
 0x191   : > { %v3651_v51 = vld [vmem:[%s10324_s4 + $0x1668] sm:$0xff]  ;;  %v10587_v32 = vld [vmem:[#allocation11_spill] sm:$0xff]  ;;  %v3652_v43 = vld [vmem:[%s10324_s4 + $0x1670] sm:$0xff] }
 0x192   : > { %v2186_v18 = vmul.f32 %v3634_v28, %v10587_v32  ;;  %v2187_v29 = vmul.f32 %v3635_v49, %v10587_v32  ;;  %v2188_v24 = vmul.f32 %v3636_v42, %v10587_v32  ;;  %v2189_v47 = vmul.f32 %v3637_v50, %v10587_v32  ;;  %v3653_v6 = vld [vmem:[%s10324_s4 + $0x1678] sm:$0xff]  ;;  %v3654_v16 = vld [vmem:[%s10324_s4 + $0x1680] sm:$0xff]  ;;  %v3655_v33 = vld [vmem:[%s10324_s4 + $0x1688] sm:$0xff] }
 0x193   : > { %v2190_v28 = vmul.f32 %v3638_v48, %v10587_v32  ;;  %v2191_v49 = vmul.f32 %v3639_v45, %v10587_v32  ;;  %v2192_v42 = vmul.f32 %v3640_v4, %v10587_v32  ;;  %v2193_v50 = vmul.f32 %v3641_v31, %v10587_v32  ;;  %v3656_v34 = vld [vmem:[%s10324_s4 + $0x1690] sm:$0xff]  ;;  %v3657_v44 = vld [vmem:[%s10324_s4 + $0x1698] sm:$0xff]  ;;  %v3658_v5 = vld [vmem:[%s10324_s4 + $0x16a0] sm:$0xf] }
 0x194   : > { %v2194_v48 = vmul.f32 %v3642_v17, %v10587_v32  ;;  %v2195_v45 = vmul.f32 %v3643_v8, %v10587_v32  ;;  %v2196_v4 = vmul.f32 %v3644_v3, %v10587_v32  ;;  %v2197_v31 = vmul.f32 %v3645_v36, %v10587_v32 }
 0x195   : > { %v2198_v53 = vmul.f32 %v3646_v59, %v10587_v32  ;;  %v2199_v57 = vmul.f32 %v3647_v12, %v10587_v32  ;;  %v2200_v26 = vmul.f32 %v3648_v21, %v10587_v32  ;;  %v2201_v9 = vmul.f32 %v3649_v56, %v10587_v32 }
 0x196   : > { %v2202_v17 = vmul.f32 %v3650_v11, %v10587_v32  ;;  %v2203_v8 = vmul.f32 %v3651_v51, %v10587_v32  ;;  %v2204_v3 = vmul.f32 %v3652_v43, %v10587_v32  ;;  %v2205_v36 = vmul.f32 %v3653_v6, %v10587_v32 }
 0x197   : > { %v2206_v62 = vmul.f32 %v3654_v16, %v10587_v32  ;;  %v2207_v37 = vmul.f32 %v3655_v33, %v10587_v32  ;;  %v2208_v59 = vmul.f32 %v3656_v34, %v10587_v32  ;;  %v2209_v12 = vmul.f32 %v3657_v44, %v10587_v32  ;;  %v3659_v44 = vld [vmem:[%s10324_s4 + $0x16a8] sm:$0xff] }
 0x198   : > { %v2210_v21 = vmul.f32 %v3658_v5, %v10587_v32  ;;  %v9054_v56 = vadd.f32 %v2186_v18, %v8867_v25  ;;  %v9057_v11 = vadd.f32 %v2187_v29, %v8882_v60  ;;  %v9060_v43 = vadd.f32 %v2188_v24, %v8885_v54  ;;  %v3660_v18 = vld [vmem:[%s10324_s4 + $0x16b0] sm:$0xff]  ;;  %v3661_v25 = vld [vmem:[%s10324_s4 + $0x16b8] sm:$0xff]  ;;  %v3662_v60 = vld [vmem:[%s10324_s4 + $0x16c0] sm:$0xff] }
 0x199   : > { %v9063_v6 = vadd.f32 %v2189_v47, %v8888_v35  ;;  %v9066_v33 = vadd.f32 %v2190_v28, %v8891_v39  ;;  %v9069_v34 = vadd.f32 %v2191_v49, %v8894_v55  ;;  %v9072_v5 = vadd.f32 %v2192_v42, %v8897_v0  ;;  %v3663_v0 = vld [vmem:[%s10324_s4 + $0x16c8] sm:$0xff]  ;;  %v3676_v32 = vld [vmem:[%s10324_s4 + $0x1730] sm:$0xff]  ;;  %v3677_v28 = vld [vmem:[%s10324_s4 + $0x1738] sm:$0xff] }
 0x19a   : > { %v9078_v16 = vadd.f32 %v2193_v50, %v8900_v30  ;;  %v9081_v24 = vadd.f32 %v2194_v48, %v8903_v15  ;;  %v9084_v47 = vadd.f32 %v2195_v45, %v8915_v38  ;;  %v9087_v29 = vadd.f32 %v2196_v4, %v8918_v2  ;;  %v3664_v30 = vld [vmem:[%s10324_s4 + $0x16d0] sm:$0xff]  ;;  %v3665_v15 = vld [vmem:[%s10324_s4 + $0x16d8] sm:$0xff]  ;;  %v3666_v2 = vld [vmem:[%s10324_s4 + $0x16e0] sm:$0xff] }
 0x19b   : > { %v9099_v54 = vadd.f32 %v2197_v31, %v8921_v52  ;;  %v9102_v35 = vadd.f32 %v2198_v53, %v8924_v22  ;;  %v9105_v39 = vadd.f32 %v2199_v57, %v8936_v13  ;;  %v9108_v55 = vadd.f32 %v2200_v26, %v8939_v63  ;;  %v3667_v52 = vld [vmem:[%s10324_s4 + $0x16e8] sm:$0xff]  ;;  %v3678_v45 = vld [vmem:[%s10324_s4 + $0x1740] sm:$0xff]  ;;  %v3680_v31 = vld [vmem:[%s10324_s4 + $0x1750] sm:$0xff] }
 0x19c   : > { %v9120_v53 = vadd.f32 %v2201_v9, %v8942_v41  ;;  %v9123_v57 = vadd.f32 %v2202_v17, %v8945_v58  ;;  %v9126_v26 = vadd.f32 %v2203_v8, %v8957_v46  ;;  %v9129_v38 = vadd.f32 %v2204_v3, %v8960_v23  ;;  %v3668_v9 = vld [vmem:[%s10324_s4 + $0x16f0] sm:$0xff]  ;;  %v3669_v41 = vld [vmem:[%s10324_s4 + $0x16f8] sm:$0xff]  ;;  %v3670_v46 = vld [vmem:[%s10324_s4 + $0x1700] sm:$0xff] }
 0x19d   : > { %v9141_v58 = vadd.f32 %v2205_v36, %v8963_v10  ;;  %v9144_v22 = vadd.f32 %v2206_v62, %v8966_v7  ;;  %v9147_v13 = vadd.f32 %v2207_v37, %v8978_v61  ;;  %v9150_v63 = vadd.f32 %v2208_v59, %v8981_v27  ;;  %v3671_v23 = vld [vmem:[%s10324_s4 + $0x1708] sm:$0xff]  ;;  %v3672_v62 = vld [vmem:[%s10324_s4 + $0x1710] sm:$0xff]  ;;  %v3673_v10 = vld [vmem:[%s10324_s4 + $0x1718] sm:$0xff] }
 0x19e   : > { %v9162_v7 = vadd.f32 %v2209_v12, %v8984_v14  ;;  %v9165_v37 = vadd.f32 %v2210_v21, %v8987_v19  ;;  %v3674_v61 = vld [vmem:[%s10324_s4 + $0x1720] sm:$0xff]  ;;  %v3675_v19 = vld [vmem:[%s10324_s4 + $0x1728] sm:$0xff]  ;;  %v3681_v59 = vld [vmem:[%s10324_s4 + $0x1758] sm:$0xff] }
 0x19f   : > { %v10588_v27 = vld [vmem:[#allocation12_spill] sm:$0xff]  ;;  %v3679_v4 = vld [vmem:[%s10324_s4 + $0x1748] sm:$0xff] }
 0x1a0   : > { %v2262_v51 = vmul.f32 %v3659_v44, %v10588_v27  ;;  %v2263_v14 = vmul.f32 %v3660_v18, %v10588_v27  ;;  %v2264_v49 = vmul.f32 %v3661_v25, %v10588_v27  ;;  %v2265_v42 = vmul.f32 %v3662_v60, %v10588_v27  ;;  %v3682_v12 = vld [vmem:[%s10324_s4 + $0x1760] sm:$0xff]  ;;  %v3683_v21 = vld [vmem:[%s10324_s4 + $0x1768] sm:$0xf] }
 0x1a1   : > { %v2266_v50 = vmul.f32 %v3663_v0, %v10588_v27  ;;  %v2267_v48 = vmul.f32 %v3664_v30, %v10588_v27  ;;  %v2268_v17 = vmul.f32 %v3665_v15, %v10588_v27  ;;  %v2269_v8 = vmul.f32 %v3666_v2, %v10588_v27 }
 0x1a2   : > { %v2270_v3 = vmul.f32 %v3667_v52, %v10588_v27  ;;  %v2271_v36 = vmul.f32 %v3668_v9, %v10588_v27  ;;  %v2272_v44 = vmul.f32 %v3669_v41, %v10588_v27  ;;  %v2273_v18 = vmul.f32 %v3670_v46, %v10588_v27 }
 0x1a3   : > { %v2274_v25 = vmul.f32 %v3671_v23, %v10588_v27  ;;  %v2275_v60 = vmul.f32 %v3672_v62, %v10588_v27  ;;  %v2276_v0 = vmul.f32 %v3673_v10, %v10588_v27  ;;  %v2277_v30 = vmul.f32 %v3674_v61, %v10588_v27 }
 0x1a4   : > { %v2278_v15 = vmul.f32 %v3675_v19, %v10588_v27  ;;  %v2279_v2 = vmul.f32 %v3676_v32, %v10588_v27  ;;  %v2280_v52 = vmul.f32 %v3677_v28, %v10588_v27  ;;  %v2281_v9 = vmul.f32 %v3678_v45, %v10588_v27 }
 0x1a5   : > { %v2282_v41 = vmul.f32 %v3679_v4, %v10588_v27  ;;  %v2283_v46 = vmul.f32 %v3680_v31, %v10588_v27  ;;  %v2284_v23 = vmul.f32 %v3681_v59, %v10588_v27  ;;  %v2285_v62 = vmul.f32 %v3682_v12, %v10588_v27  ;;  %v3693_v31 = vld [vmem:[%s10324_s4 + $0x17b8] sm:$0xff] }
 0x1a6   : > { %v2286_v10 = vmul.f32 %v3683_v21, %v10588_v27  ;;  %v9229_v61 = vadd.f32 %v2262_v51, %v9054_v56  ;;  %v9232_v19 = vadd.f32 %v2263_v14, %v9057_v11  ;;  %v9235_v32 = vadd.f32 %v2264_v49, %v9060_v43  ;;  %v3684_v43 = vld [vmem:[%s10324_s4 + $0x1770] sm:$0xff]  ;;  %v3687_v51 = vld [vmem:[%s10324_s4 + $0x1788] sm:$0xff] }
 0x1a7   : > { %v9238_v28 = vadd.f32 %v2265_v42, %v9063_v6  ;;  %v9241_v45 = vadd.f32 %v2266_v50, %v9066_v33  ;;  %v9244_v4 = vadd.f32 %v2267_v48, %v9069_v34  ;;  %v9247_v27 = vadd.f32 %v2268_v17, %v9072_v5  ;;  %v3685_v6 = vld [vmem:[%s10324_s4 + $0x1778] sm:$0xff]  ;;  %v3686_v33 = vld [vmem:[%s10324_s4 + $0x1780] sm:$0xff]  ;;  %v3688_v14 = vld [vmem:[%s10324_s4 + $0x1790] sm:$0xff] }
 0x1a8   : > { %v9250_v56 = vadd.f32 %v2269_v8, %v9078_v16  ;;  %v9253_v11 = vadd.f32 %v2270_v3, %v9081_v24  ;;  %v9265_v34 = vadd.f32 %v2271_v36, %v9084_v47  ;;  %v9268_v5 = vadd.f32 %v2272_v44, %v9087_v29  ;;  %v3689_v47 = vld [vmem:[%s10324_s4 + $0x1798] sm:$0xff]  ;;  %v3690_v42 = vld [vmem:[%s10324_s4 + $0x17a0] sm:$0xff]  ;;  %v3691_v50 = vld [vmem:[%s10324_s4 + $0x17a8] sm:$0xff] }
 0x1a9   : > { %v9271_v16 = vadd.f32 %v2273_v18, %v9099_v54  ;;  %v9274_v24 = vadd.f32 %v2274_v25, %v9102_v35  ;;  %v9286_v29 = vadd.f32 %v2275_v60, %v9105_v39  ;;  %v9289_v54 = vadd.f32 %v2276_v0, %v9108_v55  ;;  %v3692_v39 = vld [vmem:[%s10324_s4 + $0x17b0] sm:$0xff]  ;;  %v3694_v17 = vld [vmem:[%s10324_s4 + $0x17c0] sm:$0xff]  ;;  %v3697_v36 = vld [vmem:[%s10324_s4 + $0x17d8] sm:$0xff] }
 0x1aa   : > { %v9292_v35 = vadd.f32 %v2277_v30, %v9120_v53  ;;  %v9295_v49 = vadd.f32 %v2278_v15, %v9123_v57  ;;  %v9307_v55 = vadd.f32 %v2279_v2, %v9126_v26  ;;  %v9310_v53 = vadd.f32 %v2280_v52, %v9129_v38  ;;  %v3695_v26 = vld [vmem:[%s10324_s4 + $0x17c8] sm:$0xff]  ;;  %v3696_v3 = vld [vmem:[%s10324_s4 + $0x17d0] sm:$0xff]  ;;  %v3702_v18 = vld [vmem:[%s10324_s4 + $0x1800] sm:$0xff] }
 0x1ab   : > { %v9313_v57 = vadd.f32 %v2281_v9, %v9141_v58  ;;  %v9316_v48 = vadd.f32 %v2282_v41, %v9144_v22  ;;  %v9328_v38 = vadd.f32 %v2283_v46, %v9147_v13  ;;  %v9331_v58 = vadd.f32 %v2284_v23, %v9150_v63  ;;  %v3698_v13 = vld [vmem:[%s10324_s4 + $0x17e0] sm:$0xff]  ;;  %v3699_v63 = vld [vmem:[%s10324_s4 + $0x17e8] sm:$0xff]  ;;  %v3704_v60 = vld [vmem:[%s10324_s4 + $0x1810] sm:$0xff] }
 0x1ac   : > { %v9334_v22 = vadd.f32 %v2285_v62, %v9162_v7  ;;  %v9337_v8 = vadd.f32 %v2286_v10, %v9165_v37  ;;  %v3700_v7 = vld [vmem:[%s10324_s4 + $0x17f0] sm:$0xff]  ;;  %v3701_v37 = vld [vmem:[%s10324_s4 + $0x17f8] sm:$0xff]  ;;  %v2338_v59 = vmul.f32 %v3684_v43, %v10494_v1  ;;  %v2339_v12 = vmul.f32 %v3685_v6, %v10494_v1  ;;  %v3703_v25 = vld [vmem:[%s10324_s4 + $0x1808] sm:$0xff] }
 0x1ad   : > { %v2340_v21 = vmul.f32 %v3686_v33, %v10494_v1  ;;  %v2341_v44 = vmul.f32 %v3687_v51, %v10494_v1  ;;  %v2342_v0 = vmul.f32 %v3688_v14, %v10494_v1  ;;  %v2343_v30 = vmul.f32 %v3689_v47, %v10494_v1  ;;  %v3705_v52 = vld [vmem:[%s10324_s4 + $0x1818] sm:$0xff]  ;;  %v3706_v9 = vld [vmem:[%s10324_s4 + $0x1820] sm:$0xff]  ;;  %v3707_v41 = vld [vmem:[%s10324_s4 + $0x1828] sm:$0xff] }
 0x1ae   : > { %v2344_v15 = vmul.f32 %v3690_v42, %v10494_v1  ;;  %v2345_v2 = vmul.f32 %v3691_v50, %v10494_v1  ;;  %v2346_v46 = vmul.f32 %v3692_v39, %v10494_v1  ;;  %v2347_v23 = vmul.f32 %v3693_v31, %v10494_v1  ;;  %v3708_v43 = vld [vmem:[%s10324_s4 + $0x1830] sm:$0xf] }
 0x1af   : > { %v2348_v62 = vmul.f32 %v3694_v17, %v10494_v1  ;;  %v2349_v10 = vmul.f32 %v3695_v26, %v10494_v1  ;;  %v2350_v6 = vmul.f32 %v3696_v3, %v10494_v1  ;;  %v2351_v33 = vmul.f32 %v3697_v36, %v10494_v1 }
 0x1b0   : > { %v2352_v51 = vmul.f32 %v3698_v13, %v10494_v1  ;;  %v2353_v14 = vmul.f32 %v3699_v63, %v10494_v1  ;;  %v2354_v47 = vmul.f32 %v3700_v7, %v10494_v1  ;;  %v2355_v42 = vmul.f32 %v3701_v37, %v10494_v1 }
 0x1b1   : > { %v2356_v50 = vmul.f32 %v3702_v18, %v10494_v1  ;;  %v2357_v39 = vmul.f32 %v3703_v25, %v10494_v1  ;;  %v2358_v31 = vmul.f32 %v3704_v60, %v10494_v1  ;;  %v2359_v17 = vmul.f32 %v3705_v52, %v10494_v1  ;;  %v3716_v60 = vld [vmem:[%s10324_s4 + $0x1870] sm:$0xff]  ;;  %v3723_v52 = vld [vmem:[%s10324_s4 + $0x18a8] sm:$0xff] }
 0x1b2   : > { %v2360_v26 = vmul.f32 %v3706_v9, %v10494_v1  ;;  %v2361_v3 = vmul.f32 %v3707_v41, %v10494_v1  ;;  %v2362_v36 = vmul.f32 %v3708_v43, %v10494_v1  ;;  %v9404_v13 = vadd.f32 %v2338_v59, %v9229_v61  ;;  %v3709_v61 = vld [vmem:[%s10324_s4 + $0x1838] sm:$0xff]  ;;  %v3724_v9 = vld [vmem:[%s10324_s4 + $0x18b0] sm:$0xff] }
 0x1b3   : > { %v9407_v63 = vadd.f32 %v2339_v12, %v9232_v19  ;;  %v9410_v7 = vadd.f32 %v2340_v21, %v9235_v32  ;;  %v9413_v37 = vadd.f32 %v2341_v44, %v9238_v28  ;;  %v9416_v18 = vadd.f32 %v2342_v0, %v9241_v45  ;;  %v3713_v12 = vld [vmem:[%s10324_s4 + $0x1858] sm:$0xff]  ;;  %v3714_v21 = vld [vmem:[%s10324_s4 + $0x1860] sm:$0xff]  ;;  %v10589_v41 = vld [vmem:[#allocation14_spill] sm:$0xff] }
 0x1b4   : > { %v9419_v25 = vadd.f32 %v2343_v30, %v9244_v4  ;;  %v9422_v1 = vadd.f32 %v2344_v15, %v9247_v27  ;;  %v9428_v19 = vadd.f32 %v2345_v2, %v9250_v56  ;;  %v9431_v32 = vadd.f32 %v2346_v46, %v9253_v11  ;;  %v3710_v4 = vld [vmem:[%s10324_s4 + $0x1840] sm:$0xff]  ;;  %v3711_v27 = vld [vmem:[%s10324_s4 + $0x1848] sm:$0xff]  ;;  %v3712_v56 = vld [vmem:[%s10324_s4 + $0x1850] sm:$0xff] }
 0x1b5   : > { %v9434_v28 = vadd.f32 %v2347_v23, %v9265_v34  ;;  %v9437_v45 = vadd.f32 %v2348_v62, %v9268_v5  ;;  %v9449_v11 = vadd.f32 %v2349_v10, %v9271_v16  ;;  %v9452_v34 = vadd.f32 %v2350_v6, %v9274_v24  ;;  %v3715_v16 = vld [vmem:[%s10324_s4 + $0x1868] sm:$0xff]  ;;  %v3717_v0 = vld [vmem:[%s10324_s4 + $0x1878] sm:$0xff]  ;;  %v3720_v2 = vld [vmem:[%s10324_s4 + $0x1890] sm:$0xff] }
 0x1b6   : > { %v9455_v5 = vadd.f32 %v2351_v33, %v9286_v29  ;;  %v9458_v59 = vadd.f32 %v2352_v51, %v9289_v54  ;;  %v9470_v24 = vadd.f32 %v2353_v14, %v9292_v35  ;;  %v9473_v29 = vadd.f32 %v2354_v47, %v9295_v49  ;;  %v3718_v35 = vld [vmem:[%s10324_s4 + $0x1880] sm:$0xff]  ;;  %v3719_v15 = vld [vmem:[%s10324_s4 + $0x1888] sm:$0xff]  ;;  %v3728_v51 = vld [vmem:[%s10324_s4 + $0x18d0] sm:$0xff] }
 0x1b7   : > { %v9476_v54 = vadd.f32 %v2355_v42, %v9307_v55  ;;  %v9479_v44 = vadd.f32 %v2356_v50, %v9310_v53  ;;  %v9491_v49 = vadd.f32 %v2357_v39, %v9313_v57  ;;  %v9494_v55 = vadd.f32 %v2358_v31, %v9316_v48  ;;  %v3721_v57 = vld [vmem:[%s10324_s4 + $0x1898] sm:$0xff]  ;;  %v3726_v23 = vld [vmem:[%s10324_s4 + $0x18c0] sm:$0xff]  ;;  %v3727_v62 = vld [vmem:[%s10324_s4 + $0x18c8] sm:$0xff] }
 0x1b8   : > { %v9497_v53 = vadd.f32 %v2359_v17, %v9328_v38  ;;  %v9500_v30 = vadd.f32 %v2360_v26, %v9331_v58  ;;  %v9512_v48 = vadd.f32 %v2361_v3, %v9334_v22  ;;  %v9515_v38 = vadd.f32 %v2362_v36, %v9337_v8  ;;  %v3722_v58 = vld [vmem:[%s10324_s4 + $0x18a0] sm:$0xff]  ;;  %v3725_v8 = vld [vmem:[%s10324_s4 + $0x18b8] sm:$0xff]  ;;  %v3731_v17 = vld [vmem:[%s10324_s4 + $0x18e8] sm:$0xff] }
 0x1b9   : > { %v2414_v46 = vmul.f32 %v3709_v61, %v10589_v41  ;;  %v2415_v22 = vmul.f32 %v3710_v4, %v10589_v41  ;;  %v2416_v10 = vmul.f32 %v3711_v27, %v10589_v41  ;;  %v2417_v43 = vmul.f32 %v3712_v56, %v10589_v41  ;;  %v3729_v14 = vld [vmem:[%s10324_s4 + $0x18d8] sm:$0xff]  ;;  %v3730_v47 = vld [vmem:[%s10324_s4 + $0x18e0] sm:$0xff]  ;;  %v3732_v26 = vld [vmem:[%s10324_s4 + $0x18f0] sm:$0xff] }
 0x1ba   : > { %v2418_v6 = vmul.f32 %v3713_v12, %v10589_v41  ;;  %v2419_v33 = vmul.f32 %v3714_v21, %v10589_v41  ;;  %v2420_v42 = vmul.f32 %v3715_v16, %v10589_v41  ;;  %v2421_v50 = vmul.f32 %v3716_v60, %v10589_v41  ;;  %v3733_v3 = vld [vmem:[%s10324_s4 + $0x18f8] sm:$0xf] }
 0x1bb   : > { %v2422_v39 = vmul.f32 %v3717_v0, %v10589_v41  ;;  %v2423_v31 = vmul.f32 %v3718_v35, %v10589_v41  ;;  %v2424_v36 = vmul.f32 %v3719_v15, %v10589_v41  ;;  %v2425_v61 = vmul.f32 %v3720_v2, %v10589_v41 }
 0x1bc   : > { %v2426_v4 = vmul.f32 %v3721_v57, %v10589_v41  ;;  %v2427_v27 = vmul.f32 %v3722_v58, %v10589_v41  ;;  %v2428_v56 = vmul.f32 %v3723_v52, %v10589_v41  ;;  %v2429_v12 = vmul.f32 %v3724_v9, %v10589_v41 }
 0x1bd   : > { %v2430_v21 = vmul.f32 %v3725_v8, %v10589_v41  ;;  %v2431_v16 = vmul.f32 %v3726_v23, %v10589_v41  ;;  %v2432_v60 = vmul.f32 %v3727_v62, %v10589_v41  ;;  %v2433_v0 = vmul.f32 %v3728_v51, %v10589_v41 }
 0x1be   : > { %v2434_v35 = vmul.f32 %v3729_v14, %v10589_v41  ;;  %v2435_v15 = vmul.f32 %v3730_v47, %v10589_v41  ;;  %v2436_v2 = vmul.f32 %v3731_v17, %v10589_v41  ;;  %v2437_v57 = vmul.f32 %v3732_v26, %v10589_v41  ;;  %v3743_v14 = vld [vmem:[%s10324_s4 + $0x1948] sm:$0xff]  ;;  %v3744_v47 = vld [vmem:[%s10324_s4 + $0x1950] sm:$0xff] }
 0x1bf   : > { %v2438_v58 = vmul.f32 %v3733_v3, %v10589_v41  ;;  %v9579_v52 = vadd.f32 %v2414_v46, %v9404_v13  ;;  %v9582_v9 = vadd.f32 %v2415_v22, %v9407_v63  ;;  %v9585_v8 = vadd.f32 %v2416_v10, %v9410_v7  ;;  %v3734_v7 = vld [vmem:[%s10324_s4 + $0x1900] sm:$0xff]  ;;  %v3737_v46 = vld [vmem:[%s10324_s4 + $0x1918] sm:$0xff] }
 0x1c0   : > { %v9588_v23 = vadd.f32 %v2417_v43, %v9413_v37  ;;  %v9591_v62 = vadd.f32 %v2418_v6, %v9416_v18  ;;  %v9594_v51 = vadd.f32 %v2419_v33, %v9419_v25  ;;  %v9597_v41 = vadd.f32 %v2420_v42, %v9422_v1  ;;  %v3735_v37 = vld [vmem:[%s10324_s4 + $0x1908] sm:$0xff]  ;;  %v3736_v18 = vld [vmem:[%s10324_s4 + $0x1910] sm:$0xff]  ;;  %v3738_v22 = vld [vmem:[%s10324_s4 + $0x1920] sm:$0xff] }
 0x1c1   : > { %v9600_v13 = vadd.f32 %v2421_v50, %v9428_v19  ;;  %v9603_v63 = vadd.f32 %v2422_v39, %v9431_v32  ;;  %v9615_v25 = vadd.f32 %v2423_v31, %v9434_v28  ;;  %v9618_v1 = vadd.f32 %v2424_v36, %v9437_v45  ;;  %v3739_v28 = vld [vmem:[%s10324_s4 + $0x1928] sm:$0xff]  ;;  %v3740_v43 = vld [vmem:[%s10324_s4 + $0x1930] sm:$0xff]  ;;  %v3741_v6 = vld [vmem:[%s10324_s4 + $0x1938] sm:$0xff] }
 0x1c2   : > { %v9621_v19 = vadd.f32 %v2425_v61, %v9449_v11  ;;  %v9624_v32 = vadd.f32 %v2426_v4, %v9452_v34  ;;  %v9636_v45 = vadd.f32 %v2427_v27, %v9455_v5  ;;  %v9639_v11 = vadd.f32 %v2428_v56, %v9458_v59  ;;  %v3742_v5 = vld [vmem:[%s10324_s4 + $0x1940] sm:$0xff]  ;;  %v3747_v39 = vld [vmem:[%s10324_s4 + $0x1968] sm:$0xff]  ;;  %v10590_v31 = vld [vmem:[#allocation15_spill] sm:$0xff] }
 0x1c3   : > { %v9642_v34 = vadd.f32 %v2429_v12, %v9470_v24  ;;  %v9645_v10 = vadd.f32 %v2430_v21, %v9473_v29  ;;  %v9657_v59 = vadd.f32 %v2431_v16, %v9476_v54  ;;  %v9660_v24 = vadd.f32 %v2432_v60, %v9479_v44  ;;  %v3745_v54 = vld [vmem:[%s10324_s4 + $0x1958] sm:$0xff]  ;;  %v3746_v50 = vld [vmem:[%s10324_s4 + $0x1960] sm:$0xff]  ;;  %v3752_v61 = vld [vmem:[%s10324_s4 + $0x1990] sm:$0xff] }
 0x1c4   : > { %v9663_v29 = vadd.f32 %v2433_v0, %v9491_v49  ;;  %v9666_v33 = vadd.f32 %v2434_v35, %v9494_v55  ;;  %v9678_v44 = vadd.f32 %v2435_v15, %v9497_v53  ;;  %v9681_v49 = vadd.f32 %v2436_v2, %v9500_v30  ;;  %v3748_v53 = vld [vmem:[%s10324_s4 + $0x1970] sm:$0xff]  ;;  %v3749_v30 = vld [vmem:[%s10324_s4 + $0x1978] sm:$0xff]  ;;  %v3754_v27 = vld [vmem:[%s10324_s4 + $0x19a0] sm:$0xff] }
 0x1c5   : > { %v9684_v55 = vadd.f32 %v2437_v57, %v9512_v48  ;;  %v9687_v42 = vadd.f32 %v2438_v58, %v9515_v38  ;;  %v3750_v48 = vld [vmem:[%s10324_s4 + $0x1980] sm:$0xff]  ;;  %v3751_v38 = vld [vmem:[%s10324_s4 + $0x1988] sm:$0xff]  ;;  %v2490_v17 = vmul.f32 %v3734_v7, %v10590_v31  ;;  %v2491_v26 = vmul.f32 %v3735_v37, %v10590_v31  ;;  %v3753_v4 = vld [vmem:[%s10324_s4 + $0x1998] sm:$0xff] }
 0x1c6   : > { %v2492_v3 = vmul.f32 %v3736_v18, %v10590_v31  ;;  %v2493_v36 = vmul.f32 %v3737_v46, %v10590_v31  ;;  %v2494_v56 = vmul.f32 %v3738_v22, %v10590_v31  ;;  %v2495_v12 = vmul.f32 %v3739_v28, %v10590_v31  ;;  %v3755_v60 = vld [vmem:[%s10324_s4 + $0x19a8] sm:$0xff]  ;;  %v3756_v0 = vld [vmem:[%s10324_s4 + $0x19b0] sm:$0xff]  ;;  %v3757_v35 = vld [vmem:[%s10324_s4 + $0x19b8] sm:$0xff] }
 0x1c7   : > { %v2496_v21 = vmul.f32 %v3740_v43, %v10590_v31  ;;  %v2497_v16 = vmul.f32 %v3741_v6, %v10590_v31  ;;  %v2498_v15 = vmul.f32 %v3742_v5, %v10590_v31  ;;  %v2499_v2 = vmul.f32 %v3743_v14, %v10590_v31  ;;  %v3758_v7 = vld [vmem:[%s10324_s4 + $0x19c0] sm:$0xf] }
 0x1c8   : > { %v2500_v57 = vmul.f32 %v3744_v47, %v10590_v31  ;;  %v2501_v58 = vmul.f32 %v3745_v54, %v10590_v31  ;;  %v2502_v37 = vmul.f32 %v3746_v50, %v10590_v31  ;;  %v2503_v18 = vmul.f32 %v3747_v39, %v10590_v31 }
 0x1c9   : > { %v2504_v46 = vmul.f32 %v3748_v53, %v10590_v31  ;;  %v2505_v22 = vmul.f32 %v3749_v30, %v10590_v31  ;;  %v2506_v28 = vmul.f32 %v3750_v48, %v10590_v31  ;;  %v2507_v43 = vmul.f32 %v3751_v38, %v10590_v31 }
 0x1ca   : > { %v2508_v6 = vmul.f32 %v3752_v61, %v10590_v31  ;;  %v2509_v5 = vmul.f32 %v3753_v4, %v10590_v31  ;;  %v2510_v14 = vmul.f32 %v3754_v27, %v10590_v31  ;;  %v2511_v47 = vmul.f32 %v3755_v60, %v10590_v31  ;;  %v3766_v27 = vld [vmem:[%s10324_s4 + $0x1a00] sm:$0xff]  ;;  %v3773_v60 = vld [vmem:[%s10324_s4 + $0x1a38] sm:$0xff] }
 0x1cb   : > { %v2512_v54 = vmul.f32 %v3756_v0, %v10590_v31  ;;  %v2513_v50 = vmul.f32 %v3757_v35, %v10590_v31  ;;  %v2514_v39 = vmul.f32 %v3758_v7, %v10590_v31  ;;  %v9754_v53 = vadd.f32 %v2490_v17, %v9579_v52  ;;  %v3762_v17 = vld [vmem:[%s10324_s4 + $0x19e0] sm:$0xff]  ;;  %v3785_v7 = vld [vmem:[%s10324_s4 + $0x1a98] sm:$0xff] }
 0x1cc   : > { %v9757_v30 = vadd.f32 %v2491_v26, %v9582_v9  ;;  %v9760_v48 = vadd.f32 %v2492_v3, %v9585_v8  ;;  %v9763_v38 = vadd.f32 %v2493_v36, %v9588_v23  ;;  %v9766_v61 = vadd.f32 %v2494_v56, %v9591_v62  ;;  %v3759_v62 = vld [vmem:[%s10324_s4 + $0x19c8] sm:$0xff]  ;;  %v3765_v36 = vld [vmem:[%s10324_s4 + $0x19f8] sm:$0xff] }
 0x1cd   : > { %v9769_v4 = vadd.f32 %v2495_v12, %v9594_v51  ;;  %v9772_v31 = vadd.f32 %v2496_v21, %v9597_v41  ;;  %v9775_v52 = vadd.f32 %v2497_v16, %v9600_v13  ;;  %v9778_v9 = vadd.f32 %v2498_v15, %v9603_v63  ;;  %v3760_v51 = vld [vmem:[%s10324_s4 + $0x19d0] sm:$0xff]  ;;  %v3761_v41 = vld [vmem:[%s10324_s4 + $0x19d8] sm:$0xff]  ;;  %v3763_v26 = vld [vmem:[%s10324_s4 + $0x19e8] sm:$0xff] }
 0x1ce   : > { %v9781_v8 = vadd.f32 %v2499_v2, %v9615_v25  ;;  %v9784_v23 = vadd.f32 %v2500_v57, %v9618_v1  ;;  %v9796_v13 = vadd.f32 %v2501_v58, %v9621_v19  ;;  %v9799_v63 = vadd.f32 %v2502_v37, %v9624_v32  ;;  %v3764_v19 = vld [vmem:[%s10324_s4 + $0x19f0] sm:$0xff]  ;;  %v3769_v21 = vld [vmem:[%s10324_s4 + $0x1a18] sm:$0xff]  ;;  %v3775_v37 = vld [vmem:[%s10324_s4 + $0x1a48] sm:$0xff] }
 0x1cf   : > { %v9802_v25 = vadd.f32 %v2503_v18, %v9636_v45  ;;  %v9805_v1 = vadd.f32 %v2504_v46, %v9639_v11  ;;  %v9817_v32 = vadd.f32 %v2505_v22, %v9642_v34  ;;  %v9820_v45 = vadd.f32 %v2506_v28, %v9645_v10  ;;  %v3767_v34 = vld [vmem:[%s10324_s4 + $0x1a08] sm:$0xff]  ;;  %v3768_v12 = vld [vmem:[%s10324_s4 + $0x1a10] sm:$0xff]  ;;  %v3777_v46 = vld [vmem:[%s10324_s4 + $0x1a58] sm:$0xff] }
 0x1d0   : > { %v9823_v11 = vadd.f32 %v2507_v43, %v9657_v59  ;;  %v9826_v3 = vadd.f32 %v2508_v6, %v9660_v24  ;;  %v9838_v10 = vadd.f32 %v2509_v5, %v9663_v29  ;;  %v9841_v59 = vadd.f32 %v2510_v14, %v9666_v33  ;;  %v3770_v29 = vld [vmem:[%s10324_s4 + $0x1a20] sm:$0xff]  ;;  %v3772_v16 = vld [vmem:[%s10324_s4 + $0x1a30] sm:$0xff]  ;;  %v3779_v14 = vld [vmem:[%s10324_s4 + $0x1a68] sm:$0xff] }
 0x1d1   : > { %v9844_v24 = vadd.f32 %v2511_v47, %v9678_v44  ;;  %v9847_v56 = vadd.f32 %v2512_v54, %v9681_v49  ;;  %v9859_v33 = vadd.f32 %v2513_v50, %v9684_v55  ;;  %v9862_v44 = vadd.f32 %v2514_v39, %v9687_v42  ;;  %v3771_v49 = vld [vmem:[%s10324_s4 + $0x1a28] sm:$0xff]  ;;  %v3774_v42 = vld [vmem:[%s10324_s4 + $0x1a40] sm:$0xff]  ;;  %v3784_v58 = vld [vmem:[%s10324_s4 + $0x1a90] sm:$0xff] }
 0x1d2   : > { %v2566_v0 = vmul.f32 %v3759_v62, %v10496_v20  ;;  %v2567_v55 = vmul.f32 %v3760_v51, %v10496_v20  ;;  %v2568_v35 = vmul.f32 %v3761_v41, %v10496_v20  ;;  %v2569_v15 = vmul.f32 %v3762_v17, %v10496_v20  ;;  %v3776_v18 = vld [vmem:[%s10324_s4 + $0x1a50] sm:$0xff]  ;;  %v3778_v5 = vld [vmem:[%s10324_s4 + $0x1a60] sm:$0xff] }
 0x1d3   : > { %10591 = vst [vmem:[#allocation53_spill] sm:$0xff] %v9859_v33  ;;  %10592 = vst [vmem:[#allocation30_spill] sm:$0xff] %v9862_v44  ;;  %v2570_v2 = vmul.f32 %v3763_v26, %v10496_v20  ;;  %v2571_v57 = vmul.f32 %v3764_v19, %v10496_v20  ;;  %v2572_v22 = vmul.f32 %v3765_v36, %v10496_v20  ;;  %v3780_v47 = vld [vmem:[%s10324_s4 + $0x1a70] sm:$0xff]  ;;  %v3786_v17 = vld [vmem:[%s10324_s4 + $0x1aa0] sm:$0xff] }
 0x1d4   : > { %v2573_v28 = vmul.f32 %v3766_v27, %v10496_v20  ;;  %v2574_v43 = vmul.f32 %v3767_v34, %v10496_v20  ;;  %v2575_v6 = vmul.f32 %v3768_v12, %v10496_v20  ;;  %v2576_v54 = vmul.f32 %v3769_v21, %v10496_v20  ;;  %v3787_v26 = vld [vmem:[%s10324_s4 + $0x1aa8] sm:$0xff]  ;;  %v3809_v12 = vld [vmem:[%s10324_s4 + $0x1b58] sm:$0xff]  ;;  %v3810_v21 = vld [vmem:[%s10324_s4 + $0x1b60] sm:$0xff] }
 0x1d5   : > { %v2577_v50 = vmul.f32 %v3770_v29, %v10496_v20  ;;  %v2578_v39 = vmul.f32 %v3771_v49, %v10496_v20  ;;  %v2579_v62 = vmul.f32 %v3772_v16, %v10496_v20  ;;  %v2591_v51 = vadd.f32 %v2566_v0, %v9754_v53  ;;  %v3781_v29 = vld [vmem:[%s10324_s4 + $0x1a78] sm:$0xff]  ;;  %v3782_v49 = vld [vmem:[%s10324_s4 + $0x1a80] sm:$0xff]  ;;  %v3783_v16 = vld [vmem:[%s10324_s4 + $0x1a88] sm:$0xf] }
 0x1d6   : > { %v2592_v41 = vadd.f32 %v2567_v55, %v9757_v30  ;;  %v2642_v19 = vmul.f32 %v3784_v58, %v10442_v40  ;;  %v2643_v36 = vmul.f32 %v3785_v7, %v10442_v40  ;;  %v2580_v27 = vmul.f32 %v3773_v60, %v10496_v20  ;;  %v10593_v44 = vld [vmem:[#allocation18_spill] sm:$0xff] }
 0x1d7   : > { %v9926_v34 = vmul.f32 %v3774_v42, %v10496_v20  ;;  %v9929_v53 = vmul.f32 %v3775_v37, %v10496_v20  ;;  %v9932_v30 = vmul.f32 %v3776_v18, %v10496_v20  ;;  %v9950_v60 = vmul.f32 %v3777_v46, %v10496_v20  ;;  %v3788_v46 = vld [vmem:[%s10324_s4 + $0x1ab0] sm:$0xff] }
 0x1d8   : > { %v9953_v0 = vmul.f32 %v3778_v5, %v10496_v20  ;;  %v9956_v55 = vmul.f32 %v3779_v14, %v10496_v20  ;;  %v9959_v42 = vmul.f32 %v3780_v47, %v10496_v20  ;;  %v2593_v58 = vadd.f32 %v2568_v35, %v9760_v48  ;;  %v3789_v5 = vld [vmem:[%s10324_s4 + $0x1ab8] sm:$0xff] }
 0x1d9   : > { %v2594_v7 = vadd.f32 %v2569_v15, %v9763_v38  ;;  %v2644_v37 = vmul.f32 %v3786_v17, %v10442_v40  ;;  %v2645_v18 = vmul.f32 %v3787_v26, %v10442_v40  ;;  %v2667_v14 = vadd.f32 %v2642_v19, %v2591_v51  ;;  %v3811_v51 = vld [vmem:[%s10324_s4 + $0x1b68] sm:$0xff] }
 0x1da   : > { %v2668_v47 = vadd.f32 %v2643_v36, %v2592_v41  ;;  %v2718_v33 = vmul.f32 %v3809_v12, %v10593_v44  ;;  %v2719_v48 = vmul.f32 %v3810_v21, %v10593_v44  ;;  %v9974_v38 = vmul.f32 %v3781_v29, %v10496_v20  ;;  %v3812_v41 = vld [vmem:[%s10324_s4 + $0x1b70] sm:$0xff] }
 0x1db   : > { %v9977_v35 = vmul.f32 %v3782_v49, %v10496_v20  ;;  %v9980_v15 = vmul.f32 %v3783_v16, %v10496_v20  ;;  %v2595_v17 = vadd.f32 %v2570_v2, %v9766_v61  ;;  %v2596_v26 = vadd.f32 %v2571_v57, %v9769_v4  ;;  %v3790_v61 = vld [vmem:[%s10324_s4 + $0x1ac0] sm:$0xff]  ;;  %v3791_v2 = vld [vmem:[%s10324_s4 + $0x1ac8] sm:$0xff] }
 0x1dc   : > { %v2597_v19 = vadd.f32 %v2572_v22, %v9772_v31  ;;  %v2598_v36 = vadd.f32 %v2573_v28, %v9775_v52  ;;  %v2599_v20 = vadd.f32 %v2574_v43, %v9778_v9  ;;  %v2646_v12 = vmul.f32 %v3788_v46, %v10442_v40  ;;  %v3813_v31 = vld [vmem:[%s10324_s4 + $0x1b78] sm:$0xff]  ;;  %v3814_v52 = vld [vmem:[%s10324_s4 + $0x1b80] sm:$0xff]  ;;  %v10595_v46 = vld [vmem:[#allocation17_spill] sm:$0xff] }
 0x1dd   : > { %v2647_v21 = vmul.f32 %v3789_v5, %v10442_v40  ;;  %v2669_v29 = vadd.f32 %v2644_v37, %v2593_v58  ;;  %v2670_v4 = vadd.f32 %v2645_v18, %v2594_v7  ;;  %v2720_v9 = vmul.f32 %v3811_v51, %v10593_v44  ;;  %v3794_v51 = vld [vmem:[%s10324_s4 + $0x1ae0] sm:$0xff] }
 0x1de   : > { %v2721_v57 = vmul.f32 %v3812_v41, %v10593_v44  ;;  %v2743_v22 = vadd.f32 %v2718_v33, %v2667_v14  ;;  %v2744_v28 = vadd.f32 %v2719_v48, %v2668_v47  ;;  %v2600_v43 = vadd.f32 %v2575_v6, %v9781_v8  ;;  %v3792_v8 = vld [vmem:[%s10324_s4 + $0x1ad0] sm:$0xff]  ;;  %v3815_v6 = vld [vmem:[%s10324_s4 + $0x1b88] sm:$0xff] }
 0x1df   : > { %v10014_v49 = vadd.f32 %v2576_v54, %v9784_v23  ;;  %v10017_v16 = vadd.f32 %v2577_v50, %v9796_v13  ;;  %v10020_v58 = vadd.f32 %v2578_v39, %v9799_v63  ;;  %v10023_v7 = vadd.f32 %v2579_v62, %v9802_v25  ;;  %v3793_v23 = vld [vmem:[%s10324_s4 + $0x1ad8] sm:$0xff]  ;;  %v3816_v54 = vld [vmem:[%s10324_s4 + $0x1b90] sm:$0xff]  ;;  %v3795_v41 = vld [vmem:[%s10324_s4 + $0x1ae8] sm:$0xff] }
 0x1e0   : > { %v10026_v37 = vadd.f32 %v2580_v27, %v9805_v1  ;;  %v2648_v33 = vmul.f32 %v3790_v61, %v10442_v40  ;;  %v2649_v18 = vmul.f32 %v3791_v2, %v10442_v40  ;;  %v2671_v13 = vadd.f32 %v2646_v12, %v2595_v17  ;;  %v10594_v62 = vld [vmem:[#allocation19_spill] sm:$0xff] }
 0x1e1   : > { %v2672_v63 = vadd.f32 %v2647_v21, %v2596_v26  ;;  %v2722_v25 = vmul.f32 %v3813_v31, %v10593_v44  ;;  %v2723_v1 = vmul.f32 %v3814_v52, %v10593_v44  ;;  %v2745_v50 = vadd.f32 %v2720_v9, %v2669_v29  ;;  %v10596_v21 = vld [vmem:[#allocation20_spill] sm:$0xff] }
 0x1e2   : > { %v2746_v39 = vadd.f32 %v2721_v57, %v2670_v4  ;;  %v2768_v27 = vmax.f32 %v10594_v62, %v2743_v22  ;;  %v2769_v5 = vmax.f32 %v10595_v46, %v2744_v28  ;;  %v10048_v14 = vadd.f32 %v9926_v34, %v9817_v32  ;;  %v10597_v4 = vld [vmem:[#allocation44_spill] sm:$0xff]  ;;  %v3796_v28 = vld [vmem:[%s10324_s4 + $0x1af0] sm:$0xff] }
 0x1e3   : > { %v10052_v47 = vadd.f32 %v9929_v53, %v9820_v45  ;;  %v10056_v48 = vadd.f32 %v9932_v30, %v9823_v11  ;;  %v10059_v17 = vstv %s9990_s11  ;;  %v2650_v32 = vmul.f32 %v3792_v8, %v10442_v40  ;;  %v3817_v11 = vld [vmem:[%s10324_s4 + $0x1b98] sm:$0xff]  ;;  %v3818_v30 = vld [vmem:[%s10324_s4 + $0x1ba0] sm:$0xff]  ;;  %v3819_v8 = vld [vmem:[%s10324_s4 + $0x1ba8] sm:$0xff] }
 0x1e4   : > { %v2651_v34 = vmul.f32 %v3793_v23, %v10442_v40  ;;  %v2673_v45 = vadd.f32 %v2648_v33, %v2597_v19  ;;  %v2674_v53 = vadd.f32 %v2649_v18, %v2598_v36  ;;  %v2724_v26 = vmul.f32 %v3815_v6, %v10593_v44  ;;  %v3797_v33 = vld [vmem:[%s10324_s4 + $0x1af8] sm:$0xff]  ;;  %v3820_v23 = vld [vmem:[%s10324_s4 + $0x1bb0] sm:$0xff]  ;;  %v10599_v6 = vld [vmem:[#allocation45_spill] sm:$0xff] }
 0x1e5   : > { %v2725_v61 = vmul.f32 %v3816_v54, %v10593_v44  ;;  %v2747_v2 = vadd.f32 %v2722_v25, %v2671_v13  ;;  %v2748_v12 = vadd.f32 %v2723_v1, %v2672_v63  ;;  %v2770_v29 = vmax.f32 %v10596_v21, %v2745_v50  ;;  %v10598_v25 = vld [vmem:[#allocation21_spill] sm:$0xff] }
 0x1e6   : > { %v2771_v31 = vmax.f32 %v10597_v4, %v2746_v39  ;;  %v2795_v19 = vadd.f32 %v10059_v17, %v2768_v27  ;;  %v2796_v36 = vadd.f32 %v10059_v17, %v2769_v5  ;;  %v10083_v52 = vadd.f32 %v9950_v60, %v9826_v3  ;;  %v3798_v3 = vld [vmem:[%s10324_s4 + $0x1b00] sm:$0xff] }
 0x1e7   : > { %v10087_v9 = vadd.f32 %v9953_v0, %v9838_v10  ;;  %v2652_v57 = vmul.f32 %v3794_v51, %v10442_v40  ;;  %v2653_v22 = vmul.f32 %v3795_v41, %v10442_v40  ;;  %v2675_v60 = vadd.f32 %v2650_v32, %v2599_v20  ;;  %v3799_v51 = vld [vmem:[%s10324_s4 + $0x1b08] sm:$0xff] }
 0x1e8   : > { %v2676_v18 = vadd.f32 %v2651_v34, %v2600_v43  ;;  %v2726_v10 = vmul.f32 %v3817_v11, %v10593_v44  ;;  %v2727_v0 = vmul.f32 %v3818_v30, %v10593_v44  ;;  %v2749_v13 = vadd.f32 %v2724_v26, %v2673_v45  ;;  %v3821_v11 = vld [vmem:[%s10324_s4 + $0x1bb8] sm:$0xff]  ;;  %v10600_v26 = vld [vmem:[#allocation22_spill] sm:$0xff] }
 0x1e9   : > { %v2750_v63 = vadd.f32 %v2725_v61, %v2674_v53  ;;  %v2772_v1 = vmax.f32 %v10598_v25, %v2747_v2  ;;  %v2773_v20 = vmax.f32 %v10599_v6, %v2748_v12  ;;  %v2797_v43 = vadd.f32 %v10059_v17, %v2770_v29  ;;  %v3872_v53 = vld [vmem:[%s8404_s18 + $0x4] ss:$8 sps:$4 sm:$0x1f]   ;;  %v10601_v2 = vld [vmem:[#allocation46_spill] sm:$0xff] }
 0x1ea   : > { %v2798_v54 = vadd.f32 %v10059_v17, %v2771_v31  ;;  %v2820_v50 = vmax.f32 %v2795_v19, 0.0  ;;  %v2821_v39 = vmax.f32 %v2796_v36, 0.0  ;;  %v2654_v62 = vmul.f32 %v3796_v28, %v10442_v40  ;;  %v3801_v28 = vld [vmem:[%s10324_s4 + $0x1b18] sm:$0xff]  ;;  %3838 = vmatprep.mubr.msk.bf16.mxu0 %vm2872_vm0, %v3872_v53 }
 0x1eb   : > { %v2655_v27 = vmul.f32 %v3797_v33, %v10442_v40  ;;  %v2656_v46 = vmul.f32 %v3798_v3, %v10442_v40  ;;  %v2677_v5 = vadd.f32 %v2652_v57, %v10014_v49  ;;  %v2678_v41 = vadd.f32 %v2653_v22, %v10017_v16  ;;  %v3822_v49 = vld [vmem:[%s10324_s4 + $0x1bc0] sm:$0xff]  ;;  %v3800_v22 = vld [vmem:[%s10324_s4 + $0x1b10] sm:$0xff] }
 0x1ec   : > { %v2728_v32 = vmul.f32 %v3819_v8, %v10593_v44  ;;  %v2729_v34 = vmul.f32 %v3820_v23, %v10593_v44  ;;  %v2751_v45 = vadd.f32 %v2726_v10, %v2675_v60  ;;  %v2752_v30 = vadd.f32 %v2727_v0, %v2676_v18  ;;  %v10602_v10 = vld [vmem:[#allocation23_spill] sm:$0xff] }
 0x1ed   : > { %v2774_v61 = vmax.f32 %v10600_v26, %v2749_v13  ;;  %v2775_v12 = vmax.f32 %v10601_v2, %v2750_v63  ;;  %v2799_v16 = vadd.f32 %v10059_v17, %v2772_v1  ;;  %v2800_v21 = vadd.f32 %v10059_v17, %v2773_v20  ;;  %v10603_v8 = vld [vmem:[#allocation47_spill] sm:$0xff] }
 0x1ee   : > { %v2822_v29 = vmax.f32 %v2797_v43, 0.0  ;;  %v2823_v4 = vmax.f32 %v2798_v54, 0.0  ;;  %v2850_v31 = vpack.c.bf16 %v2821_v39, %v2820_v50  ;;  %v2657_v19 = vmul.f32 %v3799_v51, %v10442_v40 }
 0x1ef   : > { %v2679_v36 = vadd.f32 %v2654_v62, %v10020_v58  ;;  %v2680_v57 = vadd.f32 %v2655_v27, %v10023_v7  ;;  %v2730_v33 = vmul.f32 %v3821_v11, %v10593_v44  ;;  %v2731_v3 = vmul.f32 %v3822_v49, %v10593_v44  ;;  %v3823_v58 = vld [vmem:[%s10324_s4 + $0x1bc8] sm:$0xff]  ;;  %v3824_v7 = vld [vmem:[%s10324_s4 + $0x1bd0] sm:$0xff]  ;;  %v3802_v62 = vld [vmem:[%s10324_s4 + $0x1b20] sm:$0xff] }
 0x1f0   : > { %v2753_v60 = vadd.f32 %v2728_v32, %v2677_v5  ;;  %v2754_v18 = vadd.f32 %v2729_v34, %v2678_v41  ;;  %v2776_v0 = vmax.f32 %v10602_v10, %v2751_v45  ;;  %v2777_v23 = vmax.f32 %v10603_v8, %v2752_v30  ;;  %v3803_v27 = vld [vmem:[%s10324_s4 + $0x1b28] sm:$0xff]  ;;  %v10604_v32 = vld [vmem:[#allocation24_spill] sm:$0xff] }
 0x1f1   : > { %v2801_v13 = vadd.f32 %v10059_v17, %v2774_v61  ;;  %v3930_v63 = vmov 0   ;;  %v2802_v25 = vadd.f32 %v10059_v17, %v2775_v12  ;;  %v2824_v1 = vmax.f32 %v2799_v16, 0.0  ;;  %v10605_v45 = vld [vmem:[#allocation48_spill] sm:$0xff] }
 0x1f2   : > { %2880 = vmatprep.subr.bf16.mxu0 %v3930_v63  ;;  %v2825_v6 = vmax.f32 %v2800_v21, 0.0  ;;  %v2851_v20 = vpack.c.bf16 %v2823_v4, %v2822_v29  ;;  %v10157_v43 = vadd.f32 %v9956_v55, %v9841_v59  ;;  %v2658_v54 = vmul.f32 %v3800_v22, %v10442_v40  ;;  %v3804_v21 = vld [vmem:[%s10324_s4 + $0x1b30] sm:$0xff]  ;;  %v3805_v29 = vld [vmem:[%s10324_s4 + $0x1b38] sm:$0xff] }
 0x1f3   : > { %2881 = vmatpush1.bf16.msra.mxu0 %v2850_v31  ;;  %v2659_v50 = vmul.f32 %v3801_v28, %v10442_v40  ;;  %v2681_v39 = vadd.f32 %v2656_v46, %v10026_v37  ;;  %v2682_v5 = vadd.f32 %v2657_v19, %v10048_v14  ;;  %v2732_v59 = vmul.f32 %v3823_v58, %v10593_v44  ;;  %v3825_v37 = vld [vmem:[%s10324_s4 + $0x1bd8] sm:$0xff]  ;;  %v3826_v46 = vld [vmem:[%s10324_s4 + $0x1be0] sm:$0xff]  ;;  %v3828_v19 = vld [vmem:[%s10324_s4 + $0x1bf0] sm:$0xff] }
 0x1f4   : > { %2882 = vmatprep.subr.bf16.mxu0 %v3930_v63  ;;  %v2733_v55 = vmul.f32 %v3824_v7, %v10593_v44  ;;  %v2755_v51 = vadd.f32 %v2730_v33, %v2679_v36  ;;  %v2756_v41 = vadd.f32 %v2731_v3, %v2680_v57  ;;  %v2778_v34 = vmax.f32 %v10604_v32, %v2753_v60  ;;  %v10606_v57 = vld [vmem:[#allocation25_spill] sm:$0xff] }
 0x1f5   : > { %v2779_v53 = vmax.f32 %v10605_v45, %v2754_v18  ;;  %v2803_v14 = vadd.f32 %v10059_v17, %v2776_v0  ;;  %v2804_v11 = vadd.f32 %v10059_v17, %v2777_v23  ;;  %v2826_v49 = vmax.f32 %v2801_v13, 0.0  ;;  %v10607_v28 = vld [vmem:[#allocation49_spill] sm:$0xff]  ;;  %v3806_v23 = vld [vmem:[%s10324_s4 + $0x1b40] sm:$0xff] }
 0x1f6   : > { %v2827_v30 = vmax.f32 %v2802_v25, 0.0  ;;  %v2852_v26 = vpack.c.bf16 %v2825_v6, %v2824_v1  ;;  %v2612_v61 = vadd.f32 %v9959_v42, %v9844_v24  ;;  %v2660_v2 = vmul.f32 %v3802_v62, %v10442_v40  ;;  %v3807_v13 = vld [vmem:[%s10324_s4 + $0x1b48] sm:$0xff]  ;;  %v3830_v6 = vld [vmem:[%s10324_s4 + $0x1c00] sm:$0xff] }
 0x1f7   : > { %2883 = vmatpush1.bf16.msra.mxu0 %v2851_v20  ;;  %v2661_v12 = vmul.f32 %v3803_v27, %v10442_v40  ;;  %v2683_v16 = vadd.f32 %v2658_v54, %v10052_v47  ;;  %v2684_v4 = vadd.f32 %v2659_v50, %v10056_v48  ;;  %v2734_v24 = vmul.f32 %v3825_v37, %v10593_v44  ;;  %v3827_v47 = vld [vmem:[%s10324_s4 + $0x1be8] sm:$0xff]  ;;  %v10608_v54 = vld [vmem:[#allocation26_spill] sm:$0xff] }
 0x1f8   : > { %2884 = vmatprep.subr.bf16.mxu0 %v3930_v63  ;;  %v2735_v42 = vmul.f32 %v3826_v46, %v10593_v44  ;;  %v2757_v31 = vadd.f32 %v2732_v59, %v2681_v39  ;;  %v2758_v36 = vadd.f32 %v2733_v55, %v2682_v5  ;;  %v2780_v22 = vmax.f32 %v10606_v57, %v2755_v51  ;;  %v10609_v39 = vld [vmem:[#allocation50_spill] sm:$0xff]  ;;  %v10610_v51 = vld [vmem:[#allocation53_spill] sm:$0xff] }
 0x1f9   : > { %v2781_v33 = vmax.f32 %v10607_v28, %v2756_v41  ;;  %v2805_v48 = vadd.f32 %v10059_v17, %v2778_v34  ;;  %v2806_v3 = vadd.f32 %v10059_v17, %v2779_v53  ;;  %v2828_v60 = vmax.f32 %v2803_v14, 0.0  ;;  %v3808_v34 = vld [vmem:[%s10324_s4 + $0x1b50] sm:$0xf] }
 0x1fa   : > { %v2829_v58 = vmax.f32 %v2804_v11, 0.0  ;;  %v2853_v7 = vpack.c.bf16 %v2827_v30, %v2826_v49  ;;  %v2613_v18 = vadd.f32 %v9974_v38, %v9847_v56  ;;  %v2662_v10 = vmul.f32 %v3804_v21, %v10442_v40  ;;  %v10611_v30 = vld [vmem:[#allocation27_spill] sm:$0xff] }
 0x1fb   : > { %2885 = vmatpush1.bf16.msra.mxu0 %v2852_v26  ;;  %v2663_v0 = vmul.f32 %v3805_v29, %v10442_v40  ;;  %v2685_v8 = vadd.f32 %v2660_v2, %v10083_v52  ;;  %v2686_v25 = vadd.f32 %v2661_v12, %v10087_v9  ;;  %v2736_v56 = vmul.f32 %v3827_v47, %v10593_v44  ;;  %v3829_v52 = vld [vmem:[%s10324_s4 + $0x1bf8] sm:$0xff] }
 0x1fc   : > { %2886 = vmatprep.subr.bf16.mxu0 %v3930_v63  ;;  %v2737_v38 = vmul.f32 %v3828_v19, %v10593_v44  ;;  %v2759_v1 = vadd.f32 %v2734_v24, %v2683_v16  ;;  %v2760_v20 = vadd.f32 %v2735_v42, %v2684_v4  ;;  %v2782_v50 = vmax.f32 %v10608_v54, %v2757_v31  ;;  %v10612_v2 = vld [vmem:[#allocation51_spill] sm:$0xff]  ;;  %v10613_v24 = vld [vmem:[#allocation68_spill] sm:$0xff] }
 0x1fd   : > { %v2783_v62 = vmax.f32 %v10609_v39, %v2758_v36  ;;  %v2807_v9 = vadd.f32 %v10059_v17, %v2780_v22  ;;  %v2808_v27 = vadd.f32 %v10059_v17, %v2781_v33  ;;  %v2830_v5 = vmax.f32 %v2805_v48, 0.0  ;;  %v10614_v42 = vld [vmem:[#allocation40_spill] sm:$0xff]  ;;  %v10617_v36 = vld [vmem:[#allocation30_spill] sm:$0xff]  ;;  %v3833_v48 = vld [vmem:[%s10324_s4 + $0x1c18] sm:$0xf] }
 0x1fe   : > { %v2831_v59 = vmax.f32 %v2806_v3, 0.0  ;;  %v2854_v55 = vpack.c.bf16 %v2829_v58, %v2828_v60  ;;  %v2614_v37 = vadd.f32 %v9977_v35, %v10610_v51  ;;  %v2664_v46 = vmul.f32 %v3806_v23, %v10442_v40  ;;  %v3831_v35 = vld [vmem:[%s10324_s4 + $0x1c08] sm:$0xff]  ;;  %v10615_v31 = vld [vmem:[#allocation64_spill] sm:$0xff]  ;;  %v10630_v51 = vld [vmem:[#allocation66_spill] sm:$0xff] }
 0x1ff   : > { %2887 = vmatpush1.bf16.msra.mxu0 %v2853_v7  ;;  %v2665_v41 = vmul.f32 %v3807_v13, %v10442_v40  ;;  %v2687_v32 = vadd.f32 %v2662_v10, %v10157_v43  ;;  %v2688_v45 = vadd.f32 %v2663_v0, %v2612_v61  ;;  %v2738_v53 = vmul.f32 %v3829_v52, %v10593_v44  ;;  %v3832_v43 = vld [vmem:[%s10324_s4 + $0x1c10] sm:$0xff]  ;;  %v10618_v10 = vld [vmem:[#allocation28_spill] sm:$0xff]  ;;  %v10622_v52 = vld [vmem:[#allocation13_spill] sm:$0xff] }
 0x200   : > { %2888 = vmatprep.subr.bf16.mxu0 %v3930_v63  ;;  %v2739_v14 = vmul.f32 %v3830_v6, %v10593_v44  ;;  %v2761_v11 = vadd.f32 %v2736_v56, %v2685_v8  ;;  %v2762_v49 = vadd.f32 %v2737_v38, %v2686_v25  ;;  %v2784_v26 = vmax.f32 %v10611_v30, %v2759_v1  ;;  %v10619_v8 = vld [vmem:[#allocation52_spill] sm:$0xff]  ;;  %v10620_v56 = vld [vmem:[#allocation67_spill] sm:$0xff]  ;;  %v10624_v39 = vld [vmem:[#allocation69_spill] sm:$0xff] }
 0x201   : > { %v2785_v12 = vmax.f32 %v10612_v2, %v2760_v20  ;;  %v2809_v61 = vadd.f32 %v10059_v17, %v2782_v50  ;;  %v2810_v16 = vadd.f32 %v10059_v17, %v2783_v62  ;;  %v2832_v21 = vmax.f32 %v2807_v9, 0.0  ;;  %v10621_v38 = vld [vmem:[#allocation43_spill] sm:$0xff]  ;;  %v10623_v6 = vld [vmem:[#allocation16_spill] sm:$0xff]  ;;  %v10625_v62 = vld [vmem:[#allocation41_spill] sm:$0xff] }
 0x202   : > { %v2833_v29 = vmax.f32 %v2808_v27, 0.0  ;;  %v2855_v4 = vpack.c.bf16 %v2831_v59, %v2830_v5  ;;  %v10616_v47 = vmax.f32 %v10614_v42, %v10615_v31  ;;  %v2615_v57 = vadd.f32 %v9980_v15, %v10617_v36  ;;  %v10626_v9 = vld [vmem:[#allocation65_spill] sm:$0xff]  ;;  %v10628_v59 = vld [vmem:[#allocation70_spill] sm:$0xff] }
 0x203   : > { %2889 = vmatpush1.bf16.msra.mxu0 %v2854_v55  ;;  %v2666_v22 = vmul.f32 %v3808_v34, %v10442_v40  ;;  %v2689_v28 = vadd.f32 %v2664_v46, %v2613_v18  ;;  %v2690_v33 = vadd.f32 %v2665_v41, %v2614_v37  ;;  %v2740_v3 = vmul.f32 %v3831_v35, %v10593_v44  ;;  %v10629_v55 = vld [vmem:[#allocation42_spill] sm:$0xff]  ;;  %v10632_v34 = vld [vmem:[#allocation29_spill] sm:$0xff] }
 0x204   : > { %v2105_v19 = vmax.f32 %v10616_v47, %v10613_v24  ;;  %2890 = vmatprep.subr.bf16.mxu0 %v3930_v63  ;;  %v2741_v60 = vmul.f32 %v3832_v43, %v10593_v44  ;;  %v2763_v58 = vadd.f32 %v2738_v53, %v2687_v32  ;;  %v2764_v7 = vadd.f32 %v2739_v14, %v2688_v45 }
 0x205   : > { %v2786_v0 = vmax.f32 %v10618_v10, %v2761_v11  ;;  %v2787_v15 = vmax.f32 %v10619_v8, %v2762_v49  ;;  %v2811_v40 = vadd.f32 %v10059_v17, %v2784_v26  ;;  %v2812_v18 = vadd.f32 %v10059_v17, %v2785_v12  ;;  %v10633_v10 = vld [vmem:[#allocation9_spill] sm:$0xff] }
 0x206   : > { %v2834_v23 = vmax.f32 %v2809_v61, 0.0  ;;  %v2835_v13 = vmax.f32 %v2810_v16, 0.0  ;;  %v2856_v25 = vpack.c.bf16 %v2833_v29, %v2832_v21  ;;  %v1424_v1 = vmax.f32 %v10621_v38, %v10620_v56 }
 0x207   : > { %2891 = vmatpush1.bf16.msra.mxu0 %v2855_v4  ;;  %v2083_v20 = vadd.f32 %v10623_v6, %v10622_v52  ;;  %v2691_v54 = vadd.f32 %v2666_v22, %v2615_v57  ;;  %v2742_v50 = vmul.f32 %v3833_v48, %v10593_v44  ;;  %v10627_v27 = vmax.f32 %v10625_v62, %v10626_v9 }
 0x208   : > { %2892 = vmatprep.subr.bf16.mxu0 %v3930_v63  ;;  %v10631_v37 = vmax.f32 %v10629_v55, %v10630_v51  ;;  %v2765_v41 = vadd.f32 %v2740_v3, %v2689_v28  ;;  %v2766_v32 = vadd.f32 %v2741_v60, %v2690_v33  ;;  %v2788_v45 = vmax.f32 %v10632_v34, %v2763_v58 }
 0x209   : > { %v2106_v5 = vmax.f32 %v10627_v27, %v10624_v39  ;;  %v2789_v53 = vmax.f32 %v2105_v19, %v2764_v7  ;;  %v2813_v14 = vadd.f32 %v10059_v17, %v2786_v0  ;;  %v2814_v44 = vadd.f32 %v10059_v17, %v2787_v15 }
 0x20a   : > { %v2107_v46 = vmax.f32 %v10631_v37, %v10628_v59  ;;  %v2836_v11 = vmax.f32 %v2811_v40, 0.0  ;;  %v2837_v35 = vmax.f32 %v2812_v18, 0.0  ;;  %v2857_v43 = vpack.c.bf16 %v2835_v13, %v2834_v23  ;;  %v10634_v40 = vld [vmem:[#allocation8_spill] sm:$0xff]  ;;  %v2924_v13 = vld [vmem:[%s10323_s3 + $0x8] sm:$0x3] (%p50_p10) }
 0x20b   : > { %2893 = vmatpush1.bf16.msra.mxu0 %v2856_v25  ;;  %v2108_v49 = vmax.f32 %v1424_v1, %v2083_v20  ;;  %v2767_v30 = vadd.f32 %v2742_v50, %v2691_v54  ;;  %v2790_v26 = vmax.f32 %v2106_v5, %v2765_v41  ;;  %v2815_v12 = vadd.f32 %v10059_v17, %v2788_v45 }
 0x20c   : > { %2894 = vmatprep.subr.bf16.mxu0 %v3930_v63  ;;  %v2791_v2 = vmax.f32 %v2107_v46, %v2766_v32  ;;  %v2816_v61 = vadd.f32 %v10059_v17, %v2789_v53  ;;  %v2838_v16 = vmax.f32 %v2813_v14, 0.0  ;;  %v2839_v21 = vmax.f32 %v2814_v44, 0.0 }
 0x20d   : > { %v2858_v29 = vpack.c.bf16 %v2837_v35, %v2836_v11  ;;  %v2792_v4 = vmax.f32 %v2108_v49, %v2767_v30  ;;  %v2817_v24 = vadd.f32 %v10059_v17, %v2790_v26  ;;  %v2840_v31 = vmax.f32 %v2815_v12, 0.0 }
 0x20e   : > { %v2818_v42 = vadd.f32 %v10059_v17, %v2791_v2  ;;  %v2841_v47 = vmax.f32 %v2816_v61, 0.0  ;;  %v2859_v19 = vpack.c.bf16 %v2839_v21, %v2838_v16  ;;  %v3931_v23 = vmov (%p50_p10), 0  }
 0x20f   : > { %2895 = vmatpush1.bf16.msra.mxu0 %v2857_v43  ;;  %v2819_v36 = vadd.f32 %v10059_v17, %v2792_v4  ;;  %v2842_v57 = vmax.f32 %v2817_v24, 0.0  ;;  %v3870_v17 = vld [vmem:[%s8404_s18] ss:$8 sps:$4 sm:$0x1f]   ;;  %3873 = vset.pattern.permute.xlu0 (%p50_p10), %v3931_v23 }
 0x210   : > { %2896 = vmatprep.subr.bf16.mxu0 %v3930_v63  ;;  %v2843_v22 = vmax.f32 %v2818_v42, 0.0  ;;  %v2860_v28 = vpack.c.bf16 %v2841_v47, %v2840_v31 }
 0x211   : > { %v2844_v33 = vmax.f32 %v2819_v36, 0.0 }
 0x212   : > { %v2861_v48 = vpack.c.bf16 %v2843_v22, %v2842_v57 }
 0x213   : > { %2897 = vmatpush1.bf16.msra.mxu0 %v2858_v29  ;;  %v2862_v3 = vpack.c.bf16 %v2844_v33, %v2844_v33 }
 0x214   : > { %2898 = vmatprep.subr.bf16.mxu0 %v3930_v63 }
 0x215   : > { %v2878_v60 = vsel %vm2876_vm1, %v2862_v3, 0 }
 0x217   : > { %2899 = vmatpush1.bf16.msra.mxu0 %v2859_v19 }
 0x218   : > { %2900 = vmatprep.subr.bf16.mxu0 %v3930_v63 }
 0x21b   : > { %2901 = vmatpush1.bf16.msra.mxu0 %v2860_v28 }
 0x21c   : > { %2902 = vmatprep.subr.bf16.mxu0 %v3930_v63 }
 0x21f   : > { %2903 = vmatpush1.bf16.msra.mxu0 %v2861_v48 }
 0x220   : > { %2904 = vmatprep.subr.bf16.mxu0 %v3930_v63  ;;  %v2923_v63 = vld [vmem:[%s10323_s3] sm:$0xff] (%p50_p10) }
 0x221   :  { %2927 = vperm.xlu0 (%p50_p10), %3873, %v2923_v63  }
 0x223   : > { %2905 = vmatpush1.bf16.msra.mxu0 %v2878_v60 }
 0x225   :  { %2932 = vperm.xlu0 (%p50_p10), %3873, %v2924_v13  }
 0x226   : > { %2913 = vmatmul.mubr.bf16.vlgmr.msra.gmra.mrb[0].mxu0 %v3870_v17 }
 0x2a0   :  { %v2928_v25 = vpop.permute.xlu0 (%p50_p10), %2927 }
 0x2a4   :  { %v2933_v38 = vpop.permute.xlu0 (%p50_p10), %2932 }
 0x2f8   :  { %52 = sbr.rel (!%p50_p10) target bundleno = 30 (0x1e), region = 91 }
 0x2f9   : > { %v2914_v58 = vpop.f32.mrb[0].mxu0 }
 0x2fa   : > { %v2916_v7 = vpop.f32.mrb[1].mxu0  ;;  %v2921_v8 = vadd.f32 %v10633_v10, %v2914_v58  }
 0x2fb   : > { %v2917_v0 = vpop.f32.mrb[2].mxu0 }
 0x2fc   : > { %v2919_v15 = vpop.f32.mrb[3].mxu0  ;;  %v2922_v18 = vadd.f32 %v10634_v40, %v2917_v0   ;;  %v10636_v1 = vmov %v2921_v8  ;;  %v2935_v56 = vadd.f32 (%p50_p10), %v2928_v25, %v2921_v8 }
 0x2fe   : > { %v10635_v0 = vmov %v2922_v18  ;;  %2937 = vst [vmem:[%s10325_s5] sm:$0xff] (%p50_p10), %v2935_v56  ;;  %v2936_v1 = vadd.f32 (%p50_p10), %v2933_v38, %v2922_v18 }
 0x300   :  { %2938 = vst [vmem:[%s10325_s5 + $0x8] sm:$0x3] %v2936_v1 }
 0x301   :  { %2943 = vsyncpa [#allocation3], 1 }
 0x302   :  { %2944 = vsyncpa [#allocation5], 1 }

</bundles_post_ra>
